<compile_context>
chip_gen: v7x
topology: tpu7x:2x2x1
jax: 0.10.0
libtpu: 0.0.40
codegen_flags: <defaults>
</compile_context>

<pallas_src>
import numpy as np
import jax
import jax.numpy as jnp
from jax import lax
from jax.experimental import pallas as pl
from jax.experimental.pallas import tpu as pltpu

# ----------------------------- configuration (small, deterministic) -----------------------------
B        = 2        # batch
CHANS    = 4        # EEG channels
SAMPLES  = 64       # time samples (divisible by 4*8)
F1       = 8
D        = 2
F2       = 16
KERN_LEN = 16       # conv1 temporal kernel (config.KERN_LENGTH)
SEP_LEN  = 16       # separable conv temporal kernel (fixed (1,16))
FD       = F1 * D               # 16
F1C      = F1 * CHANS           # 32
BF1C     = B * F1C              # 64 (batch-stacked conv rows)
BFD      = B * FD               # 32

PAD1_L = (KERN_LEN - 1) // 2
PAD1_R = (KERN_LEN - 1) - PAD1_L          # PyTorch padding='same' split for even kernels
PAD2_L = (SEP_LEN - 1) // 2
PAD2_R = (SEP_LEN - 1) - PAD2_L
S_PAD  = SAMPLES + KERN_LEN - 1
S4     = SAMPLES // 4                     # after AvgPool2d((1,4))  = 16
S5     = S4 // 8                          # after AvgPool2d((1,8))  = 2
FEAT   = F2 * S5                          # EEGNet feature size     = 32

LSTM_HIDDEN_1   = 32
LSTM_HIDDEN_2   = 32
LSTM_OUTPUT_DIM = 32
H1, H2, H3 = LSTM_HIDDEN_1 // 2, LSTM_HIDDEN_2 // 2, LSTM_OUTPUT_DIM // 2
CLS_HIDDEN = 32
EPS = 1e-5                                # BatchNorm2d / LayerNorm default eps


# ======================================= kernel helpers ========================================
def _sigmoid(x):
    return 1.0 / (1.0 + jnp.exp(-x))


def _elu(x):
    # overflow-safe ELU(alpha=1): never evaluates exp on large positives
    return jnp.where(x > 0, x, jnp.exp(jnp.minimum(x, 0.0)) - 1.0)


def _layernorm(x, gamma, beta):
    mu = jnp.mean(x, axis=-1, keepdims=True)
    var = jnp.mean((x - mu) ** 2, axis=-1, keepdims=True)
    return (x - mu) * jax.lax.rsqrt(var + EPS) * gamma + beta


def _bilstm_step(x, w, b, h):
    """Single-timestep bidirectional LSTM with h0 = c0 = 0.  The forget gate is dropped (it only
    multiplies c0 = 0) and gate columns are laid out [i_f|i_b|o_f|o_b] ++ [g_f|g_b]."""
    g = jnp.dot(x, w, preferred_element_type=jnp.float32) + b     # (B, 6h)
    sig = _sigmoid(g[:, :4 * h])                                  # i_f, i_b, o_f, o_b
    tg = jnp.tanh(g[:, 4 * h:])                                   # g_f, g_b
    c = sig[:, :2 * h] * tg                                       # c = i * g
    return sig[:, 2 * h:] * jnp.tanh(c)                           # [h_fwd | h_bwd]


# ======================================== fused kernel =========================================
def eegnet_lstm_kernel(xim_ref, w1_ref, wdw_ref, o2_ref, p4t_ref, msk_ref, selb_ref,
                       wsep_ref, o3_ref, p8_ref,
                       wg1_ref, bg1_ref, g1_ref, e1_ref,
                       wg2_ref, bg2_ref, g2_ref, e2_ref,
                       wg3_ref, bg3_ref, g3_ref, e3_ref,
                       wc1_ref, bc1_ref, wc2_ref, bc2_ref,
                       feat_ref, out_ref):
    # conv1 ('same' temporal conv, bias=False) with BN1 scale folded into the taps.
    # Every tap is an aligned full-plane load of the im2col stack -> pure VPU FMAs.
    acc = w1_ref[0] * xim_ref[0]
    for k in range(1, KERN_LEN):
        acc = acc + w1_ref[k] * xim_ref[k]                        # (BF1C, SAMPLES)

    # depthwise conv (Chans x 1, groups=F1) as a block-diagonal matmul (BN2 scale folded),
    # BN1+BN2 offsets folded into one per-row offset, then ELU.
    h = jnp.dot(wdw_ref[...], acc, preferred_element_type=jnp.float32) + o2_ref[...]
    h = _elu(h)                                                   # (BFD, SAMPLES)

    # AvgPool2d((1,4)) + per-batch rows->lanes flatten via (pool-tile matmul, group mask, batch
    # row-sum matmul).  Result lanes are ordered j*S4 + t.
    pt = jnp.dot(h, p4t_ref[...], preferred_element_type=jnp.float32)          # (BFD, FD*S4)
    pflat = jnp.dot(selb_ref[...], pt * msk_ref[...],
                    preferred_element_type=jnp.float32)                        # (B, FD*S4)

    # separable conv (1x16, padding='same') as one banded matmul with BN3 scale folded, + offset,
    # ELU.  Result lanes are ordered f2*S4 + t'.
    s = jnp.dot(pflat, wsep_ref[...], preferred_element_type=jnp.float32) + o3_ref[...]
    s = _elu(s)                                                   # (B, F2*S4)

    # AvgPool2d((1,8)) + flatten -> lane-dense (B, FEAT) features (PyTorch flatten order)
    feat = jnp.dot(s, p8_ref[...], preferred_element_type=jnp.float32)         # (B, FEAT)
    feat_ref[...] = feat

    # head: 3 x (single-step BiLSTM -> LayerNorm) + classifier (Linear/ReLU/Linear/Sigmoid).
    # Dropout layers are identity in inference mode.
    x1 = _layernorm(_bilstm_step(feat, wg1_ref[...], bg1_ref[...], H1), g1_ref[...], e1_ref[...])
    x2 = _layernorm(_bilstm_step(x1, wg2_ref[...], bg2_ref[...], H2), g2_ref[...], e2_ref[...])
    x3 = _layernorm(_bilstm_step(x2, wg3_ref[...], bg3_ref[...], H3), g3_ref[...], e3_ref[...])
    y = jnp.maximum(jnp.dot(x3, wc1_ref[...], preferred_element_type=jnp.float32)
                    + bc1_ref[...], 0.0)
    y = jnp.dot(y, wc2_ref[...], preferred_element_type=jnp.float32) + bc2_ref[...]
    out_ref[...] = _sigmoid(y)


# ========================================= wrappers ============================================
def forward(x, weights):
    """Fused EEGNetLSTM forward: one pallas_call, single program, everything staged into VMEM."""
    # glue (plain XLA): zero-pad for 'same', replicate the channel block per F1 filter and per
    # batch element, and build the KERN_LEN aligned im2col planes.
    xp = jnp.pad(x[:, 0], ((0, 0), (0, 0), (PAD1_L, PAD1_R)))             # (B, CHANS, S_PAD)
    xt = jnp.tile(xp, (1, F1, 1)).reshape(BF1C, S_PAD)                    # rows: b*F1C+f1*CHANS+c
    xim = jnp.stack([xt[:, k:k + SAMPLES] for k in range(KERN_LEN)])      # (KERN_LEN, BF1C, SAMPLES)

    vmem = pl.BlockSpec(memory_space=pltpu.MemorySpace.VMEM)
    feat, out = pl.pallas_call(
        eegnet_lstm_kernel,
        out_shape=(jax.ShapeDtypeStruct((B, FEAT), jnp.float32),
                   jax.ShapeDtypeStruct((B, 1), jnp.float32)),
        in_specs=[vmem] * (1 + len(weights)),
        out_specs=(vmem, vmem),
        cost_estimate=pl.CostEstimate(flops=2_000_000, transcendentals=4096,
                                      bytes_accessed=750_000),
    )(xim, *weights)
    return feat, out


# ================================ parameters (deterministic init) ===============================
def make_params(key):
    ks = iter(jax.random.split(key, 64))
    n = lambda shape, s=0.2: s * jax.random.normal(next(ks), shape, jnp.float32)
    u = lambda shape, lo, hi: jax.random.uniform(next(ks), shape, jnp.float32, lo, hi)
    p = {}
    p["w_conv1"] = n((F1, 1, 1, KERN_LEN))
    p["bn1"] = (1.0 + n((F1,), 0.1), n((F1,), 0.1), n((F1,), 0.1), u((F1,), 0.5, 1.5))
    p["w_dw"] = n((FD, 1, CHANS, 1))
    p["bn2"] = (1.0 + n((FD,), 0.1), n((FD,), 0.1), n((FD,), 0.1), u((FD,), 0.5, 1.5))
    p["w_sep"] = n((F2, FD, 1, SEP_LEN))
    p["bn3"] = (1.0 + n((F2,), 0.1), n((F2,), 0.1), n((F2,), 0.1), u((F2,), 0.5, 1.5))

    def lstm(i_dim, h):
        # (W_ih_fwd, b_ih_fwd, b_hh_fwd, W_ih_bwd, b_ih_bwd, b_hh_bwd); gate order i, f, g, o.
        # W_hh omitted: with seq_len == 1 and h0 == c0 == 0 it never contributes to the output.
        return (n((4 * h, i_dim)), n((4 * h,)), n((4 * h,)),
                n((4 * h, i_dim)), n((4 * h,)), n((4 * h,)))

    p["lstm1"], p["ln1"] = lstm(FEAT, H1), (1.0 + n((2 * H1,), 0.1), n((2 * H1,), 0.1))
    p["lstm2"], p["ln2"] = lstm(2 * H1, H2), (1.0 + n((2 * H2,), 0.1), n((2 * H2,), 0.1))
    p["lstm3"], p["ln3"] = lstm(2 * H2, H3), (1.0 + n((2 * H3,), 0.1), n((2 * H3,), 0.1))
    p["cls"] = (n((CLS_HIDDEN, 2 * H3)), n((CLS_HIDDEN,)), n((1, CLS_HIDDEN)), n((1,)))
    return p


def fold_bn(bnp):
    g, b, m, v = bnp
    scale = g / jnp.sqrt(v + EPS)
    return scale, b - m * scale


def make_weight_inputs(p):
    """Glue (host side, once): fold the BatchNorm scales/offsets into the weights and build the
    pooling / relayout / banded separable-conv matmul operands used by the fused kernel."""
    s1, o1 = map(np.asarray, fold_bn(p["bn1"]))
    s2, o2 = map(np.asarray, fold_bn(p["bn2"]))
    s3, o3 = map(np.asarray, fold_bn(p["bn3"]))

    # conv1 taps, BN1 scale folded, replicated to every (batch, f1, chan) row: (KERN_LEN, BF1C, 1)
    w1 = np.asarray(p["w_conv1"]).reshape(F1, KERN_LEN) * s1[:, None]
    w1 = np.repeat(w1, CHANS, axis=0)                              # (F1C, K)
    w1 = np.tile(w1, (B, 1))                                       # (BF1C, K)
    w1k = np.ascontiguousarray(w1.T)[:, :, None].astype(np.float32)

    # depthwise conv as block-diagonal (batch x F1-group) matmul, BN2 scale folded; BN1 + BN2
    # additive offsets folded into a single per-row offset.
    wd = np.asarray(p["w_dw"]).reshape(FD, CHANS)
    wdw = np.zeros((BFD, BF1C), np.float32)
    o2e = np.zeros((BFD, 1), np.float32)
    for b in range(B):
        for j in range(FD):
            f1 = j // D
            wdw[b * FD + j, b * F1C + f1 * CHANS:b * F1C + (f1 + 1) * CHANS] = s2[j] * wd[j]
            o2e[b * FD + j, 0] = o2[j] + s2[j] * o1[f1] * wd[j].sum()

    # AvgPool(1,4) tiled across the FD lane-groups + group mask + per-batch row-sum selector:
    # pflat = selb @ ((h_elu @ p4t) * msk) lays each batch out as lanes j*S4 + t.
    pool4 = (np.arange(SAMPLES)[:, None] // 4 == np.arange(S4)[None, :]).astype(np.float32) / 4.0
    p4t = np.tile(pool4, (1, FD)).astype(np.float32)               # (SAMPLES, FD*S4)
    msk = np.zeros((BFD, FD * S4), np.float32)
    selb = np.zeros((B, BFD), np.float32)
    for b in range(B):
        selb[b, b * FD:(b + 1) * FD] = 1.0
        for j in range(FD):
            msk[b * FD + j, j * S4:(j + 1) * S4] = 1.0

    # separable conv (1x16, padding='same') as one banded (FD*S4, F2*S4) matrix, BN3 scale folded
    wsep = np.asarray(p["w_sep"])[:, :, 0, :]                      # (F2, FD, SEP_LEN)
    t_i = np.arange(S4)[:, None]
    tp_i = np.arange(S4)[None, :]
    kk = t_i - tp_i + PAD2_L
    valid = (kk >= 0) & (kk < SEP_LEN)
    kkc = np.clip(kk, 0, SEP_LEN - 1)
    wsep_m = np.zeros((FD * S4, F2 * S4), np.float32)
    for f2 in range(F2):
        for j in range(FD):
            band = np.where(valid, wsep[f2, j, kkc], 0.0).astype(np.float32) * s3[f2]
            wsep_m[j * S4:(j + 1) * S4, f2 * S4:(f2 + 1) * S4] = band
    o3row = np.repeat(o3, S4)[None, :].astype(np.float32)          # (1, F2*S4)

    # AvgPool(1,8) + flatten -> (B, FEAT) in PyTorch flatten order f2*S5 + t5
    p8 = np.zeros((F2 * S4, FEAT), np.float32)
    for f2 in range(F2):
        for s in range(S4):
            p8[f2 * S4 + s, f2 * S5 + s // 8] = 1.0 / 8.0

    # head: BiLSTM gate matrices with the dead forget gate dropped; column layout
    # [i_fwd | i_bwd | o_fwd | o_bwd] (sigmoid block) ++ [g_fwd | g_bwd] (tanh block).
    def lstm_cat(l, h):
        wf, bif, bhf, wb, bib, bhb = map(np.asarray, l)
        bfs, bbs = bif + bhf, bib + bhb
        W = np.concatenate([wf[0:h].T, wb[0:h].T,                      # i
                            wf[3 * h:4 * h].T, wb[3 * h:4 * h].T,      # o
                            wf[2 * h:3 * h].T, wb[2 * h:3 * h].T],     # g
                           axis=1).astype(np.float32)                  # (in_dim, 6h)
        bvec = np.concatenate([bfs[0:h], bbs[0:h],
                               bfs[3 * h:4 * h], bbs[3 * h:4 * h],
                               bfs[2 * h:3 * h], bbs[2 * h:3 * h]])[None, :].astype(np.float32)
        return W, bvec

    wg1, bg1 = lstm_cat(p["lstm1"], H1)
    wg2, bg2 = lstm_cat(p["lstm2"], H2)
    wg3, bg3 = lstm_cat(p["lstm3"], H3)
    g1, e1 = np.asarray(p["ln1"][0])[None, :], np.asarray(p["ln1"][1])[None, :]
    g2, e2 = np.asarray(p["ln2"][0])[None, :], np.asarray(p["ln2"][1])[None, :]
    g3, e3 = np.asarray(p["ln3"][0])[None, :], np.asarray(p["ln3"][1])[None, :]
    wc1, bc1, wc2, bc2 = map(np.asarray, p["cls"])
    head = (wg1, bg1, g1, e1, wg2, bg2, g2, e2, wg3, bg3, g3, e3,
            wc1.T.astype(np.float32), bc1[None, :].astype(np.float32),
            wc2.T.astype(np.float32), bc2[None, :].astype(np.float32))

    ws = (w1k, wdw, o2e, p4t, msk, selb, wsep_m, o3row, p8) + head
    return tuple(jnp.asarray(a) for a in ws)


# ============================ plain-JAX reference (PyTorch semantics) ===========================
def reference_forward(x, p):
    dn = ("NCHW", "OIHW", "NCHW")

    def bn(y, bnp):
        g, b, m, v = bnp
        sc = g / jnp.sqrt(v + EPS)
        return (y - m[None, :, None, None]) * sc[None, :, None, None] + b[None, :, None, None]

    y = lax.conv_general_dilated(x, p["w_conv1"], (1, 1), [(0, 0), (PAD1_L, PAD1_R)],
                                 dimension_numbers=dn)
    y = bn(y, p["bn1"])
    y = lax.conv_general_dilated(y, p["w_dw"], (1, 1), [(0, 0), (0, 0)],
                                 dimension_numbers=dn, feature_group_count=F1)
    y = jax.nn.elu(bn(y, p["bn2"]))
    y = y.reshape(B, FD, 1, S4, 4).mean(-1)
    y = lax.conv_general_dilated(y, p["w_sep"], (1, 1), [(0, 0), (PAD2_L, PAD2_R)],
                                 dimension_numbers=dn)
    y = jax.nn.elu(bn(y, p["bn3"]))
    y = y.reshape(B, F2, 1, S5, 8).mean(-1)
    feat = y.reshape(B, -1)

    def bilstm(xv, l, h):
        wf, bif, bhf, wb, bib, bhb = l

        def cell(g):
            i = jax.nn.sigmoid(g[:, :h])
            gg = jnp.tanh(g[:, 2 * h:3 * h])
            o = jax.nn.sigmoid(g[:, 3 * h:4 * h])
            return o * jnp.tanh(i * gg)

        return jnp.concatenate([cell(xv @ wf.T + bif + bhf), cell(xv @ wb.T + bib + bhb)], axis=-1)

    def ln(xv, lp):
        g, b = lp
        mu = xv.mean(-1, keepdims=True)
        var = ((xv - mu) ** 2).mean(-1, keepdims=True)
        return (xv - mu) / jnp.sqrt(var + EPS) * g + b

    h = ln(bilstm(feat, p["lstm1"], H1), p["ln1"])
    h = ln(bilstm(h, p["lstm2"], H2), p["ln2"])
    h = ln(bilstm(h, p["lstm3"], H3), p["ln3"])
    wc1, bc1, wc2, bc2 = p["cls"]
    y1 = jnp.maximum(h @ wc1.T + bc1, 0.0)
    out = jax.nn.sigmoid(y1 @ wc2.T + bc2)
    return feat, out


# ============================================ main ==============================================
if __name__ == "__main__":
    key = jax.random.PRNGKey(0)
    kx, kp = jax.random.split(key)
    x = jax.random.normal(kx, (B, 1, CHANS, SAMPLES), jnp.float32)   # PyTorch NCHW input
    params = make_params(kp)

    weights = make_weight_inputs(params)                            # glue, done once
    fwd = jax.jit(forward)
    feat, out = fwd(x, weights)                                     # single fused Pallas kernel
    out = jax.block_until_ready(out)

    # sanity check against a plain-JAX reference with PyTorch semantics
    feat_ref, out_ref = reference_forward(x, params)
    np.testing.assert_allclose(np.asarray(feat), np.asarray(feat_ref), rtol=5e-2, atol=5e-2)
    np.testing.assert_allclose(np.asarray(out), np.asarray(out_ref), rtol=5e-2, atol=5e-2)
    assert out.shape == (B, 1)

    # TODO(synk): W_hh / multi-timestep LSTM support is intentionally omitted (seq_len == 1 here).
    print("KERNEL_OK")
</pallas_src>

<mosaic_0001>
module attributes {stable_mosaic.version = 11 : i64} {
  func.func @eegnet_lstm_kernel(%arg0: memref<16x64x64xf32, #tpu.memory_space<vmem>>, %arg1: memref<16x64x1xf32, #tpu.memory_space<vmem>>, %arg2: memref<32x64xf32, #tpu.memory_space<vmem>>, %arg3: memref<32x1xf32, #tpu.memory_space<vmem>>, %arg4: memref<64x256xf32, #tpu.memory_space<vmem>>, %arg5: memref<32x256xf32, #tpu.memory_space<vmem>>, %arg6: memref<2x32xf32, #tpu.memory_space<vmem>>, %arg7: memref<256x256xf32, #tpu.memory_space<vmem>>, %arg8: memref<1x256xf32, #tpu.memory_space<vmem>>, %arg9: memref<256x32xf32, #tpu.memory_space<vmem>>, %arg10: memref<32x96xf32, #tpu.memory_space<vmem>>, %arg11: memref<1x96xf32, #tpu.memory_space<vmem>>, %arg12: memref<1x32xf32, #tpu.memory_space<vmem>>, %arg13: memref<1x32xf32, #tpu.memory_space<vmem>>, %arg14: memref<32x96xf32, #tpu.memory_space<vmem>>, %arg15: memref<1x96xf32, #tpu.memory_space<vmem>>, %arg16: memref<1x32xf32, #tpu.memory_space<vmem>>, %arg17: memref<1x32xf32, #tpu.memory_space<vmem>>, %arg18: memref<32x96xf32, #tpu.memory_space<vmem>>, %arg19: memref<1x96xf32, #tpu.memory_space<vmem>>, %arg20: memref<1x32xf32, #tpu.memory_space<vmem>>, %arg21: memref<1x32xf32, #tpu.memory_space<vmem>>, %arg22: memref<32x32xf32, #tpu.memory_space<vmem>>, %arg23: memref<1x32xf32, #tpu.memory_space<vmem>>, %arg24: memref<32x1xf32, #tpu.memory_space<vmem>>, %arg25: memref<1x1xf32, #tpu.memory_space<vmem>>, %arg26: memref<2x32xf32, #tpu.memory_space<vmem>>, %arg27: memref<2x1xf32, #tpu.memory_space<vmem>>) attributes {dimension_semantics = [], scalar_prefetch = 0 : i64, scratch_operands = 0 : i64, tpu.core_type = #tpu.core_type<tc>} {
    %c0 = arith.constant 0 : index
    %c0_0 = arith.constant 0 : index
    %c0_1 = arith.constant 0 : index
    %0 = vector.load %arg1[%c0, %c0_0, %c0_1] : memref<16x64x1xf32, #tpu.memory_space<vmem>>, vector<1x64x1xf32>
    %1 = vector.shape_cast %0 : vector<1x64x1xf32> to vector<64x1xf32>
    %c0_2 = arith.constant 0 : index
    %c0_3 = arith.constant 0 : index
    %c0_4 = arith.constant 0 : index
    %2 = vector.load %arg0[%c0_2, %c0_3, %c0_4] : memref<16x64x64xf32, #tpu.memory_space<vmem>>, vector<1x64x64xf32>
    %3 = vector.shape_cast %2 : vector<1x64x64xf32> to vector<64x64xf32>
    %4 = vector.broadcast %1 : vector<64x1xf32> to vector<64x64xf32>
    %5 = arith.mulf %4, %3 : vector<64x64xf32>
    %c1 = arith.constant 1 : index
    %c0_5 = arith.constant 0 : index
    %c0_6 = arith.constant 0 : index
    %6 = vector.load %arg1[%c1, %c0_5, %c0_6] : memref<16x64x1xf32, #tpu.memory_space<vmem>>, vector<1x64x1xf32>
    %7 = vector.shape_cast %6 : vector<1x64x1xf32> to vector<64x1xf32>
    %c1_7 = arith.constant 1 : index
    %c0_8 = arith.constant 0 : index
    %c0_9 = arith.constant 0 : index
    %8 = vector.load %arg0[%c1_7, %c0_8, %c0_9] : memref<16x64x64xf32, #tpu.memory_space<vmem>>, vector<1x64x64xf32>
    %9 = vector.shape_cast %8 : vector<1x64x64xf32> to vector<64x64xf32>
    %10 = vector.broadcast %7 : vector<64x1xf32> to vector<64x64xf32>
    %11 = arith.mulf %10, %9 : vector<64x64xf32>
    %12 = arith.addf %5, %11 : vector<64x64xf32>
    %c2 = arith.constant 2 : index
    %c0_10 = arith.constant 0 : index
    %c0_11 = arith.constant 0 : index
    %13 = vector.load %arg1[%c2, %c0_10, %c0_11] : memref<16x64x1xf32, #tpu.memory_space<vmem>>, vector<1x64x1xf32>
    %14 = vector.shape_cast %13 : vector<1x64x1xf32> to vector<64x1xf32>
    %c2_12 = arith.constant 2 : index
    %c0_13 = arith.constant 0 : index
    %c0_14 = arith.constant 0 : index
    %15 = vector.load %arg0[%c2_12, %c0_13, %c0_14] : memref<16x64x64xf32, #tpu.memory_space<vmem>>, vector<1x64x64xf32>
    %16 = vector.shape_cast %15 : vector<1x64x64xf32> to vector<64x64xf32>
    %17 = vector.broadcast %14 : vector<64x1xf32> to vector<64x64xf32>
    %18 = arith.mulf %17, %16 : vector<64x64xf32>
    %19 = arith.addf %12, %18 : vector<64x64xf32>
    %c3 = arith.constant 3 : index
    %c0_15 = arith.constant 0 : index
    %c0_16 = arith.constant 0 : index
    %20 = vector.load %arg1[%c3, %c0_15, %c0_16] : memref<16x64x1xf32, #tpu.memory_space<vmem>>, vector<1x64x1xf32>
    %21 = vector.shape_cast %20 : vector<1x64x1xf32> to vector<64x1xf32>
    %c3_17 = arith.constant 3 : index
    %c0_18 = arith.constant 0 : index
    %c0_19 = arith.constant 0 : index
    %22 = vector.load %arg0[%c3_17, %c0_18, %c0_19] : memref<16x64x64xf32, #tpu.memory_space<vmem>>, vector<1x64x64xf32>
    %23 = vector.shape_cast %22 : vector<1x64x64xf32> to vector<64x64xf32>
    %24 = vector.broadcast %21 : vector<64x1xf32> to vector<64x64xf32>
    %25 = arith.mulf %24, %23 : vector<64x64xf32>
    %26 = arith.addf %19, %25 : vector<64x64xf32>
    %c4 = arith.constant 4 : index
    %c0_20 = arith.constant 0 : index
    %c0_21 = arith.constant 0 : index
    %27 = vector.load %arg1[%c4, %c0_20, %c0_21] : memref<16x64x1xf32, #tpu.memory_space<vmem>>, vector<1x64x1xf32>
    %28 = vector.shape_cast %27 : vector<1x64x1xf32> to vector<64x1xf32>
    %c4_22 = arith.constant 4 : index
    %c0_23 = arith.constant 0 : index
    %c0_24 = arith.constant 0 : index
    %29 = vector.load %arg0[%c4_22, %c0_23, %c0_24] : memref<16x64x64xf32, #tpu.memory_space<vmem>>, vector<1x64x64xf32>
    %30 = vector.shape_cast %29 : vector<1x64x64xf32> to vector<64x64xf32>
    %31 = vector.broadcast %28 : vector<64x1xf32> to vector<64x64xf32>
    %32 = arith.mulf %31, %30 : vector<64x64xf32>
    %33 = arith.addf %26, %32 : vector<64x64xf32>
    %c5 = arith.constant 5 : index
    %c0_25 = arith.constant 0 : index
    %c0_26 = arith.constant 0 : index
    %34 = vector.load %arg1[%c5, %c0_25, %c0_26] : memref<16x64x1xf32, #tpu.memory_space<vmem>>, vector<1x64x1xf32>
    %35 = vector.shape_cast %34 : vector<1x64x1xf32> to vector<64x1xf32>
    %c5_27 = arith.constant 5 : index
    %c0_28 = arith.constant 0 : index
    %c0_29 = arith.constant 0 : index
    %36 = vector.load %arg0[%c5_27, %c0_28, %c0_29] : memref<16x64x64xf32, #tpu.memory_space<vmem>>, vector<1x64x64xf32>
    %37 = vector.shape_cast %36 : vector<1x64x64xf32> to vector<64x64xf32>
    %38 = vector.broadcast %35 : vector<64x1xf32> to vector<64x64xf32>
    %39 = arith.mulf %38, %37 : vector<64x64xf32>
    %40 = arith.addf %33, %39 : vector<64x64xf32>
    %c6 = arith.constant 6 : index
    %c0_30 = arith.constant 0 : index
    %c0_31 = arith.constant 0 : index
    %41 = vector.load %arg1[%c6, %c0_30, %c0_31] : memref<16x64x1xf32, #tpu.memory_space<vmem>>, vector<1x64x1xf32>
    %42 = vector.shape_cast %41 : vector<1x64x1xf32> to vector<64x1xf32>
    %c6_32 = arith.constant 6 : index
    %c0_33 = arith.constant 0 : index
    %c0_34 = arith.constant 0 : index
    %43 = vector.load %arg0[%c6_32, %c0_33, %c0_34] : memref<16x64x64xf32, #tpu.memory_space<vmem>>, vector<1x64x64xf32>
    %44 = vector.shape_cast %43 : vector<1x64x64xf32> to vector<64x64xf32>
    %45 = vector.broadcast %42 : vector<64x1xf32> to vector<64x64xf32>
    %46 = arith.mulf %45, %44 : vector<64x64xf32>
    %47 = arith.addf %40, %46 : vector<64x64xf32>
    %c7 = arith.constant 7 : index
    %c0_35 = arith.constant 0 : index
    %c0_36 = arith.constant 0 : index
    %48 = vector.load %arg1[%c7, %c0_35, %c0_36] : memref<16x64x1xf32, #tpu.memory_space<vmem>>, vector<1x64x1xf32>
    %49 = vector.shape_cast %48 : vector<1x64x1xf32> to vector<64x1xf32>
    %c7_37 = arith.constant 7 : index
    %c0_38 = arith.constant 0 : index
    %c0_39 = arith.constant 0 : index
    %50 = vector.load %arg0[%c7_37, %c0_38, %c0_39] : memref<16x64x64xf32, #tpu.memory_space<vmem>>, vector<1x64x64xf32>
    %51 = vector.shape_cast %50 : vector<1x64x64xf32> to vector<64x64xf32>
    %52 = vector.broadcast %49 : vector<64x1xf32> to vector<64x64xf32>
    %53 = arith.mulf %52, %51 : vector<64x64xf32>
    %54 = arith.addf %47, %53 : vector<64x64xf32>
    %c8 = arith.constant 8 : index
    %c0_40 = arith.constant 0 : index
    %c0_41 = arith.constant 0 : index
    %55 = vector.load %arg1[%c8, %c0_40, %c0_41] : memref<16x64x1xf32, #tpu.memory_space<vmem>>, vector<1x64x1xf32>
    %56 = vector.shape_cast %55 : vector<1x64x1xf32> to vector<64x1xf32>
    %c8_42 = arith.constant 8 : index
    %c0_43 = arith.constant 0 : index
    %c0_44 = arith.constant 0 : index
    %57 = vector.load %arg0[%c8_42, %c0_43, %c0_44] : memref<16x64x64xf32, #tpu.memory_space<vmem>>, vector<1x64x64xf32>
    %58 = vector.shape_cast %57 : vector<1x64x64xf32> to vector<64x64xf32>
    %59 = vector.broadcast %56 : vector<64x1xf32> to vector<64x64xf32>
    %60 = arith.mulf %59, %58 : vector<64x64xf32>
    %61 = arith.addf %54, %60 : vector<64x64xf32>
    %c9 = arith.constant 9 : index
    %c0_45 = arith.constant 0 : index
    %c0_46 = arith.constant 0 : index
    %62 = vector.load %arg1[%c9, %c0_45, %c0_46] : memref<16x64x1xf32, #tpu.memory_space<vmem>>, vector<1x64x1xf32>
    %63 = vector.shape_cast %62 : vector<1x64x1xf32> to vector<64x1xf32>
    %c9_47 = arith.constant 9 : index
    %c0_48 = arith.constant 0 : index
    %c0_49 = arith.constant 0 : index
    %64 = vector.load %arg0[%c9_47, %c0_48, %c0_49] : memref<16x64x64xf32, #tpu.memory_space<vmem>>, vector<1x64x64xf32>
    %65 = vector.shape_cast %64 : vector<1x64x64xf32> to vector<64x64xf32>
    %66 = vector.broadcast %63 : vector<64x1xf32> to vector<64x64xf32>
    %67 = arith.mulf %66, %65 : vector<64x64xf32>
    %68 = arith.addf %61, %67 : vector<64x64xf32>
    %c10 = arith.constant 10 : index
    %c0_50 = arith.constant 0 : index
    %c0_51 = arith.constant 0 : index
    %69 = vector.load %arg1[%c10, %c0_50, %c0_51] : memref<16x64x1xf32, #tpu.memory_space<vmem>>, vector<1x64x1xf32>
    %70 = vector.shape_cast %69 : vector<1x64x1xf32> to vector<64x1xf32>
    %c10_52 = arith.constant 10 : index
    %c0_53 = arith.constant 0 : index
    %c0_54 = arith.constant 0 : index
    %71 = vector.load %arg0[%c10_52, %c0_53, %c0_54] : memref<16x64x64xf32, #tpu.memory_space<vmem>>, vector<1x64x64xf32>
    %72 = vector.shape_cast %71 : vector<1x64x64xf32> to vector<64x64xf32>
    %73 = vector.broadcast %70 : vector<64x1xf32> to vector<64x64xf32>
    %74 = arith.mulf %73, %72 : vector<64x64xf32>
    %75 = arith.addf %68, %74 : vector<64x64xf32>
    %c11 = arith.constant 11 : index
    %c0_55 = arith.constant 0 : index
    %c0_56 = arith.constant 0 : index
    %76 = vector.load %arg1[%c11, %c0_55, %c0_56] : memref<16x64x1xf32, #tpu.memory_space<vmem>>, vector<1x64x1xf32>
    %77 = vector.shape_cast %76 : vector<1x64x1xf32> to vector<64x1xf32>
    %c11_57 = arith.constant 11 : index
    %c0_58 = arith.constant 0 : index
    %c0_59 = arith.constant 0 : index
    %78 = vector.load %arg0[%c11_57, %c0_58, %c0_59] : memref<16x64x64xf32, #tpu.memory_space<vmem>>, vector<1x64x64xf32>
    %79 = vector.shape_cast %78 : vector<1x64x64xf32> to vector<64x64xf32>
    %80 = vector.broadcast %77 : vector<64x1xf32> to vector<64x64xf32>
    %81 = arith.mulf %80, %79 : vector<64x64xf32>
    %82 = arith.addf %75, %81 : vector<64x64xf32>
    %c12 = arith.constant 12 : index
    %c0_60 = arith.constant 0 : index
    %c0_61 = arith.constant 0 : index
    %83 = vector.load %arg1[%c12, %c0_60, %c0_61] : memref<16x64x1xf32, #tpu.memory_space<vmem>>, vector<1x64x1xf32>
    %84 = vector.shape_cast %83 : vector<1x64x1xf32> to vector<64x1xf32>
    %c12_62 = arith.constant 12 : index
    %c0_63 = arith.constant 0 : index
    %c0_64 = arith.constant 0 : index
    %85 = vector.load %arg0[%c12_62, %c0_63, %c0_64] : memref<16x64x64xf32, #tpu.memory_space<vmem>>, vector<1x64x64xf32>
    %86 = vector.shape_cast %85 : vector<1x64x64xf32> to vector<64x64xf32>
    %87 = vector.broadcast %84 : vector<64x1xf32> to vector<64x64xf32>
    %88 = arith.mulf %87, %86 : vector<64x64xf32>
    %89 = arith.addf %82, %88 : vector<64x64xf32>
    %c13 = arith.constant 13 : index
    %c0_65 = arith.constant 0 : index
    %c0_66 = arith.constant 0 : index
    %90 = vector.load %arg1[%c13, %c0_65, %c0_66] : memref<16x64x1xf32, #tpu.memory_space<vmem>>, vector<1x64x1xf32>
    %91 = vector.shape_cast %90 : vector<1x64x1xf32> to vector<64x1xf32>
    %c13_67 = arith.constant 13 : index
    %c0_68 = arith.constant 0 : index
    %c0_69 = arith.constant 0 : index
    %92 = vector.load %arg0[%c13_67, %c0_68, %c0_69] : memref<16x64x64xf32, #tpu.memory_space<vmem>>, vector<1x64x64xf32>
    %93 = vector.shape_cast %92 : vector<1x64x64xf32> to vector<64x64xf32>
    %94 = vector.broadcast %91 : vector<64x1xf32> to vector<64x64xf32>
    %95 = arith.mulf %94, %93 : vector<64x64xf32>
    %96 = arith.addf %89, %95 : vector<64x64xf32>
    %c14 = arith.constant 14 : index
    %c0_70 = arith.constant 0 : index
    %c0_71 = arith.constant 0 : index
    %97 = vector.load %arg1[%c14, %c0_70, %c0_71] : memref<16x64x1xf32, #tpu.memory_space<vmem>>, vector<1x64x1xf32>
    %98 = vector.shape_cast %97 : vector<1x64x1xf32> to vector<64x1xf32>
    %c14_72 = arith.constant 14 : index
    %c0_73 = arith.constant 0 : index
    %c0_74 = arith.constant 0 : index
    %99 = vector.load %arg0[%c14_72, %c0_73, %c0_74] : memref<16x64x64xf32, #tpu.memory_space<vmem>>, vector<1x64x64xf32>
    %100 = vector.shape_cast %99 : vector<1x64x64xf32> to vector<64x64xf32>
    %101 = vector.broadcast %98 : vector<64x1xf32> to vector<64x64xf32>
    %102 = arith.mulf %101, %100 : vector<64x64xf32>
    %103 = arith.addf %96, %102 : vector<64x64xf32>
    %c15 = arith.constant 15 : index
    %c0_75 = arith.constant 0 : index
    %c0_76 = arith.constant 0 : index
    %104 = vector.load %arg1[%c15, %c0_75, %c0_76] : memref<16x64x1xf32, #tpu.memory_space<vmem>>, vector<1x64x1xf32>
    %105 = vector.shape_cast %104 : vector<1x64x1xf32> to vector<64x1xf32>
    %c15_77 = arith.constant 15 : index
    %c0_78 = arith.constant 0 : index
    %c0_79 = arith.constant 0 : index
    %106 = vector.load %arg0[%c15_77, %c0_78, %c0_79] : memref<16x64x64xf32, #tpu.memory_space<vmem>>, vector<1x64x64xf32>
    %107 = vector.shape_cast %106 : vector<1x64x64xf32> to vector<64x64xf32>
    %108 = vector.broadcast %105 : vector<64x1xf32> to vector<64x64xf32>
    %109 = arith.mulf %108, %107 : vector<64x64xf32>
    %110 = arith.addf %103, %109 : vector<64x64xf32>
    %c0_80 = arith.constant 0 : index
    %c0_81 = arith.constant 0 : index
    %111 = vector.load %arg2[%c0_80, %c0_81] : memref<32x64xf32, #tpu.memory_space<vmem>>, vector<32x64xf32>
    %cst = arith.constant dense<0.000000e+00> : vector<32x64xf32>
    %112 = tpu.matmul %111, %110, %cst {dimension_numbers = #tpu.dot_dimension_numbers<[1], [0], [0], [1], [0, 0, 1, 1], [], []>} : vector<32x64xf32>, vector<64x64xf32>, vector<32x64xf32> -> vector<32x64xf32>
    %c0_82 = arith.constant 0 : index
    %c0_83 = arith.constant 0 : index
    %113 = vector.load %arg3[%c0_82, %c0_83] : memref<32x1xf32, #tpu.memory_space<vmem>>, vector<32x1xf32>
    %114 = vector.broadcast %113 : vector<32x1xf32> to vector<32x64xf32>
    %115 = arith.addf %112, %114 : vector<32x64xf32>
    %cst_84 = arith.constant 0.000000e+00 : f32
    %116 = vector.broadcast %cst_84 : f32 to vector<32x64xf32>
    %117 = arith.cmpf ogt, %115, %116 : vector<32x64xf32>
    %cst_85 = arith.constant 0.000000e+00 : f32
    %118 = vector.broadcast %cst_85 : f32 to vector<32x64xf32>
    %119 = arith.minimumf %115, %118 : vector<32x64xf32>
    %120 = math.exp %119 : vector<32x64xf32>
    %cst_86 = arith.constant 1.000000e+00 : f32
    %121 = vector.broadcast %cst_86 : f32 to vector<32x64xf32>
    %122 = arith.subf %120, %121 : vector<32x64xf32>
    %123 = arith.select %117, %115, %122 : vector<32x64xi1>, vector<32x64xf32>
    %c0_87 = arith.constant 0 : index
    %c0_88 = arith.constant 0 : index
    %124 = vector.load %arg4[%c0_87, %c0_88] : memref<64x256xf32, #tpu.memory_space<vmem>>, vector<64x256xf32>
    %cst_89 = arith.constant dense<0.000000e+00> : vector<32x256xf32>
    %125 = tpu.matmul %123, %124, %cst_89 {dimension_numbers = #tpu.dot_dimension_numbers<[1], [0], [0], [1], [0, 0, 1, 1], [], []>} : vector<32x64xf32>, vector<64x256xf32>, vector<32x256xf32> -> vector<32x256xf32>
    %c0_90 = arith.constant 0 : index
    %c0_91 = arith.constant 0 : index
    %126 = vector.load %arg6[%c0_90, %c0_91] : memref<2x32xf32, #tpu.memory_space<vmem>>, vector<2x32xf32>
    %c0_92 = arith.constant 0 : index
    %c0_93 = arith.constant 0 : index
    %127 = vector.load %arg5[%c0_92, %c0_93] : memref<32x256xf32, #tpu.memory_space<vmem>>, vector<32x256xf32>
    %128 = arith.mulf %125, %127 : vector<32x256xf32>
    %cst_94 = arith.constant dense<0.000000e+00> : vector<2x256xf32>
    %129 = tpu.matmul %126, %128, %cst_94 {dimension_numbers = #tpu.dot_dimension_numbers<[1], [0], [0], [1], [0, 0, 1, 1], [], []>} : vector<2x32xf32>, vector<32x256xf32>, vector<2x256xf32> -> vector<2x256xf32>
    %c0_95 = arith.constant 0 : index
    %c0_96 = arith.constant 0 : index
    %130 = vector.load %arg7[%c0_95, %c0_96] : memref<256x256xf32, #tpu.memory_space<vmem>>, vector<256x256xf32>
    %cst_97 = arith.constant dense<0.000000e+00> : vector<2x256xf32>
    %131 = tpu.matmul %129, %130, %cst_97 {dimension_numbers = #tpu.dot_dimension_numbers<[1], [0], [0], [1], [0, 0, 1, 1], [], []>} : vector<2x256xf32>, vector<256x256xf32>, vector<2x256xf32> -> vector<2x256xf32>
    %c0_98 = arith.constant 0 : index
    %c0_99 = arith.constant 0 : index
    %132 = vector.load %arg8[%c0_98, %c0_99] : memref<1x256xf32, #tpu.memory_space<vmem>>, vector<1x256xf32>
    %133 = vector.broadcast %132 : vector<1x256xf32> to vector<2x256xf32>
    %134 = arith.addf %131, %133 : vector<2x256xf32>
    %cst_100 = arith.constant 0.000000e+00 : f32
    %135 = vector.broadcast %cst_100 : f32 to vector<2x256xf32>
    %136 = arith.cmpf ogt, %134, %135 : vector<2x256xf32>
    %cst_101 = arith.constant 0.000000e+00 : f32
    %137 = vector.broadcast %cst_101 : f32 to vector<2x256xf32>
    %138 = arith.minimumf %134, %137 : vector<2x256xf32>
    %139 = math.exp %138 : vector<2x256xf32>
    %cst_102 = arith.constant 1.000000e+00 : f32
    %140 = vector.broadcast %cst_102 : f32 to vector<2x256xf32>
    %141 = arith.subf %139, %140 : vector<2x256xf32>
    %142 = arith.select %136, %134, %141 : vector<2x256xi1>, vector<2x256xf32>
    %c0_103 = arith.constant 0 : index
    %c0_104 = arith.constant 0 : index
    %143 = vector.load %arg9[%c0_103, %c0_104] : memref<256x32xf32, #tpu.memory_space<vmem>>, vector<256x32xf32>
    %cst_105 = arith.constant dense<0.000000e+00> : vector<2x32xf32>
    %144 = tpu.matmul %142, %143, %cst_105 {dimension_numbers = #tpu.dot_dimension_numbers<[1], [0], [0], [1], [0, 0, 1, 1], [], []>} : vector<2x256xf32>, vector<256x32xf32>, vector<2x32xf32> -> vector<2x32xf32>
    %c0_106 = arith.constant 0 : index
    %c0_107 = arith.constant 0 : index
    %145 = vector.load %arg26[%c0_106, %c0_107] : memref<2x32xf32, #tpu.memory_space<vmem>>, vector<2x32xf32>
    tpu.vector_store %arg26[%c0_106, %c0_107], %144 {strides = array<i32>} : memref<2x32xf32, #tpu.memory_space<vmem>>, vector<2x32xf32>,
    %c0_108 = arith.constant 0 : index
    %c0_109 = arith.constant 0 : index
    %146 = vector.load %arg10[%c0_108, %c0_109] : memref<32x96xf32, #tpu.memory_space<vmem>>, vector<32x96xf32>
    %c0_110 = arith.constant 0 : index
    %c0_111 = arith.constant 0 : index
    %147 = vector.load %arg11[%c0_110, %c0_111] : memref<1x96xf32, #tpu.memory_space<vmem>>, vector<1x96xf32>
    %cst_112 = arith.constant dense<0.000000e+00> : vector<2x96xf32>
    %148 = tpu.matmul %144, %146, %cst_112 {dimension_numbers = #tpu.dot_dimension_numbers<[1], [0], [0], [1], [0, 0, 1, 1], [], []>} : vector<2x32xf32>, vector<32x96xf32>, vector<2x96xf32> -> vector<2x96xf32>
    %149 = vector.broadcast %147 : vector<1x96xf32> to vector<2x96xf32>
    %150 = arith.addf %148, %149 : vector<2x96xf32>
    %151 = vector.extract_strided_slice %150 {offsets = [0, 0], sizes = [2, 64], strides = [1, 1]} : vector<2x96xf32> to vector<2x64xf32>
    %cst_113 = arith.constant 0.000000e+00 : f32
    %152 = vector.broadcast %cst_113 : f32 to vector<2x64xf32>
    %153 = arith.subf %152, %151 : vector<2x64xf32>
    %154 = math.exp %153 : vector<2x64xf32>
    %cst_114 = arith.constant 1.000000e+00 : f32
    %155 = vector.broadcast %cst_114 : f32 to vector<2x64xf32>
    %156 = arith.addf %155, %154 : vector<2x64xf32>
    %cst_115 = arith.constant 1.000000e+00 : f32
    %157 = vector.broadcast %cst_115 : f32 to vector<2x64xf32>
    %158 = arith.divf %157, %156 : vector<2x64xf32>
    %159 = vector.extract_strided_slice %150 {offsets = [0, 64], sizes = [2, 32], strides = [1, 1]} : vector<2x96xf32> to vector<2x32xf32>
    %160 = math.tanh %159 : vector<2x32xf32>
    %161 = vector.extract_strided_slice %158 {offsets = [0, 0], sizes = [2, 32], strides = [1, 1]} : vector<2x64xf32> to vector<2x32xf32>
    %162 = arith.mulf %161, %160 : vector<2x32xf32>
    %163 = vector.extract_strided_slice %158 {offsets = [0, 32], sizes = [2, 32], strides = [1, 1]} : vector<2x64xf32> to vector<2x32xf32>
    %164 = math.tanh %162 : vector<2x32xf32>
    %165 = arith.mulf %163, %164 : vector<2x32xf32>
    %c0_116 = arith.constant 0 : index
    %c0_117 = arith.constant 0 : index
    %166 = vector.load %arg12[%c0_116, %c0_117] : memref<1x32xf32, #tpu.memory_space<vmem>>, vector<1x32xf32>
    %c0_118 = arith.constant 0 : index
    %c0_119 = arith.constant 0 : index
    %167 = vector.load %arg13[%c0_118, %c0_119] : memref<1x32xf32, #tpu.memory_space<vmem>>, vector<1x32xf32>
    %cst_120 = arith.constant dense<0.000000e+00> : vector<2xf32>
    %168 = vector.multi_reduction <add>, %165, %cst_120 [1] : vector<2x32xf32> to vector<2xf32>
    %169 = vector.shape_cast %168 : vector<2xf32> to vector<2x1xf32>
    %cst_121 = arith.constant 3.200000e+01 : f32
    %170 = vector.broadcast %cst_121 : f32 to vector<2x1xf32>
    %171 = arith.divf %169, %170 : vector<2x1xf32>
    %172 = vector.broadcast %171 : vector<2x1xf32> to vector<2x32xf32>
    %173 = arith.subf %165, %172 : vector<2x32xf32>
    %174 = arith.mulf %173, %173 : vector<2x32xf32>
    %cst_122 = arith.constant dense<0.000000e+00> : vector<2xf32>
    %175 = vector.multi_reduction <add>, %174, %cst_122 [1] : vector<2x32xf32> to vector<2xf32>
    %176 = vector.shape_cast %175 : vector<2xf32> to vector<2x1xf32>
    %cst_123 = arith.constant 3.200000e+01 : f32
    %177 = vector.broadcast %cst_123 : f32 to vector<2x1xf32>
    %178 = arith.divf %176, %177 : vector<2x1xf32>
    %179 = vector.broadcast %171 : vector<2x1xf32> to vector<2x32xf32>
    %180 = arith.subf %165, %179 : vector<2x32xf32>
    %cst_124 = arith.constant 9.99999974E-6 : f32
    %181 = vector.broadcast %cst_124 : f32 to vector<2x1xf32>
    %182 = arith.addf %178, %181 : vector<2x1xf32>
    %183 = math.rsqrt %182 : vector<2x1xf32>
    %184 = vector.broadcast %183 : vector<2x1xf32> to vector<2x32xf32>
    %185 = arith.mulf %180, %184 : vector<2x32xf32>
    %186 = vector.broadcast %166 : vector<1x32xf32> to vector<2x32xf32>
    %187 = arith.mulf %185, %186 : vector<2x32xf32>
    %188 = vector.broadcast %167 : vector<1x32xf32> to vector<2x32xf32>
    %189 = arith.addf %187, %188 : vector<2x32xf32>
    %c0_125 = arith.constant 0 : index
    %c0_126 = arith.constant 0 : index
    %190 = vector.load %arg14[%c0_125, %c0_126] : memref<32x96xf32, #tpu.memory_space<vmem>>, vector<32x96xf32>
    %c0_127 = arith.constant 0 : index
    %c0_128 = arith.constant 0 : index
    %191 = vector.load %arg15[%c0_127, %c0_128] : memref<1x96xf32, #tpu.memory_space<vmem>>, vector<1x96xf32>
    %cst_129 = arith.constant dense<0.000000e+00> : vector<2x96xf32>
    %192 = tpu.matmul %189, %190, %cst_129 {dimension_numbers = #tpu.dot_dimension_numbers<[1], [0], [0], [1], [0, 0, 1, 1], [], []>} : vector<2x32xf32>, vector<32x96xf32>, vector<2x96xf32> -> vector<2x96xf32>
    %193 = vector.broadcast %191 : vector<1x96xf32> to vector<2x96xf32>
    %194 = arith.addf %192, %193 : vector<2x96xf32>
    %195 = vector.extract_strided_slice %194 {offsets = [0, 0], sizes = [2, 64], strides = [1, 1]} : vector<2x96xf32> to vector<2x64xf32>
    %cst_130 = arith.constant 0.000000e+00 : f32
    %196 = vector.broadcast %cst_130 : f32 to vector<2x64xf32>
    %197 = arith.subf %196, %195 : vector<2x64xf32>
    %198 = math.exp %197 : vector<2x64xf32>
    %cst_131 = arith.constant 1.000000e+00 : f32
    %199 = vector.broadcast %cst_131 : f32 to vector<2x64xf32>
    %200 = arith.addf %199, %198 : vector<2x64xf32>
    %cst_132 = arith.constant 1.000000e+00 : f32
    %201 = vector.broadcast %cst_132 : f32 to vector<2x64xf32>
    %202 = arith.divf %201, %200 : vector<2x64xf32>
    %203 = vector.extract_strided_slice %194 {offsets = [0, 64], sizes = [2, 32], strides = [1, 1]} : vector<2x96xf32> to vector<2x32xf32>
    %204 = math.tanh %203 : vector<2x32xf32>
    %205 = vector.extract_strided_slice %202 {offsets = [0, 0], sizes = [2, 32], strides = [1, 1]} : vector<2x64xf32> to vector<2x32xf32>
    %206 = arith.mulf %205, %204 : vector<2x32xf32>
    %207 = vector.extract_strided_slice %202 {offsets = [0, 32], sizes = [2, 32], strides = [1, 1]} : vector<2x64xf32> to vector<2x32xf32>
    %208 = math.tanh %206 : vector<2x32xf32>
    %209 = arith.mulf %207, %208 : vector<2x32xf32>
    %c0_133 = arith.constant 0 : index
    %c0_134 = arith.constant 0 : index
    %210 = vector.load %arg16[%c0_133, %c0_134] : memref<1x32xf32, #tpu.memory_space<vmem>>, vector<1x32xf32>
    %c0_135 = arith.constant 0 : index
    %c0_136 = arith.constant 0 : index
    %211 = vector.load %arg17[%c0_135, %c0_136] : memref<1x32xf32, #tpu.memory_space<vmem>>, vector<1x32xf32>
    %cst_137 = arith.constant dense<0.000000e+00> : vector<2xf32>
    %212 = vector.multi_reduction <add>, %209, %cst_137 [1] : vector<2x32xf32> to vector<2xf32>
    %213 = vector.shape_cast %212 : vector<2xf32> to vector<2x1xf32>
    %cst_138 = arith.constant 3.200000e+01 : f32
    %214 = vector.broadcast %cst_138 : f32 to vector<2x1xf32>
    %215 = arith.divf %213, %214 : vector<2x1xf32>
    %216 = vector.broadcast %215 : vector<2x1xf32> to vector<2x32xf32>
    %217 = arith.subf %209, %216 : vector<2x32xf32>
    %218 = arith.mulf %217, %217 : vector<2x32xf32>
    %cst_139 = arith.constant dense<0.000000e+00> : vector<2xf32>
    %219 = vector.multi_reduction <add>, %218, %cst_139 [1] : vector<2x32xf32> to vector<2xf32>
    %220 = vector.shape_cast %219 : vector<2xf32> to vector<2x1xf32>
    %cst_140 = arith.constant 3.200000e+01 : f32
    %221 = vector.broadcast %cst_140 : f32 to vector<2x1xf32>
    %222 = arith.divf %220, %221 : vector<2x1xf32>
    %223 = vector.broadcast %215 : vector<2x1xf32> to vector<2x32xf32>
    %224 = arith.subf %209, %223 : vector<2x32xf32>
    %cst_141 = arith.constant 9.99999974E-6 : f32
    %225 = vector.broadcast %cst_141 : f32 to vector<2x1xf32>
    %226 = arith.addf %222, %225 : vector<2x1xf32>
    %227 = math.rsqrt %226 : vector<2x1xf32>
    %228 = vector.broadcast %227 : vector<2x1xf32> to vector<2x32xf32>
    %229 = arith.mulf %224, %228 : vector<2x32xf32>
    %230 = vector.broadcast %210 : vector<1x32xf32> to vector<2x32xf32>
    %231 = arith.mulf %229, %230 : vector<2x32xf32>
    %232 = vector.broadcast %211 : vector<1x32xf32> to vector<2x32xf32>
    %233 = arith.addf %231, %232 : vector<2x32xf32>
    %c0_142 = arith.constant 0 : index
    %c0_143 = arith.constant 0 : index
    %234 = vector.load %arg18[%c0_142, %c0_143] : memref<32x96xf32, #tpu.memory_space<vmem>>, vector<32x96xf32>
    %c0_144 = arith.constant 0 : index
    %c0_145 = arith.constant 0 : index
    %235 = vector.load %arg19[%c0_144, %c0_145] : memref<1x96xf32, #tpu.memory_space<vmem>>, vector<1x96xf32>
    %cst_146 = arith.constant dense<0.000000e+00> : vector<2x96xf32>
    %236 = tpu.matmul %233, %234, %cst_146 {dimension_numbers = #tpu.dot_dimension_numbers<[1], [0], [0], [1], [0, 0, 1, 1], [], []>} : vector<2x32xf32>, vector<32x96xf32>, vector<2x96xf32> -> vector<2x96xf32>
    %237 = vector.broadcast %235 : vector<1x96xf32> to vector<2x96xf32>
    %238 = arith.addf %236, %237 : vector<2x96xf32>
    %239 = vector.extract_strided_slice %238 {offsets = [0, 0], sizes = [2, 64], strides = [1, 1]} : vector<2x96xf32> to vector<2x64xf32>
    %cst_147 = arith.constant 0.000000e+00 : f32
    %240 = vector.broadcast %cst_147 : f32 to vector<2x64xf32>
    %241 = arith.subf %240, %239 : vector<2x64xf32>
    %242 = math.exp %241 : vector<2x64xf32>
    %cst_148 = arith.constant 1.000000e+00 : f32
    %243 = vector.broadcast %cst_148 : f32 to vector<2x64xf32>
    %244 = arith.addf %243, %242 : vector<2x64xf32>
    %cst_149 = arith.constant 1.000000e+00 : f32
    %245 = vector.broadcast %cst_149 : f32 to vector<2x64xf32>
    %246 = arith.divf %245, %244 : vector<2x64xf32>
    %247 = vector.extract_strided_slice %238 {offsets = [0, 64], sizes = [2, 32], strides = [1, 1]} : vector<2x96xf32> to vector<2x32xf32>
    %248 = math.tanh %247 : vector<2x32xf32>
    %249 = vector.extract_strided_slice %246 {offsets = [0, 0], sizes = [2, 32], strides = [1, 1]} : vector<2x64xf32> to vector<2x32xf32>
    %250 = arith.mulf %249, %248 : vector<2x32xf32>
    %251 = vector.extract_strided_slice %246 {offsets = [0, 32], sizes = [2, 32], strides = [1, 1]} : vector<2x64xf32> to vector<2x32xf32>
    %252 = math.tanh %250 : vector<2x32xf32>
    %253 = arith.mulf %251, %252 : vector<2x32xf32>
    %c0_150 = arith.constant 0 : index
    %c0_151 = arith.constant 0 : index
    %254 = vector.load %arg20[%c0_150, %c0_151] : memref<1x32xf32, #tpu.memory_space<vmem>>, vector<1x32xf32>
    %c0_152 = arith.constant 0 : index
    %c0_153 = arith.constant 0 : index
    %255 = vector.load %arg21[%c0_152, %c0_153] : memref<1x32xf32, #tpu.memory_space<vmem>>, vector<1x32xf32>
    %cst_154 = arith.constant dense<0.000000e+00> : vector<2xf32>
    %256 = vector.multi_reduction <add>, %253, %cst_154 [1] : vector<2x32xf32> to vector<2xf32>
    %257 = vector.shape_cast %256 : vector<2xf32> to vector<2x1xf32>
    %cst_155 = arith.constant 3.200000e+01 : f32
    %258 = vector.broadcast %cst_155 : f32 to vector<2x1xf32>
    %259 = arith.divf %257, %258 : vector<2x1xf32>
    %260 = vector.broadcast %259 : vector<2x1xf32> to vector<2x32xf32>
    %261 = arith.subf %253, %260 : vector<2x32xf32>
    %262 = arith.mulf %261, %261 : vector<2x32xf32>
    %cst_156 = arith.constant dense<0.000000e+00> : vector<2xf32>
    %263 = vector.multi_reduction <add>, %262, %cst_156 [1] : vector<2x32xf32> to vector<2xf32>
    %264 = vector.shape_cast %263 : vector<2xf32> to vector<2x1xf32>
    %cst_157 = arith.constant 3.200000e+01 : f32
    %265 = vector.broadcast %cst_157 : f32 to vector<2x1xf32>
    %266 = arith.divf %264, %265 : vector<2x1xf32>
    %267 = vector.broadcast %259 : vector<2x1xf32> to vector<2x32xf32>
    %268 = arith.subf %253, %267 : vector<2x32xf32>
    %cst_158 = arith.constant 9.99999974E-6 : f32
    %269 = vector.broadcast %cst_158 : f32 to vector<2x1xf32>
    %270 = arith.addf %266, %269 : vector<2x1xf32>
    %271 = math.rsqrt %270 : vector<2x1xf32>
    %272 = vector.broadcast %271 : vector<2x1xf32> to vector<2x32xf32>
    %273 = arith.mulf %268, %272 : vector<2x32xf32>
    %274 = vector.broadcast %254 : vector<1x32xf32> to vector<2x32xf32>
    %275 = arith.mulf %273, %274 : vector<2x32xf32>
    %276 = vector.broadcast %255 : vector<1x32xf32> to vector<2x32xf32>
    %277 = arith.addf %275, %276 : vector<2x32xf32>
    %c0_159 = arith.constant 0 : index
    %c0_160 = arith.constant 0 : index
    %278 = vector.load %arg22[%c0_159, %c0_160] : memref<32x32xf32, #tpu.memory_space<vmem>>, vector<32x32xf32>
    %cst_161 = arith.constant dense<0.000000e+00> : vector<2x32xf32>
    %279 = tpu.matmul %277, %278, %cst_161 {dimension_numbers = #tpu.dot_dimension_numbers<[1], [0], [0], [1], [0, 0, 1, 1], [], []>} : vector<2x32xf32>, vector<32x32xf32>, vector<2x32xf32> -> vector<2x32xf32>
    %c0_162 = arith.constant 0 : index
    %c0_163 = arith.constant 0 : index
    %280 = vector.load %arg23[%c0_162, %c0_163] : memref<1x32xf32, #tpu.memory_space<vmem>>, vector<1x32xf32>
    %281 = vector.broadcast %280 : vector<1x32xf32> to vector<2x32xf32>
    %282 = arith.addf %279, %281 : vector<2x32xf32>
    %cst_164 = arith.constant 0.000000e+00 : f32
    %283 = vector.broadcast %cst_164 : f32 to vector<2x32xf32>
    %284 = arith.maximumf %282, %283 : vector<2x32xf32>
    %c0_165 = arith.constant 0 : index
    %c0_166 = arith.constant 0 : index
    %285 = vector.load %arg24[%c0_165, %c0_166] : memref<32x1xf32, #tpu.memory_space<vmem>>, vector<32x1xf32>
    %cst_167 = arith.constant dense<0.000000e+00> : vector<2x1xf32>
    %286 = tpu.matmul %284, %285, %cst_167 {dimension_numbers = #tpu.dot_dimension_numbers<[1], [0], [0], [1], [0, 0, 1, 1], [], []>} : vector<2x32xf32>, vector<32x1xf32>, vector<2x1xf32> -> vector<2x1xf32>
    %c0_168 = arith.constant 0 : index
    %c0_169 = arith.constant 0 : index
    %287 = vector.load %arg25[%c0_168, %c0_169] : memref<1x1xf32, #tpu.memory_space<vmem>>, vector<1x1xf32>
    %288 = vector.broadcast %287 : vector<1x1xf32> to vector<2x1xf32>
    %289 = arith.addf %286, %288 : vector<2x1xf32>
    %cst_170 = arith.constant 0.000000e+00 : f32
    %290 = vector.broadcast %cst_170 : f32 to vector<2x1xf32>
    %291 = arith.subf %290, %289 : vector<2x1xf32>
    %292 = math.exp %291 : vector<2x1xf32>
    %cst_171 = arith.constant 1.000000e+00 : f32
    %293 = vector.broadcast %cst_171 : f32 to vector<2x1xf32>
    %294 = arith.addf %293, %292 : vector<2x1xf32>
    %cst_172 = arith.constant 1.000000e+00 : f32
    %295 = vector.broadcast %cst_172 : f32 to vector<2x1xf32>
    %296 = arith.divf %295, %294 : vector<2x1xf32>
    %c0_173 = arith.constant 0 : index
    %c0_174 = arith.constant 0 : index
    %297 = vector.load %arg27[%c0_173, %c0_174] : memref<2x1xf32, #tpu.memory_space<vmem>>, vector<2x1xf32>
    tpu.vector_store %arg27[%c0_173, %c0_174], %296 {strides = array<i32>} : memref<2x1xf32, #tpu.memory_space<vmem>>, vector<2x1xf32>,
    return
  }
}

</mosaic_0001>

<bundles_post_ra>
// kernel: forward.1
= control target key start
LH: loop header
LB: loop body
LE: loop exit
PB: predicated region body
PF: predicated region fallthrough
CT: control target
= control target key end

     0   :  { %s4965_s0 = inlined_call_operand.vmem [shape: f32[16,64,64], index: 0, kind: input, shape index: {}]   ;;  %s4966_s1 = inlined_call_operand.vmem [shape: f32[16,64,1], index: 1, kind: input, shape index: {}]   ;;  %s4967_s2 = inlined_call_operand.vmem [shape: f32[32,64], index: 2, kind: input, shape index: {}]   ;;  %s4968_s3 = inlined_call_operand.vmem [shape: f32[32,1], index: 3, kind: input, shape index: {}]   ;;  %s4969_s4 = inlined_call_operand.vmem [shape: f32[64,256], index: 4, kind: input, shape index: {}]   ;;  %s4970_s5 = inlined_call_operand.vmem [shape: f32[32,256], index: 5, kind: input, shape index: {}]   ;;  %s4971_s6 = inlined_call_operand.vmem [shape: f32[2,32], index: 6, kind: input, shape index: {}]   ;;  %s4972_s7 = inlined_call_operand.vmem [shape: f32[256,256], index: 7, kind: input, shape index: {}]   ;;  %s4973_s8 = inlined_call_operand.vmem [shape: f32[1,256], index: 8, kind: input, shape index: {}]   ;;  %s4974_s9 = inlined_call_operand.vmem [shape: f32[256,32], index: 9, kind: input, shape index: {}]   ;;  %s4975_s10 = inlined_call_operand.vmem [shape: f32[32,96], index: 10, kind: input, shape index: {}]   ;;  %s4976_s11 = inlined_call_operand.vmem [shape: f32[1,96], index: 11, kind: input, shape index: {}]   ;;  %s4977_s12 = inlined_call_operand.vmem [shape: f32[1,32], index: 12, kind: input, shape index: {}]   ;;  %s4978_s13 = inlined_call_operand.vmem [shape: f32[1,32], index: 13, kind: input, shape index: {}]   ;;  %s4979_s14 = inlined_call_operand.vmem [shape: f32[32,96], index: 14, kind: input, shape index: {}]   ;;  %s4980_s15 = inlined_call_operand.vmem [shape: f32[1,96], index: 15, kind: input, shape index: {}]   ;;  %s4981_s16 = inlined_call_operand.vmem [shape: f32[1,32], index: 16, kind: input, shape index: {}]   ;;  %s4982_s17 = inlined_call_operand.vmem [shape: f32[1,32], index: 17, kind: input, shape index: {}]   ;;  %s4983_s18 = inlined_call_operand.vmem [shape: f32[32,96], index: 18, kind: input, shape index: {}]   ;;  %s4984_s19 = inlined_call_operand.vmem [shape: f32[1,96], index: 19, kind: input, shape index: {}]   ;;  %s4985_s20 = inlined_call_operand.vmem [shape: f32[1,32], index: 20, kind: input, shape index: {}]   ;;  %s4986_s21 = inlined_call_operand.vmem [shape: f32[1,32], index: 21, kind: input, shape index: {}]   ;;  %s4987_s22 = inlined_call_operand.vmem [shape: f32[32,32], index: 22, kind: input, shape index: {}]   ;;  %s4988_s23 = inlined_call_operand.vmem [shape: f32[1,32], index: 23, kind: input, shape index: {}]   ;;  %s4989_s24 = inlined_call_operand.vmem [shape: f32[32,1], index: 24, kind: input, shape index: {}]   ;;  %s4990_s25 = inlined_call_operand.<no memory space> [shape: f32[1,1], index: 25, kind: input, shape index: {}]   ;;  %s4991_s26 = inlined_call_operand.hbm [shape: f32[2,32], index: 26, kind: output, shape index: {0}]   ;;  %s4992_s27 = inlined_call_operand.vmem [shape: f32[2,1], index: 27, kind: output, shape index: {1}]  }
   0x1   :  { %5002 = sst [smem:[#allocation21_spill]] %s4965_s0  ;;  %v33_v0 = vstv %s4990_s25 }
   0x2   :  { %5003 = sst [smem:[#allocation22_spill]] %s4966_s1  ;;  %34 = vst [vmem:[#allocation2] sm:$0x1] %v33_v0 }
   0x3   :  { %5004 = sst [smem:[#allocation23_spill]] %s4967_s2 }
   0x4   :  { %5005 = sst [smem:[#allocation24_spill]] %s4968_s3 }
   0x5   :  { %5006 = sst [smem:[#allocation25_spill]] %s4969_s4 }
   0x6   :  { %5007 = sst [smem:[#allocation26_spill]] %s4970_s5 }
   0x7   :  { %5008 = sst [smem:[#allocation27_spill]] %s4971_s6 }
   0x8   :  { %5009 = sst [smem:[#allocation28_spill]] %s4972_s7 }
   0x9   :  { %5010 = sst [smem:[#allocation29_spill]] %s4973_s8 }
   0xa   :  { %5011 = sst [smem:[#allocation30_spill]] %s4974_s9 }
   0xb   :  { %5012 = sst [smem:[#allocation31_spill]] %s4975_s10 }
   0xc   :  { %5013 = sst [smem:[#allocation32_spill]] %s4976_s11 }
   0xd   :  { %s5014_s9 = sld [smem:[#allocation22_spill]]  ;;  %v3181_v3 = vmov 0  }
   0xe   :  { %3110 = vset.pattern.permute.xlu1 %v3181_v3  ;;  %3109 = vset.pattern.permute.xlu0 %v3181_v3 }
  0x13   :  { %v2515_v1 = vld [vmem:[%s5014_s9 + $0x40] sm:$0xff]  ;;  %v2516_v4 = vld [vmem:[%s5014_s9 + $0x48] sm:$0xff]  ;;  %v91_v8 = vld [vmem:[%s5014_s9 + $0x18] sm:$0xff] }
  0x14   :  { %v88_v2 = vld [vmem:[%s5014_s9] sm:$0xff]  ;;  %172 = vperm.xlu1 %3110, %v2515_v1   ;;  %v89_v5 = vld [vmem:[%s5014_s9 + $0x8] sm:$0xff]  ;;  %v90_v9 = vld [vmem:[%s5014_s9 + $0x10] sm:$0xff] }
  0x15   :  { %106 = vperm.xlu0 %3109, %v88_v2   ;;  %v2532_v6 = vld [vmem:[%s5014_s9 + $0x88] sm:$0xff]  ;;  %v2531_v7 = vld [vmem:[%s5014_s9 + $0x80] sm:$0xff]  ;;  %v2518_v10 = vld [vmem:[%s5014_s9 + $0x58] sm:$0xff] }
  0x16   :  { %v2517_v11 = vld [vmem:[%s5014_s9 + $0x50] sm:$0xff]  ;;  %v2548_v12 = vld [vmem:[%s5014_s9 + $0xc8] sm:$0xff]  ;;  %v2547_v13 = vld [vmem:[%s5014_s9 + $0xc0] sm:$0xff] }
  0x17   :  { %v2534_v14 = vld [vmem:[%s5014_s9 + $0x98] sm:$0xff]  ;;  %v2533_v15 = vld [vmem:[%s5014_s9 + $0x90] sm:$0xff]  ;;  %v2564_v16 = vld [vmem:[%s5014_s9 + $0x108] sm:$0xff] }
  0x18   :  { %177 = vperm.xlu1 %3110, %v2516_v4   ;;  %v2563_v17 = vld [vmem:[%s5014_s9 + $0x100] sm:$0xff]  ;;  %v93_v18 = vld [vmem:[%s5014_s9 + $0x28] sm:$0xff] }
  0x19   :  { %111 = vperm.xlu0 %3109, %v89_v5   ;;  %v92_v19 = vld [vmem:[%s5014_s9 + $0x20] sm:$0xff] }
  0x1c   :  { %251 = vperm.xlu1 %3110, %v2532_v6  }
  0x1d   :  { %246 = vperm.xlu0 %3109, %v2531_v7  }
  0x20   :  { %121 = vperm.xlu1 %3110, %v91_v8  }
  0x21   :  { %116 = vperm.xlu0 %3109, %v90_v9  }
  0x24   :  { %187 = vperm.xlu1 %3110, %v2518_v10  }
  0x25   :  { %182 = vperm.xlu0 %3109, %v2517_v11  }
  0x28   :  { %325 = vperm.xlu1 %3110, %v2548_v12  }
  0x29   :  { %320 = vperm.xlu0 %3109, %v2547_v13  }
  0x2c   :  { %261 = vperm.xlu1 %3110, %v2534_v14  }
  0x2d   :  { %256 = vperm.xlu0 %3109, %v2533_v15  }
  0x30   :  { %399 = vperm.xlu1 %3110, %v2564_v16  }
  0x31   :  { %394 = vperm.xlu0 %3109, %v2563_v17  }
  0x32   :  { %35 = vsyncpa [#allocation4], 0  ;;  %v2520_v20 = vld [vmem:[%s5014_s9 + $0x68] sm:$0xff]  ;;  %v2519_v21 = vld [vmem:[%s5014_s9 + $0x60] sm:$0xff]  ;;  %s5028_s11 = sld [smem:[#allocation21_spill]]  ;;  %s5031_s10 = sld [smem:[#allocation24_spill]] }
  0x33   :  { %v2550_v22 = vld [vmem:[%s5014_s9 + $0xd8] sm:$0xff]  ;;  %v2549_v23 = vld [vmem:[%s5014_s9 + $0xd0] sm:$0xff]  ;;  %v2580_v24 = vld [vmem:[%s5014_s9 + $0x148] sm:$0xff]  ;;  %s5032_s1 = sld [smem:[#allocation23_spill]]  ;;  %vm1290_vm0 = vcmask 523264   ;;  %s5049_s2 = sld [smem:[#allocation28_spill]] }
  0x34   :  { %131 = vperm.xlu1 %3110, %v93_v18   ;;  %v2579_v25 = vld [vmem:[%s5014_s9 + $0x140] sm:$0xff]  ;;  %v2536_v26 = vld [vmem:[%s5014_s9 + $0xa8] sm:$0xff]  ;;  %v2566_v28 = vld [vmem:[%s5014_s9 + $0x118] sm:$0xff]  ;;  %vm1546_vm5 = vcmask 261120   ;;  %s5053_s8 = sld [smem:[#allocation29_spill]]  ;;  %vm3184_vm8 = vmmov 0  }
  0x35   :  { %126 = vperm.xlu0 %3109, %v92_v19   ;;  %v2535_v27 = vld [vmem:[%s5014_s9 + $0xa0] sm:$0xff]  ;;  %v2565_v29 = vld [vmem:[%s5014_s9 + $0x110] sm:$0xff]  ;;  %v2596_v30 = vld [vmem:[%s5014_s9 + $0x188] sm:$0xff]  ;;  %vm1882_vm9 = vcmask 254976   ;;  %s5055_s6 = sld [smem:[#allocation32_spill]]  ;;  %s3185_s3 = smov 64  }
  0x36   :  { %v2595_v31 = vld [vmem:[%s5014_s9 + $0x180] sm:$0xff]  ;;  %v95_v32 = vld [vmem:[%s5014_s9 + $0x38] sm:$0xff]  ;;  %v94_v33 = vld [vmem:[%s5014_s9 + $0x30] sm:$0xff]  ;;  %s3186_s7 = smov 32   ;;  %s3187_s4 = smov 96  }
  0x37   :  { %v2522_v34 = vld [vmem:[%s5014_s9 + $0x78] sm:$0xff]  ;;  %v2521_v35 = vld [vmem:[%s5014_s9 + $0x70] sm:$0xff]  ;;  %v2552_v36 = vld [vmem:[%s5014_s9 + $0xe8] sm:$0xff] }
  0x38   :  { %197 = vperm.xlu1 %3110, %v2520_v20   ;;  %v2551_v37 = vld [vmem:[%s5014_s9 + $0xe0] sm:$0xff]  ;;  %v2582_v38 = vld [vmem:[%s5014_s9 + $0x158] sm:$0xff]  ;;  %v2581_v39 = vld [vmem:[%s5014_s9 + $0x150] sm:$0xff] }
  0x39   :  { %192 = vperm.xlu0 %3109, %v2519_v21   ;;  %v2612_v40 = vld [vmem:[%s5014_s9 + $0x1c8] sm:$0xff]  ;;  %v2611_v41 = vld [vmem:[%s5014_s9 + $0x1c0] sm:$0xff]  ;;  %v2538_v42 = vld [vmem:[%s5014_s9 + $0xb8] sm:$0xff] }
  0x3a   :  { %v2537_v43 = vld [vmem:[%s5014_s9 + $0xb0] sm:$0xff]  ;;  %v2568_v44 = vld [vmem:[%s5014_s9 + $0x128] sm:$0xff]  ;;  %v2567_v45 = vld [vmem:[%s5014_s9 + $0x120] sm:$0xff] }
  0x3b   :  { %v2598_v46 = vld [vmem:[%s5014_s9 + $0x198] sm:$0xff]  ;;  %v2597_v47 = vld [vmem:[%s5014_s9 + $0x190] sm:$0xff]  ;;  %v2628_v48 = vld [vmem:[%s5014_s9 + $0x208] sm:$0xff] }
  0x3c   :  { %335 = vperm.xlu1 %3110, %v2550_v22   ;;  %v2627_v49 = vld [vmem:[%s5014_s9 + $0x200] sm:$0xff]  ;;  %v2554_v50 = vld [vmem:[%s5014_s9 + $0xf8] sm:$0xff]  ;;  %v2553_v51 = vld [vmem:[%s5014_s9 + $0xf0] sm:$0xff] }
  0x3d   :  { %330 = vperm.xlu0 %3109, %v2549_v23   ;;  %v2584_v52 = vld [vmem:[%s5014_s9 + $0x168] sm:$0xff]  ;;  %v2583_v53 = vld [vmem:[%s5014_s9 + $0x160] sm:$0xff]  ;;  %v2614_v54 = vld [vmem:[%s5014_s9 + $0x1d8] sm:$0xff] }
  0x3e   :  { %v2613_v55 = vld [vmem:[%s5014_s9 + $0x1d0] sm:$0xff]  ;;  %v2644_v56 = vld [vmem:[%s5014_s9 + $0x248] sm:$0xff]  ;;  %v2643_v57 = vld [vmem:[%s5014_s9 + $0x240] sm:$0xff] }
  0x3f   :  { %v2570_v58 = vld [vmem:[%s5014_s9 + $0x138] sm:$0xff]  ;;  %v2569_v59 = vld [vmem:[%s5014_s9 + $0x130] sm:$0xff]  ;;  %v2600_v60 = vld [vmem:[%s5014_s9 + $0x1a8] sm:$0xff] }
  0x40   :  { %473 = vperm.xlu1 %3110, %v2580_v24   ;;  %v2599_v61 = vld [vmem:[%s5014_s9 + $0x1a0] sm:$0xff]  ;;  %v2630_v62 = vld [vmem:[%s5014_s9 + $0x218] sm:$0xff]  ;;  %v2629_v63 = vld [vmem:[%s5014_s9 + $0x210] sm:$0xff] }
  0x41   :  { %468 = vperm.xlu0 %3109, %v2579_v25   ;;  %v2660_v0 = vld [vmem:[%s5014_s9 + $0x288] sm:$0xff]  ;;  %v2659_v1 = vld [vmem:[%s5014_s9 + $0x280] sm:$0xff]  ;;  %v2586_v2 = vld [vmem:[%s5014_s9 + $0x178] sm:$0xff] }
  0x42   :  { %v2585_v3 = vld [vmem:[%s5014_s9 + $0x170] sm:$0xff]  ;;  %v2616_v6 = vld [vmem:[%s5014_s9 + $0x1e8] sm:$0xff]  ;;  %v2615_v7 = vld [vmem:[%s5014_s9 + $0x1e0] sm:$0xff] }
  0x43   :  { %v2646_v10 = vld [vmem:[%s5014_s9 + $0x258] sm:$0xff]  ;;  %v2645_v11 = vld [vmem:[%s5014_s9 + $0x250] sm:$0xff]  ;;  %v2676_v14 = vld [vmem:[%s5014_s9 + $0x2c8] sm:$0xff] }
  0x44   :  { %271 = vperm.xlu1 %3110, %v2536_v26   ;;  %v2675_v15 = vld [vmem:[%s5014_s9 + $0x2c0] sm:$0xff]  ;;  %v2602_v18 = vld [vmem:[%s5014_s9 + $0x1b8] sm:$0xff]  ;;  %v2601_v19 = vld [vmem:[%s5014_s9 + $0x1b0] sm:$0xff] }
  0x45   :  { %266 = vperm.xlu0 %3109, %v2535_v27   ;;  %v2632_v22 = vld [vmem:[%s5014_s9 + $0x228] sm:$0xff]  ;;  %v2631_v23 = vld [vmem:[%s5014_s9 + $0x220] sm:$0xff]  ;;  %v2662_v26 = vld [vmem:[%s5014_s9 + $0x298] sm:$0xff] }
  0x46   :  { %v2661_v27 = vld [vmem:[%s5014_s9 + $0x290] sm:$0xff] }
  0x48   :  { %409 = vperm.xlu1 %3110, %v2566_v28  }
  0x49   :  { %404 = vperm.xlu0 %3109, %v2565_v29  }
  0x4c   :  { %547 = vperm.xlu1 %3110, %v2596_v30   ;;  %v2692_v30 = vld [vmem:[%s5014_s9 + $0x308] sm:$0xff] }
  0x4d   :  { %542 = vperm.xlu0 %3109, %v2595_v31   ;;  %v2691_v31 = vld [vmem:[%s5014_s9 + $0x300] sm:$0xff] }
  0x50   :  { %141 = vperm.xlu1 %3110, %v95_v32  }
  0x51   :  { %136 = vperm.xlu0 %3109, %v94_v33  }
  0x54   :  { %207 = vperm.xlu1 %3110, %v2522_v34   ;;  %v2618_v34 = vld [vmem:[%s5014_s9 + $0x1f8] sm:$0xff] }
  0x55   :  { %202 = vperm.xlu0 %3109, %v2521_v35   ;;  %v2617_v35 = vld [vmem:[%s5014_s9 + $0x1f0] sm:$0xff] }
  0x58   :  { %345 = vperm.xlu1 %3110, %v2552_v36  }
  0x59   :  { %340 = vperm.xlu0 %3109, %v2551_v37  }
  0x5c   :  { %483 = vperm.xlu1 %3110, %v2582_v38   ;;  %v2648_v38 = vld [vmem:[%s5014_s9 + $0x268] sm:$0xff] }
  0x5d   :  { %478 = vperm.xlu0 %3109, %v2581_v39   ;;  %v2647_v39 = vld [vmem:[%s5014_s9 + $0x260] sm:$0xff] }
  0x60   :  { %621 = vperm.xlu1 %3110, %v2612_v40  }
  0x61   :  { %616 = vperm.xlu0 %3109, %v2611_v41  }
  0x64   :  { %281 = vperm.xlu1 %3110, %v2538_v42   ;;  %v2678_v42 = vld [vmem:[%s5014_s9 + $0x2d8] sm:$0xff] }
  0x65   :  { %276 = vperm.xlu0 %3109, %v2537_v43   ;;  %v2677_v43 = vld [vmem:[%s5014_s9 + $0x2d0] sm:$0xff] }
  0x68   :  { %419 = vperm.xlu1 %3110, %v2568_v44  }
  0x69   :  { %414 = vperm.xlu0 %3109, %v2567_v45  }
  0x6c   :  { %557 = vperm.xlu1 %3110, %v2598_v46   ;;  %v2708_v46 = vld [vmem:[%s5014_s9 + $0x348] sm:$0xff] }
  0x6d   :  { %552 = vperm.xlu0 %3109, %v2597_v47   ;;  %v2707_v47 = vld [vmem:[%s5014_s9 + $0x340] sm:$0xff] }
  0x70   :  { %695 = vperm.xlu1 %3110, %v2628_v48  }
  0x71   :  { %690 = vperm.xlu0 %3109, %v2627_v49  }
  0x74   :  { %355 = vperm.xlu1 %3110, %v2554_v50   ;;  %v2634_v50 = vld [vmem:[%s5014_s9 + $0x238] sm:$0xff] }
  0x75   :  { %350 = vperm.xlu0 %3109, %v2553_v51   ;;  %v2633_v51 = vld [vmem:[%s5014_s9 + $0x230] sm:$0xff] }
  0x78   :  { %493 = vperm.xlu1 %3110, %v2584_v52  }
  0x79   :  { %488 = vperm.xlu0 %3109, %v2583_v53  }
  0x7c   :  { %631 = vperm.xlu1 %3110, %v2614_v54   ;;  %v2664_v54 = vld [vmem:[%s5014_s9 + $0x2a8] sm:$0xff] }
  0x7d   :  { %626 = vperm.xlu0 %3109, %v2613_v55   ;;  %v2663_v55 = vld [vmem:[%s5014_s9 + $0x2a0] sm:$0xff] }
  0x80   :  { %769 = vperm.xlu1 %3110, %v2644_v56  }
  0x81   :  { %764 = vperm.xlu0 %3109, %v2643_v57  }
  0x84   :  { %429 = vperm.xlu1 %3110, %v2570_v58   ;;  %v2694_v58 = vld [vmem:[%s5014_s9 + $0x318] sm:$0xff] }
  0x85   :  { %424 = vperm.xlu0 %3109, %v2569_v59   ;;  %v2693_v59 = vld [vmem:[%s5014_s9 + $0x310] sm:$0xff] }
  0x88   :  { %567 = vperm.xlu1 %3110, %v2600_v60  }
  0x89   :  { %562 = vperm.xlu0 %3109, %v2599_v61  }
  0x8c   :  { %705 = vperm.xlu1 %3110, %v2630_v62   ;;  %v2724_v62 = vld [vmem:[%s5014_s9 + $0x388] sm:$0xff] }
  0x8d   :  { %700 = vperm.xlu0 %3109, %v2629_v63   ;;  %v2723_v63 = vld [vmem:[%s5014_s9 + $0x380] sm:$0xff] }
  0x90   :  { %843 = vperm.xlu1 %3110, %v2660_v0  }
  0x91   :  { %838 = vperm.xlu0 %3109, %v2659_v1  }
  0x93   :  { %v3530_v4 = vpop.permute.xlu1 %172 }
  0x94   :  { %v3532_v5 = vpop.permute.xlu0 %106  ;;  %503 = vperm.xlu1 %3110, %v2586_v2   ;;  %v2650_v2 = vld [vmem:[%s5014_s9 + $0x278] sm:$0xff] }
  0x95   :  { %498 = vperm.xlu0 %3109, %v2585_v3   ;;  %v2649_v3 = vld [vmem:[%s5014_s9 + $0x270] sm:$0xff] }
  0x97   :  { %v3540_v8 = vpop.permute.xlu1 %177 }
  0x98   :  { %v3542_v9 = vpop.permute.xlu0 %111  ;;  %641 = vperm.xlu1 %3110, %v2616_v6  }
  0x99   :  { %636 = vperm.xlu0 %3109, %v2615_v7  }
  0x9b   :  { %v3550_v12 = vpop.permute.xlu1 %251 }
  0x9c   :  { %v3552_v13 = vpop.permute.xlu0 %246  ;;  %779 = vperm.xlu1 %3110, %v2646_v10   ;;  %v2680_v10 = vld [vmem:[%s5014_s9 + $0x2e8] sm:$0xff] }
  0x9d   :  { %774 = vperm.xlu0 %3109, %v2645_v11   ;;  %v2679_v11 = vld [vmem:[%s5014_s9 + $0x2e0] sm:$0xff] }
  0x9f   :  { %v3560_v16 = vpop.permute.xlu1 %121 }
  0xa0   :  { %v3562_v17 = vpop.permute.xlu0 %116  ;;  %917 = vperm.xlu1 %3110, %v2676_v14  }
  0xa1   :  { %912 = vperm.xlu0 %3109, %v2675_v15  }
  0xa3   :  { %v3570_v20 = vpop.permute.xlu1 %187 }
  0xa4   :  { %v3572_v21 = vpop.permute.xlu0 %182  ;;  %577 = vperm.xlu1 %3110, %v2602_v18   ;;  %v2710_v18 = vld [vmem:[%s5014_s9 + $0x358] sm:$0xff] }
  0xa5   :  { %572 = vperm.xlu0 %3109, %v2601_v19   ;;  %v2709_v19 = vld [vmem:[%s5014_s9 + $0x350] sm:$0xff] }
  0xa7   :  { %v3580_v24 = vpop.permute.xlu1 %325 }
  0xa8   :  { %v3582_v25 = vpop.permute.xlu0 %320  ;;  %715 = vperm.xlu1 %3110, %v2632_v22  }
  0xa9   :  { %5015 = vst [vmem:[#allocation6_spill] sm:$0xff] %v3582_v25  ;;  %710 = vperm.xlu0 %3109, %v2631_v23   ;;  %v101_v25 = vld [vmem:[%s5028_s11 + $0x28] sm:$0xff] }
  0xab   :  { %v3590_v28 = vpop.permute.xlu1 %261 }
  0xac   :  { %v3592_v29 = vpop.permute.xlu0 %256  ;;  %853 = vperm.xlu1 %3110, %v2662_v26   ;;  %v2740_v26 = vld [vmem:[%s5014_s9 + $0x3c8] sm:$0xff] }
  0xad   :  { %848 = vperm.xlu0 %3109, %v2661_v27   ;;  %v2739_v27 = vld [vmem:[%s5014_s9 + $0x3c0] sm:$0xff] }
  0xaf   :  { %v3600_v32 = vpop.permute.xlu1 %399 }
  0xb0   :  { %5016 = vst [vmem:[#allocation7_spill] sm:$0xff] %v3600_v32  ;;  %v3602_v33 = vpop.permute.xlu0 %394  ;;  %991 = vperm.xlu1 %3110, %v2692_v30  }
  0xb1   :  { %5017 = vst [vmem:[#allocation8_spill] sm:$0xff] %v3602_v33  ;;  %986 = vperm.xlu0 %3109, %v2691_v31  }
  0xb3   :  { %v3610_v36 = vpop.permute.xlu1 %131 }
  0xb4   :  { %v3612_v37 = vpop.permute.xlu0 %126  ;;  %651 = vperm.xlu1 %3110, %v2618_v34   ;;  %v2666_v34 = vld [vmem:[%s5014_s9 + $0x2b8] sm:$0xff] }
  0xb5   :  { %646 = vperm.xlu0 %3109, %v2617_v35   ;;  %v2665_v35 = vld [vmem:[%s5014_s9 + $0x2b0] sm:$0xff] }
  0xb7   :  { %v3620_v40 = vpop.permute.xlu1 %197 }
  0xb8   :  { %v3622_v41 = vpop.permute.xlu0 %192  ;;  %789 = vperm.xlu1 %3110, %v2648_v38  }
  0xb9   :  { %784 = vperm.xlu0 %3109, %v2647_v39  }
  0xbb   :  { %v3630_v44 = vpop.permute.xlu1 %335 }
  0xbc   :  { %v3632_v45 = vpop.permute.xlu0 %330  ;;  %927 = vperm.xlu1 %3110, %v2678_v42   ;;  %v2696_v42 = vld [vmem:[%s5014_s9 + $0x328] sm:$0xff] }
  0xbd   :  { %922 = vperm.xlu0 %3109, %v2677_v43   ;;  %v2695_v43 = vld [vmem:[%s5014_s9 + $0x320] sm:$0xff] }
  0xbf   :  { %v3640_v48 = vpop.permute.xlu1 %473 }
  0xc0   :  { %5018 = vst [vmem:[#allocation9_spill] sm:$0xff] %v3640_v48  ;;  %v3642_v49 = vpop.permute.xlu0 %468  ;;  %1065 = vperm.xlu1 %3110, %v2708_v46   ;;  %v2527_v48 = vld [vmem:[%s5028_s11 + $0x60] sm:$0xff] }
  0xc1   :  { %5019 = vst [vmem:[#allocation10_spill] sm:$0xff] %v3642_v49  ;;  %1060 = vperm.xlu0 %3109, %v2707_v47  }
  0xc3   :  { %v3650_v52 = vpop.permute.xlu1 %271 }
  0xc4   :  { %v3652_v53 = vpop.permute.xlu0 %266  ;;  %725 = vperm.xlu1 %3110, %v2634_v50   ;;  %v2726_v50 = vld [vmem:[%s5014_s9 + $0x398] sm:$0xff] }
  0xc5   :  { %720 = vperm.xlu0 %3109, %v2633_v51   ;;  %v2725_v51 = vld [vmem:[%s5014_s9 + $0x390] sm:$0xff] }
  0xc7   :  { %v3660_v56 = vpop.permute.xlu1 %409 }
  0xc8   :  { %v3662_v57 = vpop.permute.xlu0 %404  ;;  %863 = vperm.xlu1 %3110, %v2664_v54  }
  0xc9   :  { %858 = vperm.xlu0 %3109, %v2663_v55  }
  0xcb   :  { %v3670_v60 = vpop.permute.xlu1 %547 }
  0xcc   :  { %5020 = vst [vmem:[#allocation11_spill] sm:$0xff] %v3670_v60  ;;  %v3672_v61 = vpop.permute.xlu0 %542  ;;  %1001 = vperm.xlu1 %3110, %v2694_v58   ;;  %v2682_v58 = vld [vmem:[%s5014_s9 + $0x2f8] sm:$0xff] }
  0xcd   :  { %5021 = vst [vmem:[#allocation12_spill] sm:$0xff] %v3672_v61  ;;  %996 = vperm.xlu0 %3109, %v2693_v59   ;;  %v2681_v59 = vld [vmem:[%s5014_s9 + $0x2f0] sm:$0xff] }
  0xce   :  { %v2525_v61 = vld [vmem:[%s5028_s11 + $0x50] sm:$0xff] }
  0xcf   :  { %v3680_v0 = vpop.permute.xlu1 %141 }
  0xd0   :  { %v3682_v1 = vpop.permute.xlu0 %136  ;;  %1139 = vperm.xlu1 %3110, %v2724_v62  }
  0xd1   :  { %1134 = vperm.xlu0 %3109, %v2723_v63  }
  0xd3   :  { %v3690_v6 = vpop.permute.xlu1 %207 }
  0xd4   :  { %v3692_v7 = vpop.permute.xlu0 %202  ;;  %799 = vperm.xlu1 %3110, %v2650_v2   ;;  %v2712_v2 = vld [vmem:[%s5014_s9 + $0x368] sm:$0xff] }
  0xd5   :  { %794 = vperm.xlu0 %3109, %v2649_v3   ;;  %v2711_v3 = vld [vmem:[%s5014_s9 + $0x360] sm:$0xff] }
  0xd7   :  { %v3700_v14 = vpop.permute.xlu1 %345 }
  0xd8   :  { %v3702_v15 = vpop.permute.xlu0 %340  ;;  %937 = vperm.xlu1 %3110, %v2680_v10  }
  0xd9   :  { %932 = vperm.xlu0 %3109, %v2679_v11  }
  0xdb   :  { %v3710_v22 = vpop.permute.xlu1 %483 }
  0xdc   :  { %v3712_v23 = vpop.permute.xlu0 %478  ;;  %1075 = vperm.xlu1 %3110, %v2710_v18   ;;  %v2742_v18 = vld [vmem:[%s5014_s9 + $0x3d8] sm:$0xff] }
  0xdd   :  { %1070 = vperm.xlu0 %3109, %v2709_v19   ;;  %v2741_v19 = vld [vmem:[%s5014_s9 + $0x3d0] sm:$0xff] }
  0xdf   :  { %v3720_v30 = vpop.permute.xlu1 %621 }
  0xe0   :  { %5022 = vst [vmem:[#allocation13_spill] sm:$0xff] %v3720_v30  ;;  %v3722_v31 = vpop.permute.xlu0 %616  ;;  %1213 = vperm.xlu1 %3110, %v2740_v26  }
  0xe1   :  { %5023 = vst [vmem:[#allocation14_spill] sm:$0xff] %v3722_v31  ;;  %1208 = vperm.xlu0 %3109, %v2739_v27   ;;  %v2558_v31 = vld [vmem:[%s5028_s11 + $0xd8] sm:$0xff] }
  0xe3   :  { %v3730_v38 = vpop.permute.xlu1 %281 }
  0xe4   :  { %v3732_v39 = vpop.permute.xlu0 %276  ;;  %873 = vperm.xlu1 %3110, %v2666_v34   ;;  %v2698_v34 = vld [vmem:[%s5014_s9 + $0x338] sm:$0xff] }
  0xe5   :  { %868 = vperm.xlu0 %3109, %v2665_v35   ;;  %v2697_v35 = vld [vmem:[%s5014_s9 + $0x330] sm:$0xff] }
  0xe7   :  { %v3740_v46 = vpop.permute.xlu1 %419 }
  0xe8   :  { %v3742_v47 = vpop.permute.xlu0 %414  ;;  %1011 = vperm.xlu1 %3110, %v2696_v42  }
  0xe9   :  { %1006 = vperm.xlu0 %3109, %v2695_v43  }
  0xeb   :  { %v3750_v54 = vpop.permute.xlu1 %557 }
  0xec   :  { %v3752_v55 = vpop.permute.xlu0 %552  ;;  %1149 = vperm.xlu1 %3110, %v2726_v50   ;;  %v2728_v50 = vld [vmem:[%s5014_s9 + $0x3a8] sm:$0xff] }
  0xed   :  { %1144 = vperm.xlu0 %3109, %v2725_v51   ;;  %v2727_v51 = vld [vmem:[%s5014_s9 + $0x3a0] sm:$0xff] }
  0xef   :  { %v3760_v62 = vpop.permute.xlu1 %695 }
  0xf0   :  { %5024 = vst [vmem:[#allocation15_spill] sm:$0xff] %v3760_v62  ;;  %v3762_v63 = vpop.permute.xlu0 %690  ;;  %947 = vperm.xlu1 %3110, %v2682_v58  }
  0xf1   :  { %5025 = vst [vmem:[#allocation16_spill] sm:$0xff] %v3762_v63  ;;  %942 = vperm.xlu0 %3109, %v2681_v59   ;;  %v2729_v63 = vld [vmem:[%s5014_s9 + $0x3b0] sm:$0xff] }
  0xf3   :  { %v3770_v10 = vpop.permute.xlu1 %355 }
  0xf4   :  { %v3772_v11 = vpop.permute.xlu0 %350  ;;  %1085 = vperm.xlu1 %3110, %v2712_v2   ;;  %v2714_v2 = vld [vmem:[%s5014_s9 + $0x378] sm:$0xff] }
  0xf5   :  { %1080 = vperm.xlu0 %3109, %v2711_v3   ;;  %v2713_v3 = vld [vmem:[%s5014_s9 + $0x370] sm:$0xff] }
  0xf7   :  { %v3780_v26 = vpop.permute.xlu1 %493 }
  0xf8   :  { %v3782_v27 = vpop.permute.xlu0 %488  ;;  %1223 = vperm.xlu1 %3110, %v2742_v18  }
  0xf9   :  { %1218 = vperm.xlu0 %3109, %v2741_v19  }
  0xfb   :  { %v3790_v42 = vpop.permute.xlu1 %631 }
  0xfc   :  { %v3792_v43 = vpop.permute.xlu0 %626  ;;  %1021 = vperm.xlu1 %3110, %v2698_v34   ;;  %v2744_v34 = vld [vmem:[%s5014_s9 + $0x3e8] sm:$0xff] }
  0xfd   :  { %1016 = vperm.xlu0 %3109, %v2697_v35   ;;  %v2743_v35 = vld [vmem:[%s5014_s9 + $0x3e0] sm:$0xff] }
  0xff   :  { %v3800_v58 = vpop.permute.xlu1 %769 }
 0x100   :  { %5026 = vst [vmem:[#allocation17_spill] sm:$0xff] %v3800_v58  ;;  %v3802_v59 = vpop.permute.xlu0 %764  ;;  %1159 = vperm.xlu1 %3110, %v2728_v50   ;;  %v2526_v50 = vld [vmem:[%s5028_s11 + $0x58] sm:$0xff] }
 0x101   :  { %5027 = vst [vmem:[#allocation18_spill] sm:$0xff] %v3802_v59  ;;  %1154 = vperm.xlu0 %3109, %v2727_v51   ;;  %v2730_v58 = vld [vmem:[%s5014_s9 + $0x3b8] sm:$0xff]  ;;  %v213_v62 = vmul.f32 %v2526_v50, %v3570_v20 }
 0x102   :  { %v2574_v20 = vld [vmem:[%s5028_s11 + $0x118] sm:$0xff] }
 0x103   :  { %v3810_v18 = vpop.permute.xlu1 %429  ;;  %v2746_v50 = vld [vmem:[%s5014_s9 + $0x3f8] sm:$0xff] }
 0x104   :  { %v3812_v19 = vpop.permute.xlu0 %424  ;;  %1095 = vperm.xlu1 %3110, %v2714_v2   ;;  %v99_v2 = vld [vmem:[%s5028_s11 + $0x18] sm:$0xff] }
 0x105   :  { %1090 = vperm.xlu0 %3109, %v2713_v3   ;;  %v2542_v3 = vld [vmem:[%s5028_s11 + $0x98] sm:$0xff]  ;;  %v147_v30 = vmul.f32 %v3560_v16, %v99_v2  ;;  %v2745_v16 = vld [vmem:[%s5014_s9 + $0x3f0] sm:$0xff]  ;;  %s5048_s9 = sld [smem:[#allocation25_spill]] }
 0x106   :  { %v287_v60 = vmul.f32 %v2542_v3, %v3590_v28  ;;  %v98_v2 = vld [vmem:[%s5028_s11 + $0x10] sm:$0xff]  ;;  %v212_v3 = vmul.f32 %v2525_v61, %v3572_v21  ;;  %v100_v21 = vld [vmem:[%s5028_s11 + $0x20] sm:$0xff]  ;;  %v435_v61 = vmul.f32 %v2574_v20, %v3660_v56  ;;  %v214_v20 = vmul.f32 %v2527_v48, %v3622_v41  ;;  %v2530_v41 = vld [vmem:[%s5028_s11 + $0x78] sm:$0xff] }
 0x107   :  { %v3823_v51 = vpop.permute.xlu1 %567  ;;  %v221_v49 = vadd.f32 %v213_v62, %v147_v30  ;;  %v2541_v28 = vld [vmem:[%s5028_s11 + $0x90] sm:$0xff]  ;;  %v2590_v30 = vld [vmem:[%s5028_s11 + $0x158] sm:$0xff]  ;;  %v1266_v56 = vld [vmem:[%s5031_s10] sm:$0xff] }
 0x108   :  { %v3825_v59 = vpop.permute.xlu0 %562  ;;  %1233 = vperm.xlu1 %3110, %v2744_v34  }
 0x109   :  { %1228 = vperm.xlu0 %3109, %v2743_v35   ;;  %v295_v32 = vadd.f32 %v287_v60, %v221_v49  ;;  %v286_v49 = vmul.f32 %v2541_v28, %v3592_v29  ;;  %v2543_v29 = vld [vmem:[%s5028_s11 + $0xa0] sm:$0xff] }
 0x10b   :  { %v3843_v34 = vpop.permute.xlu1 %705 }
 0x10c   :  { %v3845_v35 = vpop.permute.xlu0 %700  ;;  %1169 = vperm.xlu1 %3110, %v2730_v58   ;;  %v361_v58 = vmul.f32 %v2558_v31, %v3630_v44  ;;  %v2557_v44 = vld [vmem:[%s5028_s11 + $0xd0] sm:$0xff]  ;;  %v146_v31 = vmul.f32 %v3562_v17, %v98_v2  ;;  %v2544_v17 = vld [vmem:[%s5028_s11 + $0xa8] sm:$0xff]  ;;  %v149_v2 = vmul.f32 %v3610_v36, %v101_v25  ;;  %v103_v25 = vld [vmem:[%s5028_s11 + $0x38] sm:$0xff] }
 0x10d   :  { %1164 = vperm.xlu0 %3109, %v2729_v63   ;;  %v2528_v63 = vld [vmem:[%s5028_s11 + $0x68] sm:$0xff]  ;;  %v360_v28 = vmul.f32 %v2557_v44, %v3632_v45  ;;  %v2529_v36 = vld [vmem:[%s5028_s11 + $0x70] sm:$0xff] }
 0x10e   :  { %v215_v60 = vmul.f32 %v2528_v63, %v3620_v40  ;;  %v509_v40 = vmul.f32 %v2590_v30, %v3710_v22  ;;  %v2560_v45 = vld [vmem:[%s5028_s11 + $0xe8] sm:$0xff] }
 0x10f   :  { %v3878_v62 = vpop.permute.xlu1 %843 }
 0x110   :  { %5029 = vst [vmem:[#allocation19_spill] sm:$0xff] %v3878_v62  ;;  %v3880_v33 = vpop.permute.xlu0 %838  ;;  %1243 = vperm.xlu1 %3110, %v2746_v50   ;;  %v1267_v62 = vld [vmem:[%s5031_s10 + $0x8] sm:$0xff]  ;;  %v369_v50 = vadd.f32 %v361_v58, %v295_v32  ;;  %v2622_v32 = vld [vmem:[%s5028_s11 + $0x1d8] sm:$0xff]  ;;  %v148_v58 = vmul.f32 %v3612_v37, %v100_v21  ;;  %v223_v44 = vadd.f32 %v215_v60, %v149_v2 }
 0x111   :  { %5030 = vst [vmem:[#allocation20_spill] sm:$0xff] %v3880_v33  ;;  %1238 = vperm.xlu0 %3109, %v2745_v16   ;;  %v2606_v33 = vld [vmem:[%s5028_s11 + $0x198] sm:$0xff]  ;;  %v220_v16 = vadd.f32 %v212_v3, %v146_v31  ;;  %v289_v37 = vmul.f32 %v2544_v17, %v3650_v52  ;;  %v288_v21 = vmul.f32 %v2543_v29, %v3652_v53 }
 0x112   :  { %v443_v22 = vadd.f32 %v435_v61, %v369_v50  ;;  %v583_v3 = vmul.f32 %v2606_v33, %v3750_v54  ;;  %v2638_v61 = vld [vmem:[%s5028_s11 + $0x218] sm:$0xff]  ;;  %v1268_v33 = vld [vmem:[%s5031_s10 + $0x10] sm:$0xff]  ;;  %v222_v54 = vadd.f32 %v214_v20, %v148_v58  ;;  %v217_v52 = vmul.f32 %v2530_v41, %v3690_v6 }
 0x113   :  { %v3920_v48 = vpop.permute.xlu1 %503  ;;  %v294_v30 = vadd.f32 %v286_v49, %v220_v16  ;;  %v1269_v31 = vld [vmem:[%s5031_s10 + $0x18] sm:$0xff]  ;;  %v657_v60 = vmul.f32 %v2622_v32, %v3790_v42  ;;  %v2573_v50 = vld [vmem:[%s5028_s11 + $0x110] sm:$0xff]  ;;  %v216_v20 = vmul.f32 %v2529_v36, %v3692_v7  ;;  %v363_v17 = vmul.f32 %v2560_v45, %v3700_v14  ;;  %v1262_v42 = vld [vmem:[%s5032_s1] sm:$0xff] }
 0x114   :  { %v3922_v63 = vpop.permute.xlu0 %498  ;;  %1277 = vperm.xlu1 %3110, %v1267_v62   ;;  %v102_v62 = vld [vmem:[%s5028_s11 + $0x30] sm:$0xff]  ;;  %v517_v53 = vadd.f32 %v509_v40, %v443_v22  ;;  %v2546_v49 = vld [vmem:[%s5028_s11 + $0xb8] sm:$0xff]  ;;  %v151_v16 = vmul.f32 %v3680_v0, %v103_v25  ;;  %v2559_v7 = vld [vmem:[%s5028_s11 + $0xe0] sm:$0xff]  ;;  %v297_v41 = vadd.f32 %v289_v37, %v223_v44  ;;  %v296_v32 = vadd.f32 %v288_v21, %v222_v54 }
 0x115   :  { %1272 = vperm.xlu0 %3109, %v1266_v56   ;;  %v3954_v56 = vadd.f32 %v360_v28, %v294_v30  ;;  %v2545_v6 = vld [vmem:[%s5028_s11 + $0xb0] sm:$0xff]  ;;  %v2562_v2 = vld [vmem:[%s5028_s11 + $0xf8] sm:$0xff]  ;;  %v731_v28 = vmul.f32 %v2638_v61, %v3843_v34  ;;  %v150_v58 = vmul.f32 %v3682_v1, %v102_v62  ;;  %v291_v22 = vmul.f32 %v2546_v49, %v3730_v38  ;;  %v2576_v0 = vld [vmem:[%s5028_s11 + $0x128] sm:$0xff] }
 0x116   :  { %v591_v14 = vadd.f32 %v583_v3, %v517_v53  ;;  %v2561_v25 = vld [vmem:[%s5028_s11 + $0xf0] sm:$0xff]  ;;  %v2654_v34 = vld [vmem:[%s5028_s11 + $0x258] sm:$0xff]  ;;  %2874 = vmatprep.mubr.msk.f32.mxu0 %vm1290_vm0, %v1262_v42  ;;  %v434_v36 = vmul.f32 %v2573_v50, %v3662_v57  ;;  %v225_v45 = vadd.f32 %v217_v52, %v151_v16  ;;  %v290_v38 = vmul.f32 %v2545_v6, %v3732_v39  ;;  %v2575_v3 = vld [vmem:[%s5028_s11 + $0x120] sm:$0xff] }
 0x117   :  { %v3964_v29 = vpop.permute.xlu1 %641  ;;  %v2589_v1 = vld [vmem:[%s5028_s11 + $0x150] sm:$0xff]  ;;  %v2578_v44 = vld [vmem:[%s5028_s11 + $0x138] sm:$0xff]  ;;  %v224_v37 = vadd.f32 %v216_v20, %v150_v58  ;;  %v371_v21 = vadd.f32 %v363_v17, %v297_v41  ;;  %v362_v57 = vmul.f32 %v2559_v7, %v3702_v15  ;;  %v365_v61 = vmul.f32 %v2562_v2, %v3770_v10  ;;  %v2591_v15 = vld [vmem:[%s5028_s11 + $0x160] sm:$0xff] }
 0x118   :  { %v3966_v40 = vpop.permute.xlu0 %636  ;;  %1287 = vperm.xlu1 %3110, %v1269_v31   ;;  %v665_v30 = vadd.f32 %v657_v60, %v591_v14  ;;  %v2592_v31 = vld [vmem:[%s5028_s11 + $0x168] sm:$0xff]  ;;  %v2577_v39 = vld [vmem:[%s5028_s11 + $0x130] sm:$0xff]  ;;  %v437_v62 = vmul.f32 %v2576_v0, %v3740_v46  ;;  %v364_v52 = vmul.f32 %v2561_v25, %v3772_v11  ;;  %v2594_v53 = vld [vmem:[%s5028_s11 + $0x178] sm:$0xff]  ;;  %v508_v60 = vmul.f32 %v2589_v1, %v3712_v23 }
 0x119   :  { %1282 = vperm.xlu0 %3109, %v1268_v33   ;;  %v299_v50 = vadd.f32 %v291_v22, %v225_v45  ;;  %v436_v20 = vmul.f32 %v2575_v3, %v3742_v47  ;;  %v439_v17 = vmul.f32 %v2578_v44, %v3810_v18  ;;  %v2593_v46 = vld [vmem:[%s5028_s11 + $0x170] sm:$0xff]  ;;  %v298_v11 = vadd.f32 %v290_v38, %v224_v37  ;;  %v2608_v23 = vld [vmem:[%s5028_s11 + $0x1a8] sm:$0xff]  ;;  %v2607_v2 = vld [vmem:[%s5028_s11 + $0x1a0] sm:$0xff] }
 0x11a   :  { %v739_v10 = vadd.f32 %v731_v28, %v665_v30  ;;  %v2605_v6 = vld [vmem:[%s5028_s11 + $0x190] sm:$0xff]  ;;  %v511_v42 = vmul.f32 %v2592_v31, %v3780_v26  ;;  %v438_v16 = vmul.f32 %v2577_v39, %v3812_v19  ;;  %v370_v18 = vadd.f32 %v362_v57, %v296_v32  ;;  %v2624_v0 = vld [vmem:[%s5028_s11 + $0x1e8] sm:$0xff] }
 0x11b   :  { %v780_v33 = vpop.permute.xlu1 %779  ;;  %v373_v7 = vadd.f32 %v365_v61, %v299_v50  ;;  %v510_v14 = vmul.f32 %v2591_v15, %v3782_v27  ;;  %v513_v28 = vmul.f32 %v2594_v53, %v3920_v48  ;;  %v442_v19 = vadd.f32 %v434_v36, %v3954_v56  ;;  %v2621_v32 = vld [vmem:[%s5028_s11 + $0x1d0] sm:$0xff]  ;;  %v2623_v56 = vld [vmem:[%s5028_s11 + $0x1e0] sm:$0xff]  ;;  %v2610_v36 = vld [vmem:[%s5028_s11 + $0x1b8] sm:$0xff] }
 0x11c   :  { %v4010_v54 = vpop.permute.xlu0 %774  ;;  %v805_v49 = vmul.f32 %v2654_v34, %v780_v33  ;;  %v445_v58 = vadd.f32 %v437_v62, %v371_v21  ;;  %v372_v22 = vadd.f32 %v364_v52, %v298_v11  ;;  %v512_v27 = vmul.f32 %v2593_v46, %v3922_v63  ;;  %v2609_v63 = vld [vmem:[%s5028_s11 + $0x1b0] sm:$0xff] }
 0x11d   :  { %v444_v25 = vadd.f32 %v436_v20, %v370_v18  ;;  %v582_v48 = vmul.f32 %v2605_v6, %v3752_v55  ;;  %v447_v34 = vadd.f32 %v439_v17, %v373_v7  ;;  %v585_v45 = vmul.f32 %v2608_v23, %v3823_v51  ;;  %v2637_v44 = vld [vmem:[%s5028_s11 + $0x210] sm:$0xff] }
 0x11e   :  { %v4034_v47 = vadd.f32 %v805_v49, %v739_v10  ;;  %v516_v1 = vadd.f32 %v508_v60, %v442_v19  ;;  %v519_v38 = vadd.f32 %v511_v42, %v445_v58  ;;  %v446_v3 = vadd.f32 %v438_v16, %v372_v22  ;;  %v2670_v16 = vld [vmem:[%s5028_s11 + $0x298] sm:$0xff]  ;;  %v2669_v23 = vld [vmem:[%s5028_s11 + $0x290] sm:$0xff] }
 0x11f   :  { %v4041_v41 = vpop.permute.xlu1 %917  ;;  %v584_v55 = vmul.f32 %v2607_v2, %v3825_v59  ;;  %v518_v30 = vadd.f32 %v510_v14, %v444_v25  ;;  %v656_v51 = vmul.f32 %v2621_v32, %v3792_v43  ;;  %v521_v37 = vadd.f32 %v513_v28, %v447_v34  ;;  %v2653_v43 = vld [vmem:[%s5028_s11 + $0x250] sm:$0xff]  ;;  %v2640_v59 = vld [vmem:[%s5028_s11 + $0x228] sm:$0xff] }
 0x120   :  { %v4043_v26 = vpop.permute.xlu0 %912  ;;  %v659_v21 = vmul.f32 %v2624_v0, %v3964_v29  ;;  %v520_v31 = vadd.f32 %v512_v27, %v446_v3  ;;  %v658_v39 = vmul.f32 %v2623_v56, %v3966_v40  ;;  %v590_v52 = vadd.f32 %v582_v48, %v516_v1  ;;  %v2639_v29 = vld [vmem:[%s5028_s11 + $0x220] sm:$0xff]  ;;  %v2626_v0 = vld [vmem:[%s5028_s11 + $0x1f8] sm:$0xff]  ;;  %v2625_v25 = vld [vmem:[%s5028_s11 + $0x1f0] sm:$0xff] }
 0x121   :  { %v593_v15 = vadd.f32 %v585_v45, %v519_v38  ;;  %v592_v10 = vadd.f32 %v584_v55, %v518_v30  ;;  %v730_v53 = vmul.f32 %v2637_v44, %v3845_v35  ;;  %v804_v11 = vmul.f32 %v2653_v43, %v4010_v54 }
 0x122   :  { %v664_v60 = vadd.f32 %v656_v51, %v590_v52  ;;  %v2540_v52 = vld [vmem:[%s5028_s11 + $0x88] sm:$0xff] }
 0x123   :  { %v578_v57 = vpop.permute.xlu1 %577  ;;  %v667_v50 = vadd.f32 %v659_v21, %v593_v15  ;;  %v666_v46 = vadd.f32 %v658_v39, %v592_v10  ;;  %v97_v39 = vld [vmem:[%s5028_s11 + $0x8] sm:$0xff]  ;;  %v2539_v15 = vld [vmem:[%s5028_s11 + $0x80] sm:$0xff] }
 0x124   :  { %v573_v61 = vpop.permute.xlu0 %572  ;;  %v587_v33 = vmul.f32 %v2610_v36, %v578_v57  ;;  %v738_v35 = vadd.f32 %v730_v53, %v664_v60  ;;  %v2655_v36 = vld [vmem:[%s5028_s11 + $0x260] sm:$0xff]  ;;  %v145_v10 = vmul.f32 %v3542_v9, %v97_v39  ;;  %v2556_v53 = vld [vmem:[%s5028_s11 + $0xc8] sm:$0xff] }
 0x125   :  { %v586_v62 = vmul.f32 %v2609_v63, %v573_v61  ;;  %v2523_v57 = vld [vmem:[%s5028_s11 + $0x40] sm:$0xff] }
 0x126   :  { %v595_v40 = vadd.f32 %v587_v33, %v521_v37  ;;  %v812_v28 = vadd.f32 %v804_v11, %v738_v35  ;;  %v96_v61 = vld [vmem:[%s5028_s11] sm:$0xff]  ;;  %v210_v43 = vmul.f32 %v2523_v57, %v3530_v4  ;;  %v285_v4 = vmul.f32 %v2540_v52, %v3550_v12  ;;  %v2588_v12 = vld [vmem:[%s5028_s11 + $0x148] sm:$0xff] }
 0x127   :  { %v594_v49 = vadd.f32 %v586_v62, %v520_v31  ;;  %v716_v20 = vpop.permute.xlu1 %715  ;;  %v2524_v31 = vld [vmem:[%s5028_s11 + $0x48] sm:$0xff]  ;;  %v2571_v9 = vld [vmem:[%s5028_s11 + $0x100] sm:$0xff] }
 0x128   :  { %v711_v17 = vpop.permute.xlu0 %710  ;;  %v733_v6 = vmul.f32 %v2640_v59, %v716_v20  ;;  %v144_v59 = vmul.f32 %v3532_v5, %v96_v61  ;;  %v284_v5 = vmul.f32 %v2539_v15, %v3552_v13  ;;  %v2587_v13 = vld [vmem:[%s5028_s11 + $0x140] sm:$0xff]  ;;  %v5034_v35 = vld [vmem:[#allocation7_spill] sm:$0xff] }
 0x129   :  { %v732_v42 = vmul.f32 %v2639_v29, %v711_v17  ;;  %v211_v29 = vmul.f32 %v2524_v31, %v3540_v8  ;;  %v2572_v8 = vld [vmem:[%s5028_s11 + $0x108] sm:$0xff]  ;;  %v359_v17 = vmul.f32 %v2556_v53, %v3580_v24  ;;  %v2635_v31 = vld [vmem:[%s5028_s11 + $0x200] sm:$0xff] }
 0x12a   :  { %v741_v18 = vadd.f32 %v733_v6, %v667_v50  ;;  %v218_v50 = vadd.f32 %v210_v43, %v144_v59  ;;  %v2636_v61 = vld [vmem:[%s5028_s11 + $0x208] sm:$0xff]  ;;  %v5040_v15 = vld [vmem:[#allocation13_spill] sm:$0xff] }
 0x12b   :  { %v740_v7 = vadd.f32 %v732_v42, %v666_v46  ;;  %v854_v14 = vpop.permute.xlu1 %853  ;;  %v219_v20 = vadd.f32 %v211_v29, %v145_v10  ;;  %v5033_v46 = vld [vmem:[#allocation6_spill] sm:$0xff] }
 0x12c   :  { %v849_v2 = vpop.permute.xlu0 %848  ;;  %v879_v19 = vmul.f32 %v2670_v16, %v854_v14  ;;  %v2604_v14 = vld [vmem:[%s5028_s11 + $0x188] sm:$0xff]  ;;  %v2651_v53 = vld [vmem:[%s5028_s11 + $0x240] sm:$0xff] }
 0x12d   :  { %v878_v58 = vmul.f32 %v2669_v23, %v849_v2  ;;  %v293_v16 = vadd.f32 %v285_v4, %v219_v20  ;;  %v292_v23 = vadd.f32 %v284_v5, %v218_v50  ;;  %v2603_v2 = vld [vmem:[%s5028_s11 + $0x180] sm:$0xff]  ;;  %v2652_v10 = vld [vmem:[%s5028_s11 + $0x248] sm:$0xff]  ;;  %v5043_v20 = vld [vmem:[#allocation16_spill] sm:$0xff] }
 0x12e   :  { %v4089_v54 = vadd.f32 %v879_v19, %v4034_v47  ;;  %v2656_v47 = vld [vmem:[%s5028_s11 + $0x268] sm:$0xff] }
 0x12f   :  { %v4091_v22 = vadd.f32 %v878_v58, %v812_v28  ;;  %v4093_v32 = vpop.permute.xlu1 %991  ;;  %v367_v28 = vadd.f32 %v359_v17, %v293_v16  ;;  %v5036_v58 = vld [vmem:[#allocation9_spill] sm:$0xff]  ;;  %v5041_v59 = vld [vmem:[#allocation14_spill] sm:$0xff]  ;;  %v728_v17 = vmul.f32 %v2635_v31, %v5043_v20 }
 0x130   :  { %v4095_v27 = vpop.permute.xlu0 %986  ;;  %v5044_v16 = vld [vmem:[#allocation17_spill] sm:$0xff]  ;;  %v2748_v20 = vld [vmem:[%s5028_s11 + $0x3c8] sm:$0xff] }
 0x133   :  { %v652_v48 = vpop.permute.xlu1 %651 }
 0x134   :  { %v647_v34 = vpop.permute.xlu0 %646  ;;  %v661_v45 = vmul.f32 %v2626_v0, %v652_v48  ;;  %v507_v0 = vmul.f32 %v2588_v12, %v5036_v58  ;;  %v5046_v58 = vld [vmem:[#allocation19_spill] sm:$0xff] }
 0x135   :  { %v660_v56 = vmul.f32 %v2625_v25, %v647_v34  ;;  %v5037_v25 = vld [vmem:[#allocation10_spill] sm:$0xff] }
 0x136   :  { %v4109_v63 = vadd.f32 %v661_v45, %v595_v40  ;;  %v2555_v40 = vld [vmem:[%s5028_s11 + $0xc0] sm:$0xff]  ;;  %v506_v48 = vmul.f32 %v2587_v13, %v5037_v25  ;;  %v2620_v34 = vld [vmem:[%s5028_s11 + $0x1c8] sm:$0xff]  ;;  %v5047_v25 = vld [vmem:[#allocation20_spill] sm:$0xff] }
 0x137   :  { %v4111_v1 = vadd.f32 %v660_v56, %v594_v49  ;;  %v790_v38 = vpop.permute.xlu1 %789  ;;  %v358_v11 = vmul.f32 %v2555_v40, %v5033_v46  ;;  %v2619_v45 = vld [vmem:[%s5028_s11 + $0x1c0] sm:$0xff]  ;;  %v655_v43 = vmul.f32 %v2620_v34, %v5040_v15  ;;  %v2668_v46 = vld [vmem:[%s5028_s11 + $0x288] sm:$0xff] }
 0x138   :  { %v785_v3 = vpop.permute.xlu0 %784  ;;  %v807_v55 = vmul.f32 %v2656_v47, %v790_v38  ;;  %v654_v29 = vmul.f32 %v2619_v45, %v5041_v59  ;;  %v2700_v34 = vld [vmem:[%s5028_s11 + $0x308] sm:$0xff]  ;;  %v2699_v45 = vld [vmem:[%s5028_s11 + $0x300] sm:$0xff] }
 0x139   :  { %v806_v30 = vmul.f32 %v2655_v36, %v785_v3  ;;  %v366_v19 = vadd.f32 %v358_v11, %v292_v23  ;;  %v5038_v3 = vld [vmem:[#allocation11_spill] sm:$0xff]  ;;  %v2667_v11 = vld [vmem:[%s5028_s11 + $0x280] sm:$0xff]  ;;  %v803_v23 = vmul.f32 %v2652_v10, %v5044_v16  ;;  %v1025_v15 = vmul.f32 %v2700_v34, %v4093_v32 }
 0x13a   :  { %v4113_v51 = vadd.f32 %v807_v55, %v741_v18  ;;  %v433_v18 = vmul.f32 %v2572_v8, %v5034_v35  ;;  %v581_v55 = vmul.f32 %v2604_v14, %v5038_v3  ;;  %v5045_v35 = vld [vmem:[#allocation18_spill] sm:$0xff]  ;;  %v2701_v34 = vld [vmem:[%s5028_s11 + $0x310] sm:$0xff] }
 0x13b   :  { %v4115_v44 = vadd.f32 %v806_v30, %v740_v7  ;;  %v4117_v37 = vpop.permute.xlu1 %927  ;;  %v5035_v7 = vld [vmem:[#allocation8_spill] sm:$0xff] }
 0x13c   :  { %v4119_v21 = vpop.permute.xlu0 %922  ;;  %v432_v24 = vmul.f32 %v2571_v9, %v5035_v7  ;;  %v441_v36 = vadd.f32 %v433_v18, %v367_v28  ;;  %v5039_v30 = vld [vmem:[#allocation12_spill] sm:$0xff]  ;;  %v5042_v9 = vld [vmem:[#allocation15_spill] sm:$0xff]  ;;  %v802_v18 = vmul.f32 %v2651_v53, %v5045_v35 }
 0x13d   :  { %v580_v57 = vmul.f32 %v2603_v2, %v5039_v30  ;;  %v729_v50 = vmul.f32 %v2636_v61, %v5042_v9  ;;  %v2684_v7 = vld [vmem:[%s5028_s11 + $0x2c8] sm:$0xff] }
 0x13e   :  { %v440_v38 = vadd.f32 %v432_v24, %v366_v19  ;;  %v515_v39 = vadd.f32 %v507_v0, %v441_v36  ;;  %v2683_v24 = vld [vmem:[%s5028_s11 + $0x2c0] sm:$0xff]  ;;  %v877_v0 = vmul.f32 %v2668_v46, %v5046_v58  ;;  %v951_v3 = vmul.f32 %v2684_v7, %v4041_v41  ;;  %v2716_v30 = vld [vmem:[%s5028_s11 + $0x348] sm:$0xff]  ;;  %v2685_v58 = vld [vmem:[%s5028_s11 + $0x2d0] sm:$0xff] }
 0x13f   :  { %v4133_v33 = vpop.permute.xlu1 %1065  ;;  %v1024_v41 = vmul.f32 %v2699_v45, %v4095_v27 }
 0x140   :  { %v4135_v62 = vpop.permute.xlu0 %1060  ;;  %v514_v52 = vadd.f32 %v506_v48, %v440_v38  ;;  %v589_v5 = vadd.f32 %v581_v55, %v515_v39  ;;  %v876_v48 = vmul.f32 %v2667_v11, %v5047_v25  ;;  %v950_v55 = vmul.f32 %v2683_v24, %v4043_v26  ;;  %v2732_v26 = vld [vmem:[%s5028_s11 + $0x388] sm:$0xff] }
 0x141   :  { %v1099_v10 = vmul.f32 %v2716_v30, %v4133_v33 }
 0x142   :  { %v588_v8 = vadd.f32 %v580_v57, %v514_v52  ;;  %v663_v12 = vadd.f32 %v655_v43, %v589_v5  ;;  %v2715_v57 = vld [vmem:[%s5028_s11 + $0x340] sm:$0xff] }
 0x143   :  { %v4153_v49 = vpop.permute.xlu1 %725  ;;  %v2731_v43 = vld [vmem:[%s5028_s11 + $0x380] sm:$0xff]  ;;  %v1098_v53 = vmul.f32 %v2715_v57, %v4135_v62 }
 0x144   :  { %v4155_v60 = vpop.permute.xlu0 %720  ;;  %v662_v13 = vadd.f32 %v654_v29, %v588_v8  ;;  %v737_v28 = vadd.f32 %v729_v50, %v663_v12 }
 0x146   :  { %v736_v19 = vadd.f32 %v728_v17, %v662_v13  ;;  %v811_v36 = vadd.f32 %v803_v23, %v737_v28  ;;  %v2747_v17 = vld [vmem:[%s5028_s11 + $0x3c0] sm:$0xff] }
 0x147   :  { %v4173_v6 = vpop.permute.xlu1 %863 }
 0x148   :  { %v4175_v42 = vpop.permute.xlu0 %858  ;;  %v810_v38 = vadd.f32 %v802_v18, %v736_v19  ;;  %v885_v39 = vadd.f32 %v877_v0, %v811_v36  ;;  %v2686_v19 = vld [vmem:[%s5028_s11 + $0x2d8] sm:$0xff]  ;;  %v952_v36 = vmul.f32 %v2685_v58, %v4119_v21  ;;  %v2733_v21 = vld [vmem:[%s5028_s11 + $0x390] sm:$0xff]  ;;  %v2704_v58 = vld [vmem:[%s5028_s11 + $0x328] sm:$0xff] }
 0x149   :  { %v953_v45 = vmul.f32 %v2686_v19, %v4117_v37  ;;  %v2734_v37 = vld [vmem:[%s5028_s11 + $0x398] sm:$0xff] }
 0x14a   :  { %v884_v52 = vadd.f32 %v876_v48, %v810_v38  ;;  %v959_v59 = vadd.f32 %v951_v3, %v885_v39  ;;  %v2702_v48 = vld [vmem:[%s5028_s11 + $0x318] sm:$0xff]  ;;  %v2717_v3 = vld [vmem:[%s5028_s11 + $0x350] sm:$0xff] }
 0x14b   :  { %v4193_v56 = vpop.permute.xlu1 %1001  ;;  %v2718_v38 = vld [vmem:[%s5028_s11 + $0x358] sm:$0xff] }
 0x14c   :  { %v4195_v47 = vpop.permute.xlu0 %996  ;;  %v958_v29 = vadd.f32 %v950_v55, %v884_v52  ;;  %v1033_v9 = vadd.f32 %v1025_v15, %v959_v59  ;;  %v1027_v57 = vmul.f32 %v2702_v48, %v4193_v56  ;;  %v961_v52 = vadd.f32 %v953_v45, %v4089_v54  ;;  %v2657_v48 = vld [vmem:[%s5028_s11 + $0x270] sm:$0xff] }
 0x14d   :  { %v1026_v39 = vmul.f32 %v2701_v34, %v4195_v47  ;;  %v960_v15 = vadd.f32 %v952_v36, %v4091_v22  ;;  %v2720_v36 = vld [vmem:[%s5028_s11 + $0x368] sm:$0xff] }
 0x14e   :  { %v1032_v32 = vadd.f32 %v1024_v41, %v958_v29  ;;  %v1107_v46 = vadd.f32 %v1099_v10, %v1033_v9  ;;  %v1035_v29 = vadd.f32 %v1027_v57, %v961_v52  ;;  %v2749_v9 = vld [vmem:[%s5028_s11 + $0x3d0] sm:$0xff] }
 0x14f   :  { %v1140_v40 = vpop.permute.xlu1 %1139  ;;  %v1034_v56 = vadd.f32 %v1026_v39, %v960_v15 }
 0x150   :  { %v1135_v4 = vpop.permute.xlu0 %1134  ;;  %v1173_v50 = vmul.f32 %v2732_v26, %v1140_v40  ;;  %v1106_v11 = vadd.f32 %v1098_v53, %v1032_v32  ;;  %v2750_v53 = vld [vmem:[%s5028_s11 + $0x3d8] sm:$0xff] }
 0x151   :  { %v1172_v27 = vmul.f32 %v2731_v43, %v1135_v4 }
 0x152   :  { %v1181_v13 = vadd.f32 %v1173_v50, %v1107_v46  ;;  %v2671_v46 = vld [vmem:[%s5028_s11 + $0x2a0] sm:$0xff] }
 0x153   :  { %v4229_v14 = vpop.permute.xlu1 %799  ;;  %v1180_v62 = vadd.f32 %v1172_v27, %v1106_v11 }
 0x154   :  { %v4231_v2 = vpop.permute.xlu0 %794 }
 0x155   :  { %v808_v52 = vmul.f32 %v2657_v48, %v4231_v2 }
 0x157   :  { %v4249_v61 = vpop.permute.xlu1 %937 }
 0x158   :  { %v4251_v31 = vpop.permute.xlu0 %932 }
 0x15b   :  { %v1076_v5 = vpop.permute.xlu1 %1075 }
 0x15c   :  { %v1071_v8 = vpop.permute.xlu0 %1070  ;;  %v1101_v41 = vmul.f32 %v2718_v38, %v1076_v5  ;;  %v2719_v38 = vld [vmem:[%s5028_s11 + $0x360] sm:$0xff] }
 0x15d   :  { %v1100_v26 = vmul.f32 %v2717_v3, %v1071_v8 }
 0x15e   :  { %v1109_v32 = vadd.f32 %v1101_v41, %v1035_v29 }
 0x15f   :  { %v1214_v12 = vpop.permute.xlu1 %1213  ;;  %v1108_v54 = vadd.f32 %v1100_v26, %v1034_v56 }
 0x160   :  { %v1209_v33 = vpop.permute.xlu0 %1208  ;;  %v1247_v16 = vmul.f32 %v2748_v20, %v1214_v12 }
 0x161   :  { %v1246_v23 = vmul.f32 %v2747_v17, %v1209_v33  ;;  %v2672_v17 = vld [vmem:[%s5028_s11 + $0x2a8] sm:$0xff] }
 0x162   :  { %v1255_v35 = vadd.f32 %v1247_v16, %v1181_v13  ;;  %v2688_v33 = vld [vmem:[%s5028_s11 + $0x2e8] sm:$0xff]  ;;  %v2687_v13 = vld [vmem:[%s5028_s11 + $0x2e0] sm:$0xff] }
 0x163   :  { %v1254_v18 = vadd.f32 %v1246_v23, %v1180_v62  ;;  %v4269_v40 = vpop.permute.xlu1 %873  ;;  %v2642_v23 = vld [vmem:[%s5028_s11 + $0x238] sm:$0xff] }
 0x164   :  { %v4271_v4 = vpop.permute.xlu0 %868  ;;  %v735_v34 = vmul.f32 %v2642_v23, %v4153_v49  ;;  %v2674_v49 = vld [vmem:[%s5028_s11 + $0x2b8] sm:$0xff] }
 0x165   :  { %v2935_v7 = vpack.c.bf16 %v1255_v35, %v1254_v18  ;;  %v2641_v35 = vld [vmem:[%s5028_s11 + $0x230] sm:$0xff]  ;;  %v881_v18 = vmul.f32 %v2672_v17, %v4173_v6  ;;  %v955_v6 = vmul.f32 %v2688_v33, %v4249_v61  ;;  %v883_v56 = vmul.f32 %v2674_v49, %v4269_v40 }
 0x166   :  { %v734_v45 = vmul.f32 %v2641_v35, %v4155_v60  ;;  %v2673_v60 = vld [vmem:[%s5028_s11 + $0x2b0] sm:$0xff]  ;;  %v743_v26 = vadd.f32 %v735_v34, %v4109_v63 }
 0x167   :  { %2936 = vmatprep.subr.bf16.mxu0 %v2935_v7  ;;  %v4273_v24 = vpop.permute.xlu1 %1011  ;;  %v889_v61 = vadd.f32 %v881_v18, %v4113_v51  ;;  %v2736_v51 = vld [vmem:[%s5028_s11 + $0x3a8] sm:$0xff] }
 0x168   :  { %2938 = vmatpush3.bf16.msra.mxu0 %v2935_v7  ;;  %v4275_v28 = vpop.permute.xlu0 %1006  ;;  %v880_v7 = vmul.f32 %v2671_v46, %v4175_v42  ;;  %v954_v42 = vmul.f32 %v2687_v13, %v4251_v31  ;;  %v1029_v39 = vmul.f32 %v2704_v58, %v4273_v24  ;;  %v2690_v24 = vld [vmem:[%s5028_s11 + $0x2f8] sm:$0xff]  ;;  %v742_v29 = vadd.f32 %v734_v45, %v4111_v1 }
 0x169   :  { %v963_v15 = vadd.f32 %v955_v6, %v889_v61  ;;  %v2753_v61 = vld [vmem:[%s5028_s11 + $0x3f0] sm:$0xff] }
 0x16a   :  { %v888_v31 = vadd.f32 %v880_v7, %v4115_v44  ;;  %v2735_v44 = vld [vmem:[%s5028_s11 + $0x3a0] sm:$0xff]  ;;  %v816_v1 = vadd.f32 %v808_v52, %v742_v29 }
 0x16b   :  { %v1150_v0 = vpop.permute.xlu1 %1149 }
 0x16c   :  { %v1145_v25 = vpop.permute.xlu0 %1144  ;;  %v1175_v10 = vmul.f32 %v2734_v37, %v1150_v0  ;;  %v2703_v0 = vld [vmem:[%s5028_s11 + $0x320] sm:$0xff]  ;;  %v962_v41 = vadd.f32 %v954_v42, %v888_v31 }
 0x16d   :  { %v1174_v47 = vmul.f32 %v2733_v21, %v1145_v25  ;;  %v2658_v25 = vld [vmem:[%s5028_s11 + $0x278] sm:$0xff]  ;;  %v1028_v37 = vmul.f32 %v2703_v0, %v4275_v28 }
 0x16e   :  { %v1183_v5 = vadd.f32 %v1175_v10, %v1109_v32  ;;  %v809_v21 = vmul.f32 %v2658_v25, %v4229_v14  ;;  %v2689_v14 = vld [vmem:[%s5028_s11 + $0x2f0] sm:$0xff]  ;;  %v882_v10 = vmul.f32 %v2673_v60, %v4271_v4 }
 0x16f   :  { %v4297_v55 = vpop.permute.xlu1 %947  ;;  %v1182_v8 = vadd.f32 %v1174_v47, %v1108_v54  ;;  %v1036_v32 = vadd.f32 %v1028_v37, %v962_v41  ;;  %v2706_v54 = vld [vmem:[%s5028_s11 + $0x338] sm:$0xff] }
 0x170   :  { %v4299_v30 = vpop.permute.xlu0 %942  ;;  %v957_v40 = vmul.f32 %v2690_v24, %v4297_v55  ;;  %v890_v17 = vadd.f32 %v882_v10, %v816_v1  ;;  %v2722_v55 = vld [vmem:[%s5028_s11 + $0x378] sm:$0xff]  ;;  %v1263_v24 = vld [vmem:[%s5032_s1 + $0x8] sm:$0xff]  ;;  %v1414_v10 = vld [vmem:[%s5048_s9 + $0x10] sm:$0xff] }
 0x171   :  { %v956_v4 = vmul.f32 %v2689_v14, %v4299_v30  ;;  %v2721_v30 = vld [vmem:[%s5028_s11 + $0x370] sm:$0xff] }
 0x172   :  { %v1264_v14 = vld [vmem:[%s5032_s1 + $0x10] sm:$0xff] }
 0x173   :  { %v1086_v43 = vpop.permute.xlu1 %1085 }
 0x174   :  { %v1081_v59 = vpop.permute.xlu0 %1080  ;;  %v1103_v28 = vmul.f32 %v2720_v36, %v1086_v43  ;;  %v2705_v43 = vld [vmem:[%s5028_s11 + $0x330] sm:$0xff] }
 0x175   :  { %v1102_v2 = vmul.f32 %v2719_v38, %v1081_v59 }
 0x177   :  { %v1224_v50 = vpop.permute.xlu1 %1223 }
 0x178   :  { %v1219_v22 = vpop.permute.xlu0 %1218  ;;  %v1249_v27 = vmul.f32 %v2750_v53, %v1224_v50  ;;  %v817_v50 = vadd.f32 %v809_v21, %v743_v26  ;;  %v1415_v26 = vld [vmem:[%s5048_s9 + $0x18] sm:$0xff] }
 0x179   :  { %v1248_v20 = vmul.f32 %v2749_v9, %v1219_v22  ;;  %v1037_v9 = vadd.f32 %v1029_v39, %v963_v15  ;;  %v2752_v22 = vld [vmem:[%s5028_s11 + $0x3e8] sm:$0xff] }
 0x17a   :  { %v1257_v11 = vadd.f32 %v1249_v27, %v1183_v5  ;;  %v2751_v5 = vld [vmem:[%s5028_s11 + $0x3e0] sm:$0xff]  ;;  %v1110_v27 = vadd.f32 %v1102_v2, %v1036_v32  ;;  %v1413_v2 = vld [vmem:[%s5048_s9 + $0x8] sm:$0xff] }
 0x17b   :  { %v1256_v12 = vadd.f32 %v1248_v20, %v1182_v8  ;;  %v1022_v62 = vpop.permute.xlu1 %1021  ;;  %v1111_v8 = vadd.f32 %v1103_v28, %v1037_v9  ;;  %v891_v20 = vadd.f32 %v883_v56, %v817_v50  ;;  %v1265_v28 = vld [vmem:[%s5032_s1 + $0x18] sm:$0xff]  ;;  %v2951_v29 = vpack.c.bf16 %v1415_v26, %v1413_v2  ;;  %v1412_v56 = vld [vmem:[%s5048_s9] sm:$0xff]  ;;  %s5050_s1 = sld [smem:[#allocation26_spill]] }
 0x17c   :  { %v1017_v16 = vpop.permute.xlu0 %1016  ;;  %v1031_v46 = vmul.f32 %v2706_v54, %v1022_v62  ;;  %v2738_v62 = vld [vmem:[%s5028_s11 + $0x3b8] sm:$0xff]  ;;  %v1416_v54 = vld [vmem:[%s5048_s9 + $0x20] sm:$0xff] }
 0x17d   :  { %v2939_v19 = vpack.c.bf16 %v1257_v11, %v1256_v12  ;;  %v1030_v11 = vmul.f32 %v2705_v43, %v1017_v16  ;;  %v965_v7 = vadd.f32 %v957_v40, %v891_v20  ;;  %v2737_v16 = vld [vmem:[%s5028_s11 + $0x3b0] sm:$0xff]  ;;  %2952 = vmatprep.subr.bf16.mxu1 %v2951_v29  ;;  %v1419_v9 = vld [vmem:[%s5048_s9 + $0x38] sm:$0xff]  ;;  %v1420_v40 = vld [vmem:[%s5048_s9 + $0x40] sm:$0xff] }
 0x17e   :  { %v1418_v43 = vld [vmem:[%s5048_s9 + $0x30] sm:$0xff]  ;;  %v1423_v50 = vld [vmem:[%s5048_s9 + $0x58] sm:$0xff]  ;;  %v1625_v29 = vld [vmem:[%s5049_s2 + $0x20] sm:$0xff] }
 0x17f   :  { %2940 = vmatprep.subr.bf16.mxu0 %v2939_v19  ;;  %v1160_v3 = vpop.permute.xlu1 %1159  ;;  %v1039_v6 = vadd.f32 %v1031_v46, %v965_v7  ;;  %v1426_v20 = vld [vmem:[%s5048_s9 + $0x70] sm:$0xff] }
 0x180   :  { %2942 = vmatpush3.bf16.msra.mxu0 %v2939_v19  ;;  %v1155_v57 = vpop.permute.xlu0 %1154  ;;  %v1177_v59 = vmul.f32 %v2736_v51, %v1160_v3  ;;  %v964_v19 = vadd.f32 %v956_v4, %v890_v17  ;;  %v1422_v4 = vld [vmem:[%s5048_s9 + $0x50] sm:$0xff]  ;;  %v3182_v17 = vmov 0.0  }
 0x181   :  { %v1176_v63 = vmul.f32 %v2735_v44, %v1155_v57  ;;  %v2754_v57 = vld [vmem:[%s5028_s11 + $0x3f8] sm:$0xff]  ;;  %1504 = vmatprep.mubr.f32.mxu1 %v3182_v17  ;;  %s5051_s11 = sld [smem:[#allocation27_spill]] }
 0x182   :  { %v1185_v13 = vadd.f32 %v1177_v59, %v1111_v8  ;;  %v1038_v45 = vadd.f32 %v1030_v11, %v964_v19  ;;  %v2957_v59 = vpack.c.bf16 %v1418_v43, %v1416_v54  ;;  %v1427_v8 = vld [vmem:[%s5048_s9 + $0x78] sm:$0xff]  ;;  %v1631_v54 = vld [vmem:[%s5049_s2 + $0x50] sm:$0xff]  ;;  %v1634_v43 = vld [vmem:[%s5049_s2 + $0x68] sm:$0xff] }
 0x183   :  { %v1096_v47 = vpop.permute.xlu1 %1095  ;;  %v1184_v23 = vadd.f32 %v1176_v63, %v1110_v27  ;;  %v1421_v63 = vld [vmem:[%s5048_s9 + $0x48] sm:$0xff]  ;;  %v1424_v27 = vld [vmem:[%s5048_s9 + $0x60] sm:$0xff] }
 0x184   :  { %v1091_v53 = vpop.permute.xlu0 %1090  ;;  %v1105_v58 = vmul.f32 %v2722_v55, %v1096_v47  ;;  %v2953_v47 = vpack.c.bf16 %v1414_v10, %v1412_v56  ;;  %v2959_v1 = vpack.c.bf16 %v1423_v50, %v1421_v63  ;;  %v2965_v11 = vpack.c.bf16 %v1426_v20, %v1424_v27  ;;  %v1627_v56 = vld [vmem:[%s5049_s2 + $0x30] sm:$0xff]  ;;  %v1630_v10 = vld [vmem:[%s5049_s2 + $0x48] sm:$0xff]  ;;  %v1637_v27 = vld [vmem:[%s5049_s2 + $0x80] sm:$0xff] }
 0x185   :  { %v1104_v0 = vmul.f32 %v2721_v30, %v1091_v53  ;;  %v1417_v53 = vld [vmem:[%s5048_s9 + $0x28] sm:$0xff]  ;;  %v1639_v20 = vld [vmem:[%s5049_s2 + $0x90] sm:$0xff] }
 0x186   :  { %v1113_v31 = vadd.f32 %v1105_v58, %v1039_v6  ;;  %2954 = vmatpush1.bf16.msra.mxu1 %v2953_v47  ;;  %v2955_v32 = vpack.c.bf16 %v1419_v9, %v1417_v53  ;;  %v1632_v47 = vld [vmem:[%s5049_s2 + $0x58] sm:$0xff]  ;;  %v2981_v53 = vpack.c.bf16 %v1627_v56, %v1625_v29 }
 0x187   :  { %v1234_v12 = vpop.permute.xlu1 %1233  ;;  %v1112_v49 = vadd.f32 %v1104_v0, %v1038_v45  ;;  %v2983_v9 = vpack.c.bf16 %v1632_v47, %v1630_v10  ;;  %v1672_v29 = vld [vmem:[%s5049_s2 + $0x198] sm:$0xff]  ;;  %v1669_v47 = vld [vmem:[%s5049_s2 + $0x180] sm:$0xff] }
 0x188   :  { %v1229_v33 = vpop.permute.xlu0 %1228  ;;  %v1251_v35 = vmul.f32 %v2752_v22, %v1234_v12  ;;  %2956 = vmatprep.subr.bf16.mxu1 %v2955_v32  ;;  %v1425_v22 = vld [vmem:[%s5048_s9 + $0x68] sm:$0xff]  ;;  %v1629_v32 = vld [vmem:[%s5049_s2 + $0x40] sm:$0xff]  ;;  %s5052_s9 = sld [smem:[#allocation30_spill]] }
 0x189   :  { %v1250_v18 = vmul.f32 %v2751_v5, %v1229_v33  ;;  %v2961_v5 = vpack.c.bf16 %v1422_v4, %v1420_v40  ;;  %v2963_v46 = vpack.c.bf16 %v1427_v8, %v1425_v22  ;;  %v2985_v63 = vpack.c.bf16 %v1631_v54, %v1629_v32  ;;  %v1635_v40 = vld [vmem:[%s5049_s2 + $0x70] sm:$0xff]  ;;  %v1638_v4 = vld [vmem:[%s5049_s2 + $0x88] sm:$0xff]  ;;  %v1640_v22 = vld [vmem:[%s5049_s2 + $0x98] sm:$0xff] }
 0x18a   :  { %v1259_v25 = vadd.f32 %v1251_v35, %v1185_v13  ;;  %2958 = vmatpush1.bf16.msra.mxu1 %v2957_v59  ;;  %v1636_v59 = vld [vmem:[%s5049_s2 + $0x78] sm:$0xff]  ;;  %v2991_v8 = vpack.c.bf16 %v1640_v22, %v1638_v4  ;;  %v1677_v22 = vld [vmem:[%s5049_s2 + $0x1c0] sm:$0xff] }
 0x18b   :  { %v1258_v48 = vadd.f32 %v1250_v18, %v1184_v23  ;;  %v1170_v42 = vpop.permute.xlu1 %1169  ;;  %2960 = vmatprep.subr.bf16.mxu1 %v2959_v1  ;;  %v2987_v50 = vpack.c.bf16 %v1636_v59, %v1634_v43  ;;  %v1633_v1 = vld [vmem:[%s5049_s2 + $0x60] sm:$0xff]  ;;  %v1676_v32 = vld [vmem:[%s5049_s2 + $0x1b8] sm:$0xff] }
 0x18c   :  { %v1165_v34 = vpop.permute.xlu0 %1164  ;;  %v1179_v36 = vmul.f32 %v2738_v62, %v1170_v42  ;;  %v1673_v59 = vld [vmem:[%s5049_s2 + $0x1a0] sm:$0xff] }
 0x18d   :  { %v1178_v38 = vmul.f32 %v2737_v16, %v1165_v34  ;;  %v2943_v3 = vpack.c.bf16 %v1259_v25, %v1258_v48 }
 0x18e   :  { %v1187_v37 = vadd.f32 %v1179_v36, %v1113_v31  ;;  %2962 = vmatpush1.bf16.msra.mxu1 %v2961_v5  ;;  %v2989_v5 = vpack.c.bf16 %v1635_v40, %v1633_v1  ;;  %v1680_v1 = vld [vmem:[%s5049_s2 + $0x1d8] sm:$0xff] }
 0x18f   :  { %2944 = vmatprep.subr.bf16.mxu0 %v2943_v3  ;;  %v1244_v60 = vpop.permute.xlu1 %1243  ;;  %v1186_v21 = vadd.f32 %v1178_v38, %v1112_v49  ;;  %2964 = vmatprep.subr.bf16.mxu1 %v2963_v46  ;;  %v1642_v46 = vld [vmem:[%s5049_s2 + $0xa8] sm:$0xff] }
 0x190   :  { %2946 = vmatpush3.bf16.msra.mxu0 %v2943_v3  ;;  %v1239_v39 = vpop.permute.xlu0 %1238  ;;  %v1253_v52 = vmul.f32 %v2754_v57, %v1244_v60 }
 0x191   :  { %v1252_v51 = vmul.f32 %v2753_v61, %v1239_v39 }
 0x192   :  { %v1261_v44 = vadd.f32 %v1253_v52, %v1187_v37  ;;  %2966 = vmatpush1.bf16.msra.mxu1 %v2965_v11  ;;  %v1644_v11 = vld [vmem:[%s5049_s2 + $0xb8] sm:$0xff] }
 0x193   :  { %v1260_v15 = vadd.f32 %v1252_v51, %v1186_v21  ;;  %v1278_v55 = vpop.permute.xlu1 %1277  ;;  %v1622_v51 = vld [vmem:[%s5049_s2 + $0x8] sm:$0xff] }
 0x194   :  { %v1273_v30 = vpop.permute.xlu0 %1272 }
 0x195   :  { %v2947_v41 = vpack.c.bf16 %v1261_v44, %v1260_v15  ;;  %v1624_v44 = vld [vmem:[%s5049_s2 + $0x18] sm:$0xff]  ;;  %v1621_v15 = vld [vmem:[%s5049_s2] sm:$0xff] }
 0x197   :  { %2948 = vmatprep.subr.bf16.mxu0 %v2947_v41  ;;  %v1288_v18 = vpop.permute.xlu1 %1287 }
 0x198   :  { %2950 = vmatpush3.bf16.msra.mxu0 %v2947_v41  ;;  %v1283_v62 = vpop.permute.xlu0 %1282  ;;  %v2975_v41 = vpack.c.bf16 %v1624_v44, %v1622_v51  ;;  %v1661_v51 = vld [vmem:[%s5049_s2 + $0x140] sm:$0xff]  ;;  %v1663_v44 = vld [vmem:[%s5049_s2 + $0x150] sm:$0xff] }
 0x19a   :  { %2976 = vmatprep.subr.bf16.mxu1 %v2975_v41  ;;  %v1668_v41 = vld [vmem:[%s5049_s2 + $0x178] sm:$0xff] }
 0x19b   :  { %2875 = vmatmul.mubr.msk.f32.vlgmr.msra.gmra.mrb[0].mxu0 %vm1290_vm0, %v1263_v24  ;;  %v1623_v24 = vld [vmem:[%s5049_s2 + $0x10] sm:$0xff] }
 0x19c   :  { %2877 = vmatprep.mubr.msk.f32.mxu0 %vm1290_vm0, %v1264_v14  ;;  %v1626_v14 = vld [vmem:[%s5049_s2 + $0x28] sm:$0xff]  ;;  %v2977_v2 = vpack.c.bf16 %v1623_v24, %v1621_v15  ;;  %v3017_v24 = vpack.c.bf16 %v1663_v44, %v1661_v51  ;;  %v1780_v44 = vld [vmem:[%s5052_s9] sm:$0xff] }
 0x19d   :  { %v1666_v15 = vld [vmem:[%s5049_s2 + $0x168] sm:$0xff] }
 0x19e   :  { %v1797_v51 = vld [vmem:[%s5052_s9 + $0x88] sm:$0xff] }
 0x19f   :  { %2878 = vmatmul.mubr.msk.f32.gmra.mrb[2].mxu0 %vm1290_vm0, %v1265_v28  ;;  %v1628_v28 = vld [vmem:[%s5049_s2 + $0x38] sm:$0xff] }
 0x1a0   :  { %1614 = vmatprep.mubr.f32.mxu0 %v3182_v17  ;;  %v2979_v26 = vpack.c.bf16 %v1628_v28, %v1626_v14  ;;  %v3019_v14 = vpack.c.bf16 %v1668_v41, %v1666_v15  ;;  %v1665_v28 = vld [vmem:[%s5049_s2 + $0x160] sm:$0xff]  ;;  %v1781_v41 = vld [vmem:[%s5052_s9 + $0x8] sm:$0xff] }
 0x26e   :  { %v2876_v12 = vpop.f32.mrb[0].mxu0 }
 0x26f   :  { %v1375_v33 = vadd.f32 %v2876_v12, %v1278_v55  ;;  %v1369_v13 = vpop.f32.mrb[1].mxu0  ;;  %v2993_v55 = vpack.c.bf16 %v1639_v20, %v1637_v27  ;;  %v1641_v12 = vld [vmem:[%s5049_s2 + $0xa0] sm:$0xff]  ;;  %v1684_v27 = vld [vmem:[%s5049_s2 + $0x1f8] sm:$0xff] }
 0x270   :  { %v1370_v23 = vadd.f32 %v1369_v13, %v1273_v30  ;;  %v2995_v30 = vpack.c.bf16 %v1644_v11, %v1642_v46  ;;  %v1646_v13 = vld [vmem:[%s5049_s2 + $0xc8] sm:$0xff] }
 0x271   :  { %v1393_v35 = vmin.f32 %v1375_v33, 0.0  ;;  %vm1389_vm2 = vcmp.gt.f32.partialorder %v1375_v33, 0.0 }
 0x272   :  { %v1392_v7 = vmin.f32 %v1370_v23, 0.0  ;;  %v2879_v19 = vpop.f32.mrb[2].mxu0  ;;  %vm1388_vm1 = vcmp.gt.f32.partialorder %v1370_v23, 0.0 }
 0x273   :  { %v1398_v16 = vmul.f32 1.442695, %v1393_v35  ;;  %v1385_v58 = vadd.f32 %v2879_v19, %v1288_v18  ;;  %v1379_v0 = vpop.f32.mrb[3].mxu0  ;;  %v1647_v19 = vld [vmem:[%s5049_s2 + $0xd0] sm:$0xff] }
 0x274   :  { %v1396_v25 = vmul.f32 1.442695, %v1392_v7  ;;  %v1380_v48 = vadd.f32 %v1379_v0, %v1283_v62  ;;  %v1645_v7 = vld [vmem:[%s5049_s2 + $0xc0] sm:$0xff]  ;;  %v1650_v62 = vld [vmem:[%s5049_s2 + $0xe8] sm:$0xff] }
 0x275   :  { %3111 = vpow2.f32 %v1398_v16  ;;  %v1395_v6 = vmin.f32 %v1385_v58, 0.0  ;;  %vm1391_vm4 = vcmp.gt.f32.partialorder %v1385_v58, 0.0  ;;  %v1652_v16 = vld [vmem:[%s5049_s2 + $0xf8] sm:$0xff] }
 0x276   :  { %3113 = vpow2.f32 %v1396_v25  ;;  %v1394_v42 = vmin.f32 %v1380_v48, 0.0  ;;  %vm1390_vm3 = vcmp.gt.f32.partialorder %v1380_v48, 0.0  ;;  %v3003_v0 = vpack.c.bf16 %v1652_v16, %v1650_v62  ;;  %v1649_v25 = vld [vmem:[%s5049_s2 + $0xe0] sm:$0xff] }
 0x277   :  { %v1402_v45 = vmul.f32 1.442695, %v1395_v6  ;;  %v1654_v6 = vld [vmem:[%s5049_s2 + $0x108] sm:$0xff] }
 0x278   :  { %v1400_v34 = vmul.f32 1.442695, %v1394_v42  ;;  %v1656_v42 = vld [vmem:[%s5049_s2 + $0x118] sm:$0xff] }
 0x27a   :  { %3115 = vpow2.f32 %v1400_v34 }
 0x27b   :  { %3117 = vpow2.f32 %v1402_v45  ;;  %v3007_v45 = vpack.c.bf16 %v1656_v42, %v1654_v6  ;;  %v1536_v6 = vld [vmem:[%s5050_s1 + $0x30] sm:$0xff]  ;;  %v1535_v42 = vld [vmem:[%s5050_s1 + $0x28] sm:$0xff] }
 0x27f   :  { %v3112_v36 = vpop.eup %3111 }
 0x280   :  { %v3114_v38 = vpop.eup %3113  ;;  %v2760_v61 = vadd.f32 -1.0, %v3112_v36  ;;  %v1653_v36 = vld [vmem:[%s5049_s2 + $0x100] sm:$0xff] }
 0x281   :  { %v2759_v3 = vadd.f32 -1.0, %v3114_v38  ;;  %v1655_v38 = vld [vmem:[%s5049_s2 + $0x110] sm:$0xff] }
 0x282   :  { %v1409_v49 = vsel %vm1389_vm2, %v1375_v33, %v2760_v61  ;;  %v1643_v33 = vld [vmem:[%s5049_s2 + $0xb0] sm:$0xff]  ;;  %v3009_v61 = vpack.c.bf16 %v1655_v38, %v1653_v36 }
 0x283   :  { %v1408_v57 = vsel %vm1388_vm1, %v1370_v23, %v2759_v3  ;;  %v1648_v23 = vld [vmem:[%s5049_s2 + $0xd8] sm:$0xff]  ;;  %v2997_v35 = vpack.c.bf16 %v1643_v33, %v1641_v12  ;;  %v1658_v3 = vld [vmem:[%s5049_s2 + $0x128] sm:$0xff]  ;;  %v1532_v12 = vld [vmem:[%s5050_s1 + $0x10] sm:$0xff] }
 0x284   :  { %v3116_v31 = vpop.eup %3115  ;;  %2763 = vmatmul.mubr.msk.f32.vlgmr.msra.gmra.mrb[0].mxu1 %vm1290_vm0, %v1408_v57  ;;  %v2999_v18 = vpack.c.bf16 %v1648_v23, %v1646_v13  ;;  %v1660_v57 = vld [vmem:[%s5049_s2 + $0x138] sm:$0xff]  ;;  %v1531_v33 = vld [vmem:[%s5050_s1 + $0x8] sm:$0xff] }
 0x285   :  { %1510 = vmatprep.mubr.f32.mxu1 %v3182_v17  ;;  %v2761_v60 = vadd.f32 -1.0, %v3116_v31  ;;  %v3118_v39 = vpop.eup %3117  ;;  %2978 = vmatpush1.bf16.msra.mxu1 %v2977_v2  ;;  %v3011_v31 = vpack.c.bf16 %v1660_v57, %v1658_v3  ;;  %v1667_v2 = vld [vmem:[%s5049_s2 + $0x170] sm:$0xff]  ;;  %v1533_v13 = vld [vmem:[%s5050_s1 + $0x18] sm:$0xff] }
 0x286   :  { %v2762_v21 = vadd.f32 -1.0, %v3118_v39  ;;  %2980 = vmatprep.subr.bf16.mxu1 %v2979_v26  ;;  %v1662_v39 = vld [vmem:[%s5049_s2 + $0x148] sm:$0xff]  ;;  %v3021_v56 = vpack.c.bf16 %v1667_v2, %v1665_v28  ;;  %v3041_v28 = vpack.c.bf16 %v1781_v41, %v1780_v44 }
 0x287   :  { %v1410_v37 = vsel %vm1390_vm3, %v1380_v48, %v2761_v60  ;;  %v1651_v48 = vld [vmem:[%s5049_s2 + $0xf0] sm:$0xff]  ;;  %v1670_v26 = vld [vmem:[%s5049_s2 + $0x188] sm:$0xff] }
 0x288   :  { %2764 = vmatmul.mubr.msk.f32.gmra.mrb[2].mxu1 %vm1290_vm0, %v1409_v49  ;;  %v1411_v52 = vsel %vm1391_vm4, %v1385_v58, %v2762_v21  ;;  %v3001_v58 = vpack.c.bf16 %v1647_v19, %v1645_v7  ;;  %v3005_v34 = vpack.c.bf16 %v1651_v48, %v1649_v25  ;;  %v1657_v49 = vld [vmem:[%s5049_s2 + $0x120] sm:$0xff]  ;;  %v1659_v60 = vld [vmem:[%s5049_s2 + $0x130] sm:$0xff]  ;;  %v3023_v10 = vpack.c.bf16 %v1672_v29, %v1670_v26  ;;  %v1783_v29 = vld [vmem:[%s5052_s9 + $0x18] sm:$0xff] }
 0x289   :  { %1516 = vmatprep.mubr.f32.mxu1 %v3182_v17  ;;  %2982 = vmatpush1.bf16.msra.mxu1 %v2981_v53  ;;  %v3013_v21 = vpack.c.bf16 %v1659_v60, %v1657_v49  ;;  %v1671_v53 = vld [vmem:[%s5049_s2 + $0x190] sm:$0xff]  ;;  %v1534_v48 = vld [vmem:[%s5050_s1 + $0x20] sm:$0xff] }
 0x28a   :  { %2984 = vmatprep.subr.bf16.mxu1 %v2983_v9  ;;  %v1674_v9 = vld [vmem:[%s5049_s2 + $0x1a8] sm:$0xff]  ;;  %v3025_v54 = vpack.c.bf16 %v1671_v53, %v1669_v47  ;;  %v1529_v60 = vld [vmem:[%s5051_s11] sm:$0x3]  ;;  %v1782_v26 = vld [vmem:[%s5052_s9 + $0x10] sm:$0xff] }
 0x28b   :  { %v3027_v43 = vpack.c.bf16 %v1676_v32, %v1674_v9  ;;  %v3045_v47 = vpack.c.bf16 %v1783_v29, %v1782_v26 }
 0x28c   :  { %2765 = vmatmul.mubr.msk.f32.gmra.mrb[4].mxu1 %vm1290_vm0, %v1410_v37  ;;  %v1664_v37 = vld [vmem:[%s5049_s2 + $0x158] sm:$0xff] }
 0x28d   :  { %1522 = vmatprep.mubr.f32.mxu1 %v3182_v17  ;;  %2986 = vmatpush1.bf16.msra.mxu1 %v2985_v63  ;;  %v1675_v63 = vld [vmem:[%s5049_s2 + $0x1b0] sm:$0xff] }
 0x28e   :  { %2988 = vmatprep.subr.bf16.mxu1 %v2987_v50  ;;  %v1678_v50 = vld [vmem:[%s5049_s2 + $0x1c8] sm:$0xff]  ;;  %v3029_v40 = vpack.c.bf16 %v1675_v63, %v1673_v59  ;;  %v1802_v63 = vld [vmem:[%s5052_s9 + $0xb0] sm:$0xff] }
 0x28f   :  { %v3031_v4 = vpack.c.bf16 %v1680_v1, %v1678_v50  ;;  %v1803_v50 = vld [vmem:[%s5052_s9 + $0xb8] sm:$0xff] }
 0x290   :  { %2766 = vmatmul.mubr.msk.f32.gmra.mrb[6].mxu1 %vm1290_vm0, %v1411_v52  ;;  %v3015_v52 = vpack.c.bf16 %v1664_v37, %v1662_v39  ;;  %v1681_v39 = vld [vmem:[%s5049_s2 + $0x1e0] sm:$0xff]  ;;  %v1683_v37 = vld [vmem:[%s5049_s2 + $0x1f0] sm:$0xff]  ;;  %v3051_v1 = vpack.c.bf16 %v1803_v50, %v1802_v63 }
 0x291   :  { %2990 = vmatpush1.bf16.msra.mxu1 %v2989_v5  ;;  %v1679_v5 = vld [vmem:[%s5049_s2 + $0x1d0] sm:$0xff] }
 0x292   :  { %2992 = vmatprep.subr.bf16.mxu1 %v2991_v8  ;;  %v1682_v8 = vld [vmem:[%s5049_s2 + $0x1e8] sm:$0xff]  ;;  %v3033_v20 = vpack.c.bf16 %v1679_v5, %v1677_v22  ;;  %v1804_v5 = vld [vmem:[%s5052_s9 + $0xc0] sm:$0xff]  ;;  %s5054_s2 = sld [smem:[#allocation31_spill]] }
 0x293   :  { %v3035_v46 = vpack.c.bf16 %v1684_v27, %v1682_v8  ;;  %v1805_v8 = vld [vmem:[%s5052_s9 + $0xc8] sm:$0xff] }
 0x294   :  { %v3055_v27 = vpack.c.bf16 %v1805_v8, %v1804_v5 }
 0x295   :  { %2994 = vmatpush1.bf16.msra.mxu1 %v2993_v55 }
 0x296   :  { %2996 = vmatprep.subr.bf16.mxu1 %v2995_v30  ;;  %v1530_v30 = vld [vmem:[%s5050_s1] sm:$0xff] }
 0x298   :  { %v1884_v41 = vld [vmem:[%s5054_s2] sm:$0xff] }
 0x299   :  { %2998 = vmatpush1.bf16.msra.mxu1 %v2997_v35 }
 0x29a   :  { %3000 = vmatprep.subr.bf16.mxu1 %v2999_v18 }
 0x29d   :  { %3002 = vmatpush1.bf16.msra.mxu1 %v3001_v58 }
 0x29e   :  { %3004 = vmatprep.subr.bf16.mxu1 %v3003_v0 }
 0x2a1   :  { %3006 = vmatpush1.bf16.msra.mxu1 %v3005_v34  ;;  %v1537_v34 = vld [vmem:[%s5050_s1 + $0x38] sm:$0xff] }
 0x2a2   :  { %3008 = vmatprep.subr.bf16.mxu1 %v3007_v45 }
 0x2a5   :  { %3010 = vmatpush1.bf16.msra.mxu1 %v3009_v61 }
 0x2a6   :  { %3012 = vmatprep.subr.bf16.mxu1 %v3011_v31 }
 0x2a9   :  { %3014 = vmatpush1.bf16.msra.mxu1 %v3013_v21  ;;  %v3037_v21 = vpack.c.bf16 %v1683_v37, %v1681_v39 }
 0x2aa   :  { %3016 = vmatprep.subr.bf16.mxu1 %v3015_v52  ;;  %v1796_v52 = vld [vmem:[%s5052_s9 + $0x80] sm:$0xff] }
 0x2ab   :  { %v3039_v15 = vpack.c.bf16 %v1797_v51, %v1796_v52 }
 0x2ad   :  { %3018 = vmatpush1.bf16.msra.mxu1 %v3017_v24  ;;  %v1798_v24 = vld [vmem:[%s5052_s9 + $0x90] sm:$0xff] }
 0x2ae   :  { %3020 = vmatprep.subr.bf16.mxu1 %v3019_v14  ;;  %v1799_v14 = vld [vmem:[%s5052_s9 + $0x98] sm:$0xff] }
 0x2af   :  { %v3043_v2 = vpack.c.bf16 %v1799_v14, %v1798_v24  ;;  %v1885_v24 = vld [vmem:[%s5054_s2 + $0x8] sm:$0xff] }
 0x2b0   :  { %v3072_v26 = vpack.c.bf16 %v1885_v24, %v1884_v41 }
 0x2b1   :  { %3022 = vmatpush1.bf16.msra.mxu1 %v3021_v56  ;;  %v1800_v56 = vld [vmem:[%s5052_s9 + $0xa0] sm:$0xff] }
 0x2b2   :  { %3024 = vmatprep.subr.bf16.mxu1 %v3023_v10  ;;  %v1801_v10 = vld [vmem:[%s5052_s9 + $0xa8] sm:$0xff] }
 0x2b3   :  { %v3047_v53 = vpack.c.bf16 %v1801_v10, %v1800_v56  ;;  %v1886_v10 = vld [vmem:[%s5054_s2 + $0x10] sm:$0xff] }
 0x2b5   :  { %3026 = vmatpush1.bf16.msra.mxu1 %v3025_v54  ;;  %v1784_v54 = vld [vmem:[%s5052_s9 + $0x20] sm:$0xff] }
 0x2b6   :  { %3028 = vmatprep.subr.bf16.mxu1 %v3027_v43  ;;  %v1785_v43 = vld [vmem:[%s5052_s9 + $0x28] sm:$0xff] }
 0x2b7   :  { %v3049_v59 = vpack.c.bf16 %v1785_v43, %v1784_v54  ;;  %v2770_v43 = vld [vmem:[%s5055_s6] ss:$0 sm:$0xff] }
 0x2b9   :  { %3030 = vmatpush1.bf16.msra.mxu1 %v3029_v40  ;;  %v1786_v40 = vld [vmem:[%s5052_s9 + $0x30] sm:$0xff] }
 0x2ba   :  { %3032 = vmatprep.subr.bf16.mxu1 %v3031_v4  ;;  %v1787_v4 = vld [vmem:[%s5052_s9 + $0x38] sm:$0xff] }
 0x2bb   :  { %v3053_v22 = vpack.c.bf16 %v1787_v4, %v1786_v40 }
 0x2bd   :  { %3034 = vmatpush1.bf16.msra.mxu1 %v3033_v20  ;;  %v1788_v20 = vld [vmem:[%s5052_s9 + $0x40] sm:$0xff] }
 0x2be   :  { %3036 = vmatprep.subr.bf16.mxu1 %v3035_v46  ;;  %v1789_v46 = vld [vmem:[%s5052_s9 + $0x48] sm:$0xff] }
 0x2c1   :  { %3038 = vmatpush1.bf16.msra.mxu1 %v3037_v21 }
 0x357   :  { %v1506_v11 = vpop.f32.mrb[0].mxu1 }
 0x358   :  { %v1508_v55 = vpop.f32.mrb[1].mxu1  ;;  %v1538_v35 = vmul.f32 %v1530_v30, %v1506_v11  ;;  %v3057_v11 = vpack.c.bf16 %v1789_v46, %v1788_v20  ;;  %v1807_v30 = vld [vmem:[%s5052_s9 + $0xd8] sm:$0xff] }
 0x359   :  { %v1539_v19 = vmul.f32 %v1531_v33, %v1508_v55  ;;  %v1806_v55 = vld [vmem:[%s5052_s9 + $0xd0] sm:$0xff] }
 0x35a   :  { %v3059_v33 = vpack.c.bf16 %v1807_v30, %v1806_v55 }
 0x35b   :  { %v1512_v23 = vpop.f32.mrb[2].mxu1 }
 0x35c   :  { %v1540_v18 = vmul.f32 %v1532_v12, %v1512_v23  ;;  %v1514_v7 = vpop.f32.mrb[3].mxu1  ;;  %v1790_v12 = vld [vmem:[%s5052_s9 + $0x50] sm:$0xff]  ;;  %v1808_v23 = vld [vmem:[%s5052_s9 + $0xe0] sm:$0xff] }
 0x35d   :  { %v1541_v62 = vmul.f32 %v1533_v13, %v1514_v7  ;;  %v1791_v13 = vld [vmem:[%s5052_s9 + $0x58] sm:$0xff] }
 0x35e   :  { %v2969_v16 = vpack.c.bf16 %v1540_v18, %v1538_v35  ;;  %v1809_v35 = vld [vmem:[%s5052_s9 + $0xe8] sm:$0xff]  ;;  %v3061_v18 = vpack.c.bf16 %v1791_v13, %v1790_v12 }
 0x35f   :  { %v2967_v58 = vpack.c.bf16 %v1541_v62, %v1539_v19  ;;  %v1518_v0 = vpop.f32.mrb[4].mxu1  ;;  %v3063_v7 = vpack.c.bf16 %v1809_v35, %v1808_v23  ;;  %v1792_v19 = vld [vmem:[%s5052_s9 + $0x60] sm:$0xff]  ;;  %v1793_v62 = vld [vmem:[%s5052_s9 + $0x68] sm:$0xff] }
 0x360   :  { %v1520_v25 = vpop.f32.mrb[5].mxu1  ;;  %v1542_v36 = vmul.f32 %v1534_v48, %v1518_v0  ;;  %v3065_v0 = vpack.c.bf16 %v1793_v62, %v1792_v19  ;;  %v1794_v48 = vld [vmem:[%s5052_s9 + $0x70] sm:$0xff]  ;;  %v2773_v62 = vld [vmem:[%s4978_s13] ss:$0 sm:$0xff] }
 0x361   :  { %2968 = vmatprep.subr.bf16.mxu0 %v2967_v58  ;;  %v1543_v57 = vmul.f32 %v1535_v42, %v1520_v25  ;;  %v1811_v58 = vld [vmem:[%s5052_s9 + $0xf8] sm:$0xff] }
 0x362   :  { %2970 = vmatpush1.bf16.msra.mxu0 %v2969_v16  ;;  %v1810_v16 = vld [vmem:[%s5052_s9 + $0xf0] sm:$0xff] }
 0x363   :  { %v1524_v45 = vpop.f32.mrb[6].mxu1  ;;  %v3067_v25 = vpack.c.bf16 %v1811_v58, %v1810_v16  ;;  %v2028_v16 = vld [vmem:[%s4979_s14] sm:$0xff]  ;;  %v2029_v58 = vld [vmem:[%s4979_s14 + $0x8] sm:$0xff] }
 0x364   :  { %v1544_v38 = vmul.f32 %v1536_v6, %v1524_v45  ;;  %v1526_v3 = vpop.f32.mrb[7].mxu1  ;;  %v1795_v6 = vld [vmem:[%s5052_s9 + $0x78] sm:$0xff]  ;;  %v1687_v45 = vlaneseq }
 0x365   :  { %v1545_v61 = vmul.f32 %v1537_v34, %v1526_v3  ;;  %v3069_v42 = vpack.c.bf16 %v1795_v6, %v1794_v48  ;;  %v3183_v34 = vmov 0.0|0.0   ;;  %v1685_v3 = vld [vmem:[%s5053_s8] sm:$0x3]  ;;  %v2031_v48 = vld [vmem:[%s4979_s14 + $0x18] sm:$0xff] }
 0x366   :  { %v2973_v31 = vpack.c.bf16 %v1544_v38, %v1542_v36  ;;  %3095 = vmatprep.subr.bf16.mxu1 %v3183_v34  ;;  %v1688_v36 = vshrl.u32 %v1687_v45, 7 }
 0x367   :  { %v2971_v49 = vpack.c.bf16 %v1545_v61, %v1543_v57 }
 0x368   :  { %v1689_v38 = vsub.s32 0, %v1688_v36  ;;  %v1693_v57 = vsub.s32 1, %v1688_v36 }
 0x369   :  { %2972 = vmatprep.subr.bf16.mxu0 %v2971_v49 }
 0x36a   :  { %2974 = vmatpush1.bf16.msra.mxu0 %v2973_v31  ;;  %v1690_v61 = vrot.slane %v1685_v3, %v1689_v38  ;;  %v1694_v31 = vrot.slane %v1685_v3, %v1693_v57 }
 0x36b   :  { %3040 = vmatprep.subr.bf16.mxu0 %v3039_v15 }
 0x36d   :  { %2767 = vmatmul.mubr.msk.f32.vlgmr.msra.gmra.mrb[4].mxu0 %vm1546_vm5, %v1529_v60 }
 0x36e   :  { %3042 = vmatpush3.bf16.msra.mxu0 %v3041_v28 }
 0x36f   :  { %3044 = vmatprep.subr.bf16.mxu0 %v3043_v2 }
 0x372   :  { %3046 = vmatpush3.bf16.msra.mxu0 %v3045_v47  ;;  %v1887_v47 = vld [vmem:[%s5054_s2 + $0x18] sm:$0xff] }
 0x373   :  { %3048 = vmatprep.subr.bf16.mxu0 %v3047_v53  ;;  %v3075_v53 = vpack.c.bf16 %v1887_v47, %v1886_v10 }
 0x376   :  { %3050 = vmatpush3.bf16.msra.mxu0 %v3049_v59 }
 0x377   :  { %3052 = vmatprep.subr.bf16.mxu0 %v3051_v1 }
 0x37a   :  { %3054 = vmatpush3.bf16.msra.mxu0 %v3053_v22 }
 0x37b   :  { %3056 = vmatprep.subr.bf16.mxu0 %v3055_v27 }
 0x37e   :  { %3058 = vmatpush3.bf16.msra.mxu0 %v3057_v11 }
 0x37f   :  { %3060 = vmatprep.subr.bf16.mxu0 %v3059_v33  ;;  %v2772_v33 = vld [vmem:[%s4977_s12] ss:$0 sm:$0xff] }
 0x382   :  { %3062 = vmatpush3.bf16.msra.mxu0 %v3061_v18 }
 0x383   :  { %3064 = vmatprep.subr.bf16.mxu0 %v3063_v7 }
 0x386   :  { %3066 = vmatpush3.bf16.msra.mxu0 %v3065_v0  ;;  %v2030_v0 = vld [vmem:[%s4979_s14 + $0x10] sm:$0xff] }
 0x387   :  { %3068 = vmatprep.subr.bf16.mxu0 %v3067_v25  ;;  %v3078_v25 = vpack.c.bf16 %v2029_v58, %v2028_v16  ;;  %v3081_v6 = vpack.c.bf16 %v2031_v48, %v2030_v0 }
 0x38a   :  { %3070 = vmatpush3.bf16.msra.mxu0 %v3069_v42 }
 0x38b   :  { %3071 = vmatprep.subr.bf16.mxu0 %v3183_v34 }
 0x440   :  { %v1616_v9 = vpop.f32.mrb[4].mxu0 }
 0x441   :  { %v1618_v32 = vpop.f32.mrb[5].mxu0 }
 0x442   :  { %1761 = vmatprep.mubr.f32.mxu1 %v1618_v32 }
 0x443   :  { %1762 = vmatmul.mubr.f32.vlgmr.msra.gmra.mrb[8].mxu1 %v1616_v9 }
 0x444   :  { %2932 = vmatprep.mubr.msk.f32.mxu1 %vm3184_vm8, %v3182_v17 }
 0x516   :  { %v1763_v49 = vpop.f32.mrb[8].mxu1 }
 0x517   :  { %v1764_v60 = vadd.f32 %v1763_v49, %v1690_v61  ;;  %v1765_v39 = vpop.f32.mrb[9].mxu1 }
 0x518   :  { %v1766_v37 = vadd.f32 %v1765_v39, %v1694_v31  ;;  %v2774_v39 = vld [vmem:[%s4980_s15] ss:$0 sm:$0xff] }
 0x519   :  { %v1770_v21 = vmin.f32 %v1764_v60, 0.0  ;;  %vm1768_vm7 = vcmp.gt.f32.partialorder %v1764_v60, 0.0 }
 0x51a   :  { %v1771_v52 = vmin.f32 %v1766_v37, 0.0  ;;  %vm1769_vm6 = vcmp.gt.f32.partialorder %v1766_v37, 0.0 }
 0x51b   :  { %v1772_v51 = vmul.f32 1.442695, %v1770_v21 }
 0x51c   :  { %v1774_v44 = vmul.f32 1.442695, %v1771_v52 }
 0x51d   :  { %3119 = vpow2.f32 %v1772_v51 }
 0x51e   :  { %3121 = vpow2.f32 %v1774_v44 }
 0x527   :  { %v3120_v15 = vpop.eup %3119 }
 0x528   :  { %v3122_v14 = vpop.eup %3121  ;;  %v2768_v28 = vadd.f32 -1.0, %v3120_v15 }
 0x529   :  { %v2769_v2 = vadd.f32 -1.0, %v3122_v14 }
 0x52a   :  { %v1778_v56 = vsel %vm1768_vm7, %v1764_v60, %v2768_v28 }
 0x52b   :  { %v1779_v29 = vsel %vm1769_vm6, %v1766_v37, %v2769_v2 }
 0x52c   :  { %1876 = vmatprep.mubr.f32.mxu0 %v1779_v29 }
 0x52d   :  { %1877 = vmatmul.mubr.f32.vlgmr.msra.gmra.mrb[6].mxu0 %v1778_v56 }
 0x52e   :  { %3073 = vmatpush3.bf16.msra.mxu0 %v3072_v26  ;;  %2888 = vmatprep.mubr.msk.f32.mxu0 %vm3184_vm8, %v3182_v17 }
 0x52f   :  { %3074 = vmatprep.subr.bf16.mxu0 %v3183_v34 }
 0x532   :  { %3076 = vmatpush3.bf16.msra.mxu0 %v3075_v53  ;;  %v2776_v53 = vld [vmem:[%s4981_s16] ss:$0 sm:$0xff] }
 0x533   :  { %3077 = vmatprep.subr.bf16.mxu0 %v3183_v34 }
 0x600   :  { %v2830_v9 = vpop.f32.mrb[6].mxu0 }
 0x601   :  { %v2831_v32 = vpop.f32.mrb[7].mxu0 }
 0x602   :  { %v2832_v54 = vadd.f32 %v2831_v32, %v2830_v9 }
 0x604   :  { %2889 = vmatmul.mubr.msk.f32.vlgmr.msra.gmra.mrb[8].mxu0 %vm1546_vm5, %v2832_v54  ;;  %1883 = vst.msk [vmem:[#allocation3] sm:$0x3] %vm1882_vm9, %v2832_v54 }
 0x605   :  { %2899 = vmatprep.mubr.msk.f32.mxu0 %vm3184_vm8, %v3182_v17  ;;  %3079 = vmatpush3.bf16.msra.mxu0 %v3078_v25 }
 0x606   :  { %3080 = vmatprep.subr.bf16.mxu0 %v3183_v34 }
 0x609   :  { %3082 = vmatpush3.bf16.msra.mxu0 %v3081_v6 }
 0x60a   :  { %3083 = vmatprep.subr.bf16.mxu0 %v3183_v34 }
 0x6d7   :  { %v1964_v59 = vpop.f32.mrb[8].mxu0 }
 0x6d8   :  { %v1965_v63 = vadd.f32 %v2770_v43, %v1964_v59  ;;  %v2890_v50 = vpop.f32.mrb[9].mxu0 }
 0x6d9   :  { %v2777_v50 = vld [vmem:[%s4982_s17] ss:$0 sm:$0xff] }
 0x6da   :  { %3123 = vtanh.f32 %v1965_v63  ;;  %v1968_v40 = vsub.f32 0.0, %v1965_v63 }
 0x6dc   :  { %v1969_v4 = vmul.f32 1.442695, %v1968_v40  ;;  %v2174_v40 = vld [vmem:[%s4983_s18 + $0x8] sm:$0xff] }
 0x6de   :  { %3125 = vpow2.f32 %v1969_v4  ;;  %v2175_v4 = vld [vmem:[%s4983_s18 + $0x10] sm:$0xff] }
 0x6e4   :  { %v3124_v1 = vpop.eup %3123 }
 0x6e5   :  { %1976 = vrot.lane.b32.xlu0 %v3124_v1, %s3185_s3  ;;  %v2173_v1 = vld [vmem:[%s4983_s18] sm:$0xff] }
 0x6e8   :  { %v3126_v22 = vpop.eup %3125 }
 0x6e9   :  { %v1971_v5 = vadd.f32 1.0, %v3126_v22  ;;  %v3084_v22 = vpack.c.bf16 %v2174_v40, %v2173_v1 }
 0x6eb   :  { %3127 = vrcp.f32 %v1971_v5  ;;  %v2176_v5 = vld [vmem:[%s4983_s18 + $0x18] sm:$0xff] }
 0x6f5   :  { %v3128_v8 = vpop.eup %3127 }
 0x757   :  { %v1977_v27 = vpop.permute.xlu0 %1976 }
 0x758   :  { %v1979_v20 = vmul.f32 %v3128_v8, %v1977_v27 }
 0x75a   :  { %3129 = vtanh.f32 %v1979_v20 }
 0x764   :  { %v3130_v46 = vpop.eup %3129 }
 0x765   :  { %1982 = vrot.lane.b32.xlu1 %v3130_v46, %s3186_s7 }
 0x7d7   :  { %v1983_v11 = vpop.permute.xlu1 %1982 }
 0x7d8   :  { %v1985_v55 = vmul.f32 %v3128_v8, %v1983_v11  ;;  %v3087_v8 = vpack.c.bf16 %v2176_v5, %v2175_v4 }
 0x7da   :  { %1989 = vrot.lane.b32.xlu0 %v1985_v55, %s3187_s4 }
 0x84c   :  { %v1990_v30 = vpop.permute.xlu0 %1989 }
 0x84d   :  { %v1992_v12 = vsel %vm1882_vm9, %v1990_v30, 0.0 }
 0x84e   :  { %1993 = vadd.xlane.f32.xlu1 %v1992_v12 }
 0x85f   :  { %2015 = vrot.lane.b32.xlu1 %v2772_v33, %s3186_s7 }
 0x8db   :  { %v1994_v13 = vpop.xlane.xlu1 %1993 }
 0x8dc   :  { %v1996_v23 = vmul.f32 0.03125, %v1994_v13 }
 0x8de   :  { %v1997_v35 = vsub.f32 %v1985_v55, %v1996_v23 }
 0x8df   :  { %v2016_v3 = vpop.permute.xlu1 %2015 }
 0x8e0   :  { %v1998_v18 = vmul.f32 %v1997_v35, %v1997_v35 }
 0x8e2   :  { %2000 = vrot.lane.b32.xlu0 %v1998_v18, %s3187_s4 }
 0x954   :  { %v2001_v7 = vpop.permute.xlu0 %2000 }
 0x955   :  { %v2003_v19 = vsel %vm1882_vm9, %v2001_v7, 0.0 }
 0x956   :  { %2004 = vadd.xlane.f32.xlu0 %v2003_v19 }
 0x96c   :  { %2024 = vrot.lane.b32.xlu0 %v2773_v62, %s3186_s7 }
 0x9e3   :  { %v2005_v42 = vpop.xlane.xlu0 %2004 }
 0x9e4   :  { %v2006_v45 = vmul.f32 0.03125, %v2005_v42 }
 0x9e6   :  { %v2007_v36 = vadd.f32 1e-05, %v2006_v45 }
 0x9e7   :  { %v2025_v61 = vpop.permute.xlu0 %2024 }
 0x9e8   :  { %3131 = vrsqrt.f32 %v2007_v36 }
 0x9f2   :  { %v3132_v38 = vpop.eup %3131 }
 0x9f3   :  { %v2009_v57 = vmul.f32 %v3132_v38, %v1997_v35  ;;  %v2778_v35 = vld [vmem:[%s4984_s19] ss:$0 sm:$0xff] }
 0x9f5   :  { %v2018_v31 = vmul.f32 %v2016_v3, %v2009_v57  ;;  %v2780_v57 = vld [vmem:[%s4985_s20] ss:$0 sm:$0xff] }
 0x9f7   :  { %v2027_v49 = vadd.f32 %v2025_v61, %v2018_v31 }
 0x9f9   :  { %2040 = vrot.lane.b32.xlu1 %v2027_v49, %s3187_s4 }
 0xa6b   :  { %v2041_v60 = vpop.permute.xlu1 %2040 }
 0xa6c   :  { %2900 = vmatmul.mubr.msk.f32.vlgmr.msra.gmra.mrb[10].mxu0 %vm1546_vm5, %v2041_v60 }
 0xa6d   :  { %2910 = vmatprep.mubr.msk.f32.mxu0 %vm3184_vm8, %v3182_v17  ;;  %3085 = vmatpush3.bf16.msra.mxu0 %v3084_v22 }
 0xa6e   :  { %3086 = vmatprep.subr.bf16.mxu0 %v3183_v34 }
 0xa71   :  { %3088 = vmatpush3.bf16.msra.mxu0 %v3087_v8 }
 0xa72   :  { %3089 = vmatprep.subr.bf16.mxu0 %v3183_v34 }
 0xb3f   :  { %v2110_v37 = vpop.f32.mrb[10].mxu0 }
 0xb40   :  { %v2111_v21 = vadd.f32 %v2774_v39, %v2110_v37  ;;  %v2901_v52 = vpop.f32.mrb[11].mxu0 }
 0xb41   :  { %v2318_v52 = vld [vmem:[%s4987_s22] sm:$0xff] }
 0xb42   :  { %3133 = vtanh.f32 %v2111_v21  ;;  %v2114_v44 = vsub.f32 0.0, %v2111_v21  ;;  %v2781_v21 = vld [vmem:[%s4986_s21] ss:$0 sm:$0xff] }
 0xb44   :  { %v2115_v15 = vmul.f32 1.442695, %v2114_v44  ;;  %v2320_v44 = vld [vmem:[%s4987_s22 + $0x10] sm:$0xff] }
 0xb46   :  { %3135 = vpow2.f32 %v2115_v15 }
 0xb4c   :  { %v3134_v51 = vpop.eup %3133 }
 0xb4d   :  { %2122 = vrot.lane.b32.xlu1 %v3134_v51, %s3185_s3  ;;  %v2319_v51 = vld [vmem:[%s4987_s22 + $0x8] sm:$0xff] }
 0xb4e   :  { %v3090_v15 = vpack.c.bf16 %v2319_v51, %v2318_v52 }
 0xb50   :  { %v3136_v41 = vpop.eup %3135 }
 0xb51   :  { %v2117_v24 = vadd.f32 1.0, %v3136_v41  ;;  %v2321_v41 = vld [vmem:[%s4987_s22 + $0x18] sm:$0xff] }
 0xb53   :  { %3137 = vrcp.f32 %v2117_v24  ;;  %v3093_v24 = vpack.c.bf16 %v2321_v41, %v2320_v44 }
 0xb5d   :  { %v3138_v14 = vpop.eup %3137 }
 0xbbf   :  { %v2123_v28 = vpop.permute.xlu1 %2122 }
 0xbc0   :  { %v2125_v2 = vmul.f32 %v3138_v14, %v2123_v28 }
 0xbc2   :  { %3139 = vtanh.f32 %v2125_v2 }
 0xbcc   :  { %v3140_v26 = vpop.eup %3139 }
 0xbcd   :  { %2128 = vrot.lane.b32.xlu0 %v3140_v26, %s3186_s7  ;;  %v2405_v26 = vld [vmem:[%s4989_s24] sm:$0xff] }
 0xc3f   :  { %v2129_v29 = vpop.permute.xlu0 %2128 }
 0xc40   :  { %v2131_v56 = vmul.f32 %v3138_v14, %v2129_v29  ;;  %v2406_v29 = vld [vmem:[%s4989_s24 + $0x8] sm:$0xff] }
 0xc42   :  { %2135 = vrot.lane.b32.xlu1 %v2131_v56, %s3187_s4 }
 0xcb4   :  { %v2136_v10 = vpop.permute.xlu1 %2135 }
 0xcb5   :  { %v2138_v47 = vsel %vm1882_vm9, %v2136_v10, 0.0 }
 0xcb6   :  { %2139 = vadd.xlane.f32.xlu0 %v2138_v47 }
 0xccc   :  { %2160 = vrot.lane.b32.xlu0 %v2776_v53, %s3186_s7 }
 0xd43   :  { %v2140_v9 = vpop.xlane.xlu0 %2139 }
 0xd44   :  { %v2141_v32 = vmul.f32 0.03125, %v2140_v9 }
 0xd46   :  { %v2142_v54 = vsub.f32 %v2131_v56, %v2141_v32  ;;  %v3096_v56 = vpack.c.bf16 %v2406_v29, %v2405_v26 }
 0xd47   :  { %v2161_v55 = vpop.permute.xlu0 %2160 }
 0xd48   :  { %v2143_v43 = vmul.f32 %v2142_v54, %v2142_v54  ;;  %3097 = vmatpush3.bf16.msra.mxu1 %v3096_v56 }
 0xd49   :  { %3098 = vmatprep.subr.bf16.mxu1 %v3183_v34 }
 0xd4a   :  { %2145 = vrot.lane.b32.xlu1 %v2143_v43, %s3187_s4 }
 0xdbc   :  { %v2146_v59 = vpop.permute.xlu1 %2145 }
 0xdbd   :  { %v2148_v63 = vsel %vm1882_vm9, %v2146_v59, 0.0  ;;  %v2407_v59 = vld [vmem:[%s4989_s24 + $0x10] sm:$0xff] }
 0xdbe   :  { %2149 = vadd.xlane.f32.xlu1 %v2148_v63  ;;  %v2408_v63 = vld [vmem:[%s4989_s24 + $0x18] sm:$0xff] }
 0xdcf   :  { %2169 = vrot.lane.b32.xlu1 %v2777_v50, %s3186_s7  ;;  %v2782_v50 = vld [vmem:[%s4988_s23] ss:$0 sm:$0xff] }
 0xe4b   :  { %v2150_v27 = vpop.xlane.xlu1 %2149 }
 0xe4c   :  { %v2151_v20 = vmul.f32 0.03125, %v2150_v27 }
 0xe4e   :  { %v2152_v46 = vadd.f32 1e-05, %v2151_v20 }
 0xe4f   :  { %v2170_v12 = vpop.permute.xlu1 %2169 }
 0xe50   :  { %3141 = vrsqrt.f32 %v2152_v46 }
 0xe5a   :  { %v3142_v11 = vpop.eup %3141 }
 0xe5b   :  { %v2154_v30 = vmul.f32 %v3142_v11, %v2142_v54 }
 0xe5d   :  { %v2163_v33 = vmul.f32 %v2161_v55, %v2154_v30 }
 0xe5f   :  { %v2172_v13 = vadd.f32 %v2170_v12, %v2163_v33 }
 0xe61   :  { %2185 = vrot.lane.b32.xlu0 %v2172_v13, %s3187_s4 }
 0xed3   :  { %v2186_v23 = vpop.permute.xlu0 %2185 }
 0xed4   :  { %2911 = vmatmul.mubr.msk.f32.vlgmr.msra.gmra.mrb[12].mxu0 %vm1546_vm5, %v2186_v23 }
 0xed5   :  { %2921 = vmatprep.mubr.msk.f32.mxu0 %vm3184_vm8, %v3182_v17  ;;  %3091 = vmatpush3.bf16.msra.mxu0 %v3090_v15 }
 0xed6   :  { %3092 = vmatprep.subr.bf16.mxu0 %v3183_v34  ;;  %v3099_v34 = vpack.c.bf16 %v2408_v63, %v2407_v59 }
 0xed8   :  { %3100 = vmatpush3.bf16.msra.mxu1 %v3099_v34 }
 0xed9   :  { %3094 = vmatpush3.bf16.msra.mxu0 %v3093_v24 }
 0xfa7   :  { %v2255_v18 = vpop.f32.mrb[12].mxu0 }
 0xfa8   :  { %v2256_v7 = vadd.f32 %v2778_v35, %v2255_v18  ;;  %v2912_v19 = vpop.f32.mrb[13].mxu0 }
 0xfaa   :  { %3143 = vtanh.f32 %v2256_v7  ;;  %v2259_v16 = vsub.f32 0.0, %v2256_v7 }
 0xfac   :  { %v2260_v58 = vmul.f32 1.442695, %v2259_v16 }
 0xfae   :  { %3145 = vpow2.f32 %v2260_v58 }
 0xfb4   :  { %v3144_v62 = vpop.eup %3143 }
 0xfb5   :  { %2267 = vrot.lane.b32.xlu0 %v3144_v62, %s3185_s3 }
 0xfb8   :  { %v3146_v0 = vpop.eup %3145 }
 0xfb9   :  { %v2262_v25 = vadd.f32 1.0, %v3146_v0 }
 0xfbb   :  { %3147 = vrcp.f32 %v2262_v25 }
 0xfc5   :  { %v3148_v48 = vpop.eup %3147 }
0x1027   :  { %v2268_v6 = vpop.permute.xlu0 %2267 }
0x1028   :  { %v2270_v17 = vmul.f32 %v3148_v48, %v2268_v6 }
0x102a   :  { %3149 = vtanh.f32 %v2270_v17 }
0x1034   :  { %v3150_v42 = vpop.eup %3149 }
0x1035   :  { %2273 = vrot.lane.b32.xlu1 %v3150_v42, %s3186_s7 }
0x10a7   :  { %v2274_v45 = vpop.permute.xlu1 %2273 }
0x10a8   :  { %v2276_v36 = vmul.f32 %v3148_v48, %v2274_v45 }
0x10aa   :  { %2280 = vrot.lane.b32.xlu0 %v2276_v36, %s3187_s4 }
0x111c   :  { %v2281_v38 = vpop.permute.xlu0 %2280 }
0x111d   :  { %v2283_v3 = vsel %vm1882_vm9, %v2281_v38, 0.0 }
0x111e   :  { %2284 = vadd.xlane.f32.xlu1 %v2283_v3 }
0x112f   :  { %2305 = vrot.lane.b32.xlu1 %v2780_v57, %s3186_s7 }
0x11ab   :  { %v2285_v61 = vpop.xlane.xlu1 %2284 }
0x11ac   :  { %v2286_v31 = vmul.f32 0.03125, %v2285_v61 }
0x11ae   :  { %v2287_v49 = vsub.f32 %v2276_v36, %v2286_v31 }
0x11af   :  { %v2306_v47 = vpop.permute.xlu1 %2305 }
0x11b0   :  { %v2288_v60 = vmul.f32 %v2287_v49, %v2287_v49 }
0x11b2   :  { %2290 = vrot.lane.b32.xlu0 %v2288_v60, %s3187_s4 }
0x1224   :  { %v2291_v39 = vpop.permute.xlu0 %2290 }
0x1225   :  { %v2293_v37 = vsel %vm1882_vm9, %v2291_v39, 0.0 }
0x1226   :  { %2294 = vadd.xlane.f32.xlu0 %v2293_v37 }
0x123c   :  { %2314 = vrot.lane.b32.xlu0 %v2781_v21, %s3186_s7 }
0x12b3   :  { %v2295_v14 = vpop.xlane.xlu0 %2294 }
0x12b4   :  { %v2296_v28 = vmul.f32 0.03125, %v2295_v14 }
0x12b6   :  { %v2297_v2 = vadd.f32 1e-05, %v2296_v28 }
0x12b7   :  { %v2315_v9 = vpop.permute.xlu0 %2314 }
0x12b8   :  { %3151 = vrsqrt.f32 %v2297_v2 }
0x12c2   :  { %v3152_v10 = vpop.eup %3151 }
0x12c3   :  { %v2299_v53 = vmul.f32 %v3152_v10, %v2287_v49 }
0x12c5   :  { %v2308_v32 = vmul.f32 %v2306_v47, %v2299_v53 }
0x12c7   :  { %v2317_v54 = vadd.f32 %v2315_v9, %v2308_v32 }
0x12c9   :  { %2330 = vrot.lane.b32.xlu1 %v2317_v54, %s3187_s4  ;;  %s3188_s4 = smov [#allocation3]  }
0x12ca   :  { %s2503_s11 = sshll.u32 %s3188_s4, 4  ;;  %s2504_s11 = int_to_ptr.vmem [resolvable:$true] %s2503_s11 }
0x12cb   :  { %s3157_s28 = scalar_lea.vmem %s2504_s11, 32  ;;  %p3162_p1 = scmp.lt.s32.totalorder %s2504_s11, %s2504_s11 }
0x12cc   :  { %p3158_p0 = scmp.ne.s32.totalorder %s2504_s11, %s3157_s28  ;;  %p3163_p2 = scmp.lt.s32.totalorder %s3157_s28, %s3157_s28 }
0x12ce   :  { %p3164_p3 = por %p3163_p2, %p3162_p1 }
0x12d0   :  { %p3165_p4 = pnand %p3164_p3, %p3158_p0 }
0x133b   :  { %v2331_v43 = vpop.permute.xlu1 %2330 }
0x133c   :  { %2922 = vmatmul.mubr.msk.f32.vlgmr.msra.gmra.mrb[14].mxu0 %vm1546_vm5, %v2331_v43 }
0x140f   :  { %v2400_v1 = vpop.f32.mrb[14].mxu0 }
0x1410   :  { %v2401_v40 = vadd.f32 %v2782_v50, %v2400_v1  ;;  %v2923_v4 = vpop.f32.mrb[15].mxu0 }
0x1412   :  { %v2404_v22 = vmax.f32 %v2401_v40, 0.0 }
0x1414   :  { %2933 = vmatmul.mubr.msk.f32.vlgmr.msra.gmra.mrb[10].mxu1 %vm1546_vm5, %v2404_v22 }
0x1415   :  { %3168 = shalt.err (!%p3165_p4)
}
0x1416   :  { %s3169_s23 = scalar_lea.hbm %s4991_s26, 32 }
0x1417   :  { %p3170_p5 = scmp.ne.s32.totalorder %s4991_s26, %s3169_s23  ;;  %p3173_p6 = scmp.lt.u32.totalorder %s3169_s23, %s4991_s26 }
0x1419   :  { %p3175_p7 = pnand %p3173_p6, %p3170_p5 }
0x141b   :  { %3178 = shalt.err (!%p3175_p7)
}
0x141c   :  { %2506 = dma.vmem_to_hbm [thread:$0]  %s2504_s11, 32, %s4991_s26, [#allocation4]   ;;  %v2784_v5 = vld [vmem:[#allocation2] ss:$0 sm:$0xff]  ;;  %vm2495_vm10 = vcmask 1024  }
0x14e7   :  { %v2485_v8 = vpop.f32.mrb[10].mxu1 }
0x14e8   :  { %v2486_v27 = vadd.f32 %v2784_v5, %v2485_v8  ;;  %v2934_v20 = vpop.f32.mrb[11].mxu1 }
0x14ea   :  { %v2489_v46 = vsub.f32 0.0, %v2486_v27 }
0x14ec   :  { %v2490_v11 = vmul.f32 1.442695, %v2489_v46 }
0x14ee   :  { %3153 = vpow2.f32 %v2490_v11 }
0x14f8   :  { %v3154_v55 = vpop.eup %3153 }
0x14f9   :  { %v2492_v30 = vadd.f32 1.0, %v3154_v55 }
0x14fb   :  { %3155 = vrcp.f32 %v2492_v30 }
0x1505   :  { %v3156_v12 = vpop.eup %3155 }
0x1506   :  { %2496 = vst.msk [vmem:[%s4992_s27] sm:$0x3] %vm2495_vm10, %v3156_v12 }
0x1507   :  { %3179 = dma.done.wait [#allocation4], 32  }
0x1508   :  { %3180 = vsyncadd [#allocation4], 4294967264 }
0x1509   :  { %2514 = vsyncpa [#allocation4], 1 }

</bundles_post_ra>
